<compile_context>
chip_gen: v6e
topology: v6e:2x2x1
jax: 0.10.0
libtpu: 0.0.40
codegen_flags: <defaults>
</compile_context>

<pallas_src>
import functools
import math

import jax
import jax.numpy as jnp
from jax.experimental import pallas as pl
from jax.experimental.pallas import tpu as pltpu


# --------------------------------------------------------------------------- helpers
def _round_up(n, m):
    return ((n + m - 1) // m) * m


def _vmem_cap_bytes():
    try:
        return int(pltpu.get_tpu_info().vmem_capacity_bytes)
    except Exception:
        return 64 * 1024 * 1024  # conservative: v7x per-TensorCore VMEM


# Never request the whole physical VMEM (v7x has only 64 MiB per core).
_VMEM_BUDGET = min(48 * 1024 * 1024, (3 * _vmem_cap_bytes()) // 4)


def _vmem_limit(est_bytes):
    return int(min(max(2 * est_bytes, 32 * 1024 * 1024), _VMEM_BUDGET))


def _tile_rows(M, target):
    """Row tile (multiple of 8) and padded row count.

    Prefers >= 2 grid steps so the leading 'parallel' axis can shard across the
    two TensorCores of a v7x chip (and megacore on older chips).
    """
    tm = max(8, min(target, _round_up(M, 8)))
    tm -= tm % 8
    Mp = _round_up(M, tm)
    if Mp // tm < 2 and M > 8:
        tm = _round_up(max(8, _round_up(M, 8) // 2), 8)
        Mp = _round_up(M, tm)
    return tm, Mp


def _pad_rows(x2, Mp):
    M = x2.shape[0]
    if Mp != M:
        x2 = jnp.pad(x2, ((0, Mp - M), (0, 0)))
    return x2


def _layernorm_f32(x, g, b):
    # PyTorch nn.LayerNorm defaults: eps = 1e-5, elementwise affine.
    mean = jnp.mean(x, axis=-1, keepdims=True)
    var = jnp.mean(jnp.square(x - mean), axis=-1, keepdims=True)
    return (x - mean) * jax.lax.rsqrt(var + 1e-5) * g + b


# --------------------------------------------------------------------------- LN1 + fused QKV projection
def ln_qkv_kernel(x_ref, g_ref, b_ref, w_ref, bias_ref, o_ref):
    # x_ref: (tm, D) f32   w_ref: (D, 3D) bf16   bias_ref: (1, 3D) f32   o_ref: (tm, 3D) bf16
    xn = _layernorm_f32(x_ref[...].astype(jnp.float32), g_ref[...], b_ref[...])
    o_ref[...] = (
        jnp.dot(xn.astype(w_ref.dtype), w_ref[...], preferred_element_type=jnp.float32)
        + bias_ref[...]
    ).astype(o_ref.dtype)


def ln_qkv_proj(x, g, b, wqkv, bqkv, *, target_tm=256):
    B, S, D = x.shape
    D3 = wqkv.shape[1]
    M = B * S
    x2 = x.reshape(M, D)
    tm, Mp = _tile_rows(M, target_tm)
    x2 = _pad_rows(x2, Mp)
    wb = jnp.dtype(wqkv.dtype).itemsize
    est = (2 * tm * D * 4 + 2 * D * D3 * wb + 2 * 8 * D3 * 4
           + 4 * 8 * D * 4 + 2 * tm * D3 * wb)

    qkv = pl.pallas_call(
        ln_qkv_kernel,
        out_shape=jax.ShapeDtypeStruct((Mp, D3), wqkv.dtype),
        grid=(Mp // tm,),
        in_specs=[
            pl.BlockSpec((tm, D), lambda i: (i, 0)),
            pl.BlockSpec((1, D), lambda i: (0, 0)),
            pl.BlockSpec((1, D), lambda i: (0, 0)),
            pl.BlockSpec((D, D3), lambda i: (0, 0)),
            pl.BlockSpec((1, D3), lambda i: (0, 0)),
        ],
        out_specs=pl.BlockSpec((tm, D3), lambda i: (i, 0)),
        compiler_params=pltpu.CompilerParams(
            dimension_semantics=("parallel",),
            vmem_limit_bytes=_vmem_limit(est)),
    )(x2, g.reshape(1, D), b.reshape(1, D), wqkv, bqkv.reshape(1, D3))

    if Mp != M:
        qkv = qkv[:M]
    return qkv.reshape(B, S, D3)


# --------------------------------------------------------------------------- attention + out-proj + residual doubling
def attn_out_kernel(qkv_ref, wo_ref, bo_ref, o_ref, *, heads):
    # qkv_ref: (1, S, 3D) bf16   wo_ref: (D, D) bf16   bo_ref: (1, D) f32   o_ref: (1, S, D) f32
    qkv = qkv_ref[0]                    # (S, 3D)
    D = wo_ref.shape[0]
    dk = D // heads
    scale = 1.0 / math.sqrt(dk)

    acc = jnp.zeros(o_ref.shape[1:], jnp.float32)     # (S, D) f32 output-proj accumulator
    for h in range(heads):              # static unroll: all heads handled in one grid step
        qh = qkv[:, h * dk:(h + 1) * dk]
        kh = qkv[:, D + h * dk:D + (h + 1) * dk]
        vh = qkv[:, 2 * D + h * dk:2 * D + (h + 1) * dk]
        # q @ k^T without materializing the transpose (contract last dims).
        s = jax.lax.dot_general(qh, kh, (((1,), (1,)), ((), ())),
                                preferred_element_type=jnp.float32) * scale
        s = s - jnp.max(s, axis=-1, keepdims=True)
        p = jnp.exp(s)
        p = p * pl.reciprocal(jnp.sum(p, axis=-1, keepdims=True))   # EUP, off the VALU
        oh = jnp.dot(p.astype(vh.dtype), vh, preferred_element_type=jnp.float32)
        # Fold this head's slice of the output projection (block matmul over rows of Wo).
        acc = acc + jnp.dot(oh.astype(wo_ref.dtype), wo_ref[h * dk:(h + 1) * dk, :],
                            preferred_element_type=jnp.float32)

    # Literal EncoderLayer dataflow: x = dropout(sa_out) + sa_out  ==  2 * sa_out (eval mode).
    o_ref[0] = (2.0 * (acc + bo_ref[...])).astype(o_ref.dtype)


def attention_block(qkv, wo, bo, heads, out_dtype):
    B, S, D3 = qkv.shape
    D = D3 // 3
    qb = jnp.dtype(qkv.dtype).itemsize
    wb = jnp.dtype(wo.dtype).itemsize
    est = (2 * S * D3 * qb + 2 * D * D * wb + 2 * 8 * D * 4
           + 2 * S * D * 4 + 2 * S * S * 4 + S * D * 4)

    return pl.pallas_call(
        functools.partial(attn_out_kernel, heads=heads),
        out_shape=jax.ShapeDtypeStruct((B, S, D), out_dtype),
        grid=(B,),
        in_specs=[
            pl.BlockSpec((1, S, D3), lambda b: (b, 0, 0)),   # fused qkv, no XLA split/transpose
            pl.BlockSpec((D, D), lambda b: (0, 0)),
            pl.BlockSpec((1, D), lambda b: (0, 0)),
        ],
        out_specs=pl.BlockSpec((1, S, D), lambda b: (b, 0, 0)),
        compiler_params=pltpu.CompilerParams(
            dimension_semantics=("parallel",),
            vmem_limit_bytes=_vmem_limit(est)),
    )(qkv, wo, bo.reshape(1, D))


# --------------------------------------------------------------------------- LN2 + FFN + residual doubling
def ln_ffn_kernel(x_ref, g_ref, b_ref, w1_ref, b1_ref, w2_ref, b2_ref, o_ref):
    # Single-shot path (d_ff not tiled): no accumulator read-modify-write.
    xn = _layernorm_f32(x_ref[...].astype(jnp.float32), g_ref[...], b_ref[...])
    h = jnp.dot(xn.astype(w1_ref.dtype), w1_ref[...], preferred_element_type=jnp.float32)
    h = jnp.maximum(h + b1_ref[...], 0.0)            # ReLU; dropout = identity (eval)
    out = jnp.dot(h.astype(w2_ref.dtype), w2_ref[...], preferred_element_type=jnp.float32)
    # Literal: y = dropout(ffn_out) + ffn_out == 2 * ffn_out.
    o_ref[...] = (2.0 * (out + b2_ref[...])).astype(o_ref.dtype)


def ln_ffn_tiled_kernel(x_ref, g_ref, b_ref, w1_ref, b1_ref, w2_ref, b2_ref,
                        o_ref, acc_ref):
    # d_ff tiled path: f32 accumulator resident across the reduction axis.
    j = pl.program_id(1)

    @pl.when(j == 0)
    def _():
        acc_ref[...] = jnp.zeros_like(acc_ref)

    xn = _layernorm_f32(x_ref[...].astype(jnp.float32), g_ref[...], b_ref[...])
    h = jnp.dot(xn.astype(w1_ref.dtype), w1_ref[...], preferred_element_type=jnp.float32)
    h = jnp.maximum(h + b1_ref[...], 0.0)
    acc_ref[...] += jnp.dot(h.astype(w2_ref.dtype), w2_ref[...],
                            preferred_element_type=jnp.float32)

    @pl.when(j == pl.num_programs(1) - 1)
    def _():
        o_ref[...] = (2.0 * (acc_ref[...] + b2_ref[...])).astype(o_ref.dtype)


def ln_ffn(x, g, b, w1, b1, w2, b2, *, target_tm=256):
    B, S, D = x.shape
    d_ff = w1.shape[1]
    M = B * S
    x2 = x.reshape(M, D)
    tm, Mp = _tile_rows(M, target_tm)
    x2 = _pad_rows(x2, Mp)
    n_i = Mp // tm
    wb = jnp.dtype(w1.dtype).itemsize

    def footprint(tf):
        return (2 * tm * D * 4 + 2 * D * tf * wb + 2 * tf * D * wb
                + 2 * 8 * tf * 4 + 2 * 8 * D * 4 + 2 * tm * D * 4
                + tm * D * 4 + tm * tf * 4)

    # Prefer tf = d_ff (no accumulator RMW, weights loaded once) when it fits the budget.
    # TODO(synk): an irregular d_ff (not a multiple of 128) that overflows VMEM falls back
    #             to the whole-d_ff path; d_ff=2048 (module default) always fits.
    if d_ff % 128 != 0 or footprint(d_ff) <= _VMEM_BUDGET:
        tf = d_ff
    else:
        tf = 128
        for t in range(((d_ff // 128) - 1) * 128, 127, -128):
            if d_ff % t == 0 and footprint(t) <= _VMEM_BUDGET:
                tf = t
                break

    cost = pl.CostEstimate(
        flops=4 * Mp * D * d_ff,                         # two matmuls, 2*M*K*N each
        transcendentals=0,
        bytes_accessed=int(2 * Mp * D * 4                # activation in + out (f32)
                           + 2 * D * d_ff * wb * (n_i if tf != d_ff else 1)
                           + 4 * (d_ff + 3 * D)))

    if tf == d_ff:
        out = pl.pallas_call(
            ln_ffn_kernel,
            out_shape=jax.ShapeDtypeStruct((Mp, D), x.dtype),
            grid=(n_i,),
            in_specs=[
                pl.BlockSpec((tm, D), lambda i: (i, 0)),
                pl.BlockSpec((1, D), lambda i: (0, 0)),
                pl.BlockSpec((1, D), lambda i: (0, 0)),
                pl.BlockSpec((D, d_ff), lambda i: (0, 0)),
                pl.BlockSpec((1, d_ff), lambda i: (0, 0)),
                pl.BlockSpec((d_ff, D), lambda i: (0, 0)),
                pl.BlockSpec((1, D), lambda i: (0, 0)),
            ],
            out_specs=pl.BlockSpec((tm, D), lambda i: (i, 0)),
            compiler_params=pltpu.CompilerParams(
                dimension_semantics=("parallel",),
                vmem_limit_bytes=_vmem_limit(footprint(d_ff))),
            cost_estimate=cost,
        )(x2, g.reshape(1, D), b.reshape(1, D), w1, b1.reshape(1, d_ff),
          w2, b2.reshape(1, D))
    else:
        n_j = d_ff // tf
        out = pl.pallas_call(
            ln_ffn_tiled_kernel,
            out_shape=jax.ShapeDtypeStruct((Mp, D), x.dtype),
            grid=(n_i, n_j),                              # reduction (d_ff) axis last
            in_specs=[
                pl.BlockSpec((tm, D), lambda i, j: (i, 0)),
                pl.BlockSpec((1, D), lambda i, j: (0, 0)),
                pl.BlockSpec((1, D), lambda i, j: (0, 0)),
                pl.BlockSpec((D, tf), lambda i, j: (0, j)),
                pl.BlockSpec((1, tf), lambda i, j: (0, j)),
                pl.BlockSpec((tf, D), lambda i, j: (j, 0)),
                pl.BlockSpec((1, D), lambda i, j: (0, 0)),
            ],
            out_specs=pl.BlockSpec((tm, D), lambda i, j: (i, 0)),
            scratch_shapes=[pltpu.VMEM((tm, D), jnp.float32)],
            compiler_params=pltpu.CompilerParams(
                dimension_semantics=("parallel", "arbitrary"),
                vmem_limit_bytes=_vmem_limit(footprint(tf))),
            cost_estimate=cost,
        )(x2, g.reshape(1, D), b.reshape(1, D), w1, b1.reshape(1, d_ff),
          w2, b2.reshape(1, D))

    if Mp != M:
        out = out[:M]
    return out.reshape(B, S, D)


# --------------------------------------------------------------------------- final LayerNorm
def layernorm_kernel(x_ref, g_ref, b_ref, o_ref):
    o_ref[...] = _layernorm_f32(
        x_ref[...].astype(jnp.float32), g_ref[...], b_ref[...]).astype(o_ref.dtype)


def layer_norm(x, g, b, *, target_tm=512):
    shape = x.shape
    D = shape[-1]
    x2 = x.reshape(-1, D)
    M = x2.shape[0]
    tm, Mp = _tile_rows(M, target_tm)
    x2 = _pad_rows(x2, Mp)

    out = pl.pallas_call(
        layernorm_kernel,
        out_shape=jax.ShapeDtypeStruct((Mp, D), x.dtype),
        grid=(Mp // tm,),
        in_specs=[
            pl.BlockSpec((tm, D), lambda i: (i, 0)),
            pl.BlockSpec((1, D), lambda i: (0, 0)),
            pl.BlockSpec((1, D), lambda i: (0, 0)),
        ],
        out_specs=pl.BlockSpec((tm, D), lambda i: (i, 0)),
        compiler_params=pltpu.CompilerParams(
            dimension_semantics=("parallel",),
            vmem_limit_bytes=_vmem_limit(4 * tm * D * 4)),
    )(x2, g.reshape(1, D), b.reshape(1, D))

    if Mp != M:
        out = out[:M]
    return out.reshape(shape)


# --------------------------------------------------------------------------- layers / forward
def encoder_layer(x, p, heads):
    # Literal EncoderLayer.forward dataflow (eval-mode dropout = identity):
    #   x = norm1(x); x = sa(x,x,x); x = dropout(x)+x  -> 2*sa (LN1 fused into QKV kernel)
    #   y = norm2(x); y = ffn(y);    y = dropout(y)+y  -> 2*ffn (LN2 fused into FFN kernel)
    qkv = ln_qkv_proj(x, p["ln1_g"], p["ln1_b"], p["wqkv"], p["bqkv"])
    x = attention_block(qkv, p["wo"], p["bo"], heads, x.dtype)
    return ln_ffn(x, p["ln2_g"], p["ln2_b"], p["w1"], p["b1"], p["w2"], p["b2"])


def transformer_forward(src, params, heads, mask=None):
    # NOTE: Transformer.forward calls layer(src, mask), but EncoderLayer.forward(self, x)
    # accepts no mask and never forwards one to attention — the mask is dead code.
    del mask
    for p in params["layers"]:
        src = encoder_layer(src, p, heads)
    return layer_norm(src, params["ln_g"], params["ln_b"])


# --------------------------------------------------------------------------- params
def init_transformer_params(key, d_model, heads, n_layers, d_ff=2048, dtype=jnp.float32):
    """PyTorch defaults: Linear uniform(+/-1/sqrt(fan_in)), LayerNorm ones/zeros.
    Linear weights stored pre-transposed as [fan_in, fan_out]."""
    del heads  # head count only affects the forward reshape, not parameter shapes

    def linear_init(k, fan_in, fan_out):
        kw, kb = jax.random.split(k)
        bound = 1.0 / math.sqrt(fan_in)
        w = jax.random.uniform(kw, (fan_in, fan_out), dtype, -bound, bound)
        bb = jax.random.uniform(kb, (fan_out,), dtype, -bound, bound)
        return w, bb

    layers = []
    for lk in jax.random.split(key, n_layers):
        ks = jax.random.split(lk, 6)
        wq, bq = linear_init(ks[0], d_model, d_model)
        wk, bk = linear_init(ks[1], d_model, d_model)
        wv, bv = linear_init(ks[2], d_model, d_model)
        wo, bo = linear_init(ks[3], d_model, d_model)
        w1, b1 = linear_init(ks[4], d_model, d_ff)
        w2, b2 = linear_init(ks[5], d_ff, d_model)
        layers.append(dict(
            ln1_g=jnp.ones((d_model,), dtype), ln1_b=jnp.zeros((d_model,), dtype),
            ln2_g=jnp.ones((d_model,), dtype), ln2_b=jnp.zeros((d_model,), dtype),
            wq=wq, bq=bq, wk=wk, bk=bk, wv=wv, bv=bv, wo=wo, bo=bo,
            w1=w1, b1=b1, w2=w2, b2=b2))
    return dict(layers=layers,
                ln_g=jnp.ones((d_model,), dtype),
                ln_b=jnp.zeros((d_model,), dtype))


def prepare_params(params, compute_dtype=jnp.bfloat16):
    """Fuse Q/K/V weights and pre-cast matmul weights to the MXU compute dtype (bf16).
    LayerNorm params and biases stay f32 (added to f32 accumulators)."""
    layers = []
    for p in params["layers"]:
        layers.append(dict(
            ln1_g=p["ln1_g"], ln1_b=p["ln1_b"],
            ln2_g=p["ln2_g"], ln2_b=p["ln2_b"],
            wqkv=jnp.concatenate([p["wq"], p["wk"], p["wv"]], axis=1).astype(compute_dtype),
            bqkv=jnp.concatenate([p["bq"], p["bk"], p["bv"]]),
            wo=p["wo"].astype(compute_dtype), bo=p["bo"],
            w1=p["w1"].astype(compute_dtype), b1=p["b1"],
            w2=p["w2"].astype(compute_dtype), b2=p["b2"]))
    return dict(layers=layers, ln_g=params["ln_g"], ln_b=params["ln_b"])


# --------------------------------------------------------------------------- reference
def _reference_transformer(src, prep, heads):
    """Pure-JAX reference with the same (literal, eval-mode, bf16-MXU-operand) semantics."""
    def ln(x, g, b):
        m = jnp.mean(x, -1, keepdims=True)
        v = jnp.mean(jnp.square(x - m), -1, keepdims=True)
        return (x - m) * jax.lax.rsqrt(v + 1e-5) * g + b

    def mm(a, w):
        return jnp.dot(a.astype(w.dtype), w, preferred_element_type=jnp.float32)

    x = src
    for p in prep["layers"]:
        B, S, D = x.shape
        dk = D // heads
        qkv = (mm(ln(x, p["ln1_g"], p["ln1_b"]), p["wqkv"]) + p["bqkv"]).astype(p["wqkv"].dtype)
        q, k, v = qkv[..., :D], qkv[..., D:2 * D], qkv[..., 2 * D:]
        sp = lambda t: t.reshape(B, S, heads, dk).transpose(0, 2, 1, 3)
        q, k, v = sp(q), sp(k), sp(v)
        s = jnp.einsum("bhqd,bhkd->bhqk", q, k,
                       preferred_element_type=jnp.float32) / math.sqrt(dk)
        a = jax.nn.softmax(s, axis=-1)
        o = jnp.einsum("bhqk,bhkd->bhqd", a.astype(v.dtype), v,
                       preferred_element_type=jnp.float32)
        concat = o.transpose(0, 2, 1, 3).reshape(B, S, D)
        x = 2.0 * (mm(concat, p["wo"]) + p["bo"])
        h = jnp.maximum(mm(ln(x, p["ln2_g"], p["ln2_b"]), p["w1"]) + p["b1"], 0.0)
        x = 2.0 * (mm(h, p["w2"]) + p["b2"])
    return ln(x, prep["ln_g"], prep["ln_b"])


# --------------------------------------------------------------------------- main
if __name__ == "__main__":
    # Small but representative: d_model multiple of 128 (lane-dense stores),
    # d_ff = 2048 (the module's hardcoded FeedForward default).
    batch, seq, d_model, heads, n_layers = 2, 8, 128, 4, 2

    key = jax.random.PRNGKey(0)
    kx, kp = jax.random.split(key)
    src = jax.random.normal(kx, (batch, seq, d_model), jnp.float32)
    params = init_transformer_params(kp, d_model, heads, n_layers, d_ff=2048)
    prep = prepare_params(params)          # fused QKV weights, bf16 MXU operands

    fwd = jax.jit(transformer_forward, static_argnames=("heads",))
    out = jax.block_until_ready(fwd(src, prep, heads=heads))

    ref = _reference_transformer(src, prep, heads)
    assert out.shape == (batch, seq, d_model)
    err = float(jnp.max(jnp.abs(out - ref)))
    assert jnp.allclose(out, ref, atol=5e-3, rtol=5e-3), f"mismatch vs reference: {err}"

    print("KERNEL_OK")
</pallas_src>

<mosaic_0001>
module attributes {stable_mosaic.version = 11 : i64} {
  func.func @ln_qkv_kernel(%arg0: i32, %arg1: memref<8x128xf32, #tpu.memory_space<vmem>>, %arg2: memref<1x128xf32, #tpu.memory_space<vmem>>, %arg3: memref<1x128xf32, #tpu.memory_space<vmem>>, %arg4: memref<128x384xbf16, #tpu.memory_space<vmem>>, %arg5: memref<1x384xf32, #tpu.memory_space<vmem>>, %arg6: memref<8x384xbf16, #tpu.memory_space<vmem>>) attributes {dimension_semantics = [#tpu.dimension_semantics<parallel>], iteration_bounds = array<i64: 2>, scalar_prefetch = 0 : i64, scratch_operands = 0 : i64, tpu.core_type = #tpu.core_type<tc>, window_params = [{transform_indices = @transform_0, window_bounds = array<i64: 8, 128>}, {pipeline_mode = #tpu.pipeline_mode<synchronous>, transform_indices = @transform_1, window_bounds = array<i64: 1, 128>}, {pipeline_mode = #tpu.pipeline_mode<synchronous>, transform_indices = @transform_2, window_bounds = array<i64: 1, 128>}, {pipeline_mode = #tpu.pipeline_mode<synchronous>, transform_indices = @transform_3, window_bounds = array<i64: 128, 384>}, {pipeline_mode = #tpu.pipeline_mode<synchronous>, transform_indices = @transform_4, window_bounds = array<i64: 1, 384>}, {transform_indices = @transform_5, window_bounds = array<i64: 8, 384>}]} {
    %c0 = arith.constant 0 : index
    %c0_0 = arith.constant 0 : index
    %0 = vector.load %arg1[%c0, %c0_0] : memref<8x128xf32, #tpu.memory_space<vmem>>, vector<8x128xf32>
    %c0_1 = arith.constant 0 : index
    %c0_2 = arith.constant 0 : index
    %1 = vector.load %arg2[%c0_1, %c0_2] : memref<1x128xf32, #tpu.memory_space<vmem>>, vector<1x128xf32>
    %c0_3 = arith.constant 0 : index
    %c0_4 = arith.constant 0 : index
    %2 = vector.load %arg3[%c0_3, %c0_4] : memref<1x128xf32, #tpu.memory_space<vmem>>, vector<1x128xf32>
    %cst = arith.constant dense<0.000000e+00> : vector<8xf32>
    %3 = vector.multi_reduction <add>, %0, %cst [1] : vector<8x128xf32> to vector<8xf32>
    %4 = vector.shape_cast %3 : vector<8xf32> to vector<8x1xf32>
    %cst_5 = arith.constant 1.280000e+02 : f32
    %5 = vector.broadcast %cst_5 : f32 to vector<8x1xf32>
    %6 = arith.divf %4, %5 : vector<8x1xf32>
    %7 = vector.broadcast %6 : vector<8x1xf32> to vector<8x128xf32>
    %8 = arith.subf %0, %7 : vector<8x128xf32>
    %9 = arith.mulf %8, %8 : vector<8x128xf32>
    %cst_6 = arith.constant dense<0.000000e+00> : vector<8xf32>
    %10 = vector.multi_reduction <add>, %9, %cst_6 [1] : vector<8x128xf32> to vector<8xf32>
    %11 = vector.shape_cast %10 : vector<8xf32> to vector<8x1xf32>
    %cst_7 = arith.constant 1.280000e+02 : f32
    %12 = vector.broadcast %cst_7 : f32 to vector<8x1xf32>
    %13 = arith.divf %11, %12 : vector<8x1xf32>
    %14 = vector.broadcast %6 : vector<8x1xf32> to vector<8x128xf32>
    %15 = arith.subf %0, %14 : vector<8x128xf32>
    %cst_8 = arith.constant 9.99999974E-6 : f32
    %16 = vector.broadcast %cst_8 : f32 to vector<8x1xf32>
    %17 = arith.addf %13, %16 : vector<8x1xf32>
    %18 = math.rsqrt %17 : vector<8x1xf32>
    %19 = vector.broadcast %18 : vector<8x1xf32> to vector<8x128xf32>
    %20 = arith.mulf %15, %19 : vector<8x128xf32>
    %21 = vector.broadcast %1 : vector<1x128xf32> to vector<8x128xf32>
    %22 = arith.mulf %20, %21 : vector<8x128xf32>
    %23 = vector.broadcast %2 : vector<1x128xf32> to vector<8x128xf32>
    %24 = arith.addf %22, %23 : vector<8x128xf32>
    %25 = arith.truncf %24 : vector<8x128xf32> to vector<8x128xbf16>
    %c0_9 = arith.constant 0 : index
    %c0_10 = arith.constant 0 : index
    %26 = vector.load %arg4[%c0_9, %c0_10] : memref<128x384xbf16, #tpu.memory_space<vmem>>, vector<128x384xbf16>
    %cst_11 = arith.constant dense<0.000000e+00> : vector<8x384xf32>
    %27 = tpu.matmul %25, %26, %cst_11 {dimension_numbers = #tpu.dot_dimension_numbers<[1], [0], [0], [1], [0, 0, 1, 1], [], []>} : vector<8x128xbf16>, vector<128x384xbf16>, vector<8x384xf32> -> vector<8x384xf32>
    %c0_12 = arith.constant 0 : index
    %c0_13 = arith.constant 0 : index
    %28 = vector.load %arg5[%c0_12, %c0_13] : memref<1x384xf32, #tpu.memory_space<vmem>>, vector<1x384xf32>
    %29 = vector.broadcast %28 : vector<1x384xf32> to vector<8x384xf32>
    %30 = arith.addf %27, %29 : vector<8x384xf32>
    %31 = arith.truncf %30 : vector<8x384xf32> to vector<8x384xbf16>
    %c0_14 = arith.constant 0 : index
    %c0_15 = arith.constant 0 : index
    %32 = vector.load %arg6[%c0_14, %c0_15] : memref<8x384xbf16, #tpu.memory_space<vmem>>, vector<8x384xbf16>
    tpu.vector_store %arg6[%c0_14, %c0_15], %31 {strides = array<i32>} : memref<8x384xbf16, #tpu.memory_space<vmem>>, vector<8x384xbf16>,
    return
  }
  func.func @transform_0(%arg0: i32) -> (i32, i32) {
    %c0_i32 = arith.constant 0 : i32
    %c0_i32_0 = arith.constant 0 : i32
    return %arg0, %c0_i32 : i32, i32
  }
  func.func @transform_1(%arg0: i32) -> (i32, i32) {
    %c0_i32 = arith.constant 0 : i32
    %c0_i32_0 = arith.constant 0 : i32
    %c0_i32_1 = arith.constant 0 : i32
    return %c0_i32, %c0_i32_0 : i32, i32
  }
  func.func @transform_2(%arg0: i32) -> (i32, i32) {
    %c0_i32 = arith.constant 0 : i32
    %c0_i32_0 = arith.constant 0 : i32
    %c0_i32_1 = arith.constant 0 : i32
    return %c0_i32, %c0_i32_0 : i32, i32
  }
  func.func @transform_3(%arg0: i32) -> (i32, i32) {
    %c0_i32 = arith.constant 0 : i32
    %c0_i32_0 = arith.constant 0 : i32
    %c0_i32_1 = arith.constant 0 : i32
    return %c0_i32, %c0_i32_0 : i32, i32
  }
  func.func @transform_4(%arg0: i32) -> (i32, i32) {
    %c0_i32 = arith.constant 0 : i32
    %c0_i32_0 = arith.constant 0 : i32
    %c0_i32_1 = arith.constant 0 : i32
    return %c0_i32, %c0_i32_0 : i32, i32
  }
  func.func @transform_5(%arg0: i32) -> (i32, i32) {
    %c0_i32 = arith.constant 0 : i32
    %c0_i32_0 = arith.constant 0 : i32
    return %arg0, %c0_i32 : i32, i32
  }
}

module attributes {stable_mosaic.version = 11 : i64} {
  func.func @ln_ffn_kernel(%arg0: i32, %arg1: memref<8x128xf32, #tpu.memory_space<vmem>>, %arg2: memref<1x128xf32, #tpu.memory_space<vmem>>, %arg3: memref<1x128xf32, #tpu.memory_space<vmem>>, %arg4: memref<128x2048xbf16, #tpu.memory_space<vmem>>, %arg5: memref<1x2048xf32, #tpu.memory_space<vmem>>, %arg6: memref<2048x128xbf16, #tpu.memory_space<vmem>>, %arg7: memref<1x128xf32, #tpu.memory_space<vmem>>, %arg8: memref<8x128xf32, #tpu.memory_space<vmem>>) attributes {dimension_semantics = [#tpu.dimension_semantics<parallel>], iteration_bounds = array<i64: 2>, scalar_prefetch = 0 : i64, scratch_operands = 0 : i64, tpu.core_type = #tpu.core_type<tc>, window_params = [{transform_indices = @transform_0, window_bounds = array<i64: 8, 128>}, {pipeline_mode = #tpu.pipeline_mode<synchronous>, transform_indices = @transform_1, window_bounds = array<i64: 1, 128>}, {pipeline_mode = #tpu.pipeline_mode<synchronous>, transform_indices = @transform_2, window_bounds = array<i64: 1, 128>}, {pipeline_mode = #tpu.pipeline_mode<synchronous>, transform_indices = @transform_3, window_bounds = array<i64: 128, 2048>}, {pipeline_mode = #tpu.pipeline_mode<synchronous>, transform_indices = @transform_4, window_bounds = array<i64: 1, 2048>}, {pipeline_mode = #tpu.pipeline_mode<synchronous>, transform_indices = @transform_5, window_bounds = array<i64: 2048, 128>}, {pipeline_mode = #tpu.pipeline_mode<synchronous>, transform_indices = @transform_6, window_bounds = array<i64: 1, 128>}, {transform_indices = @transform_7, window_bounds = array<i64: 8, 128>}]} {
    %c0 = arith.constant 0 : index
    %c0_0 = arith.constant 0 : index
    %0 = vector.load %arg1[%c0, %c0_0] : memref<8x128xf32, #tpu.memory_space<vmem>>, vector<8x128xf32>
    %c0_1 = arith.constant 0 : index
    %c0_2 = arith.constant 0 : index
    %1 = vector.load %arg2[%c0_1, %c0_2] : memref<1x128xf32, #tpu.memory_space<vmem>>, vector<1x128xf32>
    %c0_3 = arith.constant 0 : index
    %c0_4 = arith.constant 0 : index
    %2 = vector.load %arg3[%c0_3, %c0_4] : memref<1x128xf32, #tpu.memory_space<vmem>>, vector<1x128xf32>
    %cst = arith.constant dense<0.000000e+00> : vector<8xf32>
    %3 = vector.multi_reduction <add>, %0, %cst [1] : vector<8x128xf32> to vector<8xf32>
    %4 = vector.shape_cast %3 : vector<8xf32> to vector<8x1xf32>
    %cst_5 = arith.constant 1.280000e+02 : f32
    %5 = vector.broadcast %cst_5 : f32 to vector<8x1xf32>
    %6 = arith.divf %4, %5 : vector<8x1xf32>
    %7 = vector.broadcast %6 : vector<8x1xf32> to vector<8x128xf32>
    %8 = arith.subf %0, %7 : vector<8x128xf32>
    %9 = arith.mulf %8, %8 : vector<8x128xf32>
    %cst_6 = arith.constant dense<0.000000e+00> : vector<8xf32>
    %10 = vector.multi_reduction <add>, %9, %cst_6 [1] : vector<8x128xf32> to vector<8xf32>
    %11 = vector.shape_cast %10 : vector<8xf32> to vector<8x1xf32>
    %cst_7 = arith.constant 1.280000e+02 : f32
    %12 = vector.broadcast %cst_7 : f32 to vector<8x1xf32>
    %13 = arith.divf %11, %12 : vector<8x1xf32>
    %14 = vector.broadcast %6 : vector<8x1xf32> to vector<8x128xf32>
    %15 = arith.subf %0, %14 : vector<8x128xf32>
    %cst_8 = arith.constant 9.99999974E-6 : f32
    %16 = vector.broadcast %cst_8 : f32 to vector<8x1xf32>
    %17 = arith.addf %13, %16 : vector<8x1xf32>
    %18 = math.rsqrt %17 : vector<8x1xf32>
    %19 = vector.broadcast %18 : vector<8x1xf32> to vector<8x128xf32>
    %20 = arith.mulf %15, %19 : vector<8x128xf32>
    %21 = vector.broadcast %1 : vector<1x128xf32> to vector<8x128xf32>
    %22 = arith.mulf %20, %21 : vector<8x128xf32>
    %23 = vector.broadcast %2 : vector<1x128xf32> to vector<8x128xf32>
    %24 = arith.addf %22, %23 : vector<8x128xf32>
    %25 = arith.truncf %24 : vector<8x128xf32> to vector<8x128xbf16>
    %c0_9 = arith.constant 0 : index
    %c0_10 = arith.constant 0 : index
    %26 = vector.load %arg4[%c0_9, %c0_10] : memref<128x2048xbf16, #tpu.memory_space<vmem>>, vector<128x2048xbf16>
    %cst_11 = arith.constant dense<0.000000e+00> : vector<8x2048xf32>
    %27 = tpu.matmul %25, %26, %cst_11 {dimension_numbers = #tpu.dot_dimension_numbers<[1], [0], [0], [1], [0, 0, 1, 1], [], []>} : vector<8x128xbf16>, vector<128x2048xbf16>, vector<8x2048xf32> -> vector<8x2048xf32>
    %c0_12 = arith.constant 0 : index
    %c0_13 = arith.constant 0 : index
    %28 = vector.load %arg5[%c0_12, %c0_13] : memref<1x2048xf32, #tpu.memory_space<vmem>>, vector<1x2048xf32>
    %29 = vector.broadcast %28 : vector<1x2048xf32> to vector<8x2048xf32>
    %30 = arith.addf %27, %29 : vector<8x2048xf32>
    %cst_14 = arith.constant 0.000000e+00 : f32
    %31 = vector.broadcast %cst_14 : f32 to vector<8x2048xf32>
    %32 = arith.maximumf %30, %31 : vector<8x2048xf32>
    %33 = arith.truncf %32 : vector<8x2048xf32> to vector<8x2048xbf16>
    %c0_15 = arith.constant 0 : index
    %c0_16 = arith.constant 0 : index
    %34 = vector.load %arg6[%c0_15, %c0_16] : memref<2048x128xbf16, #tpu.memory_space<vmem>>, vector<2048x128xbf16>
    %cst_17 = arith.constant dense<0.000000e+00> : vector<8x128xf32>
    %35 = tpu.matmul %33, %34, %cst_17 {dimension_numbers = #tpu.dot_dimension_numbers<[1], [0], [0], [1], [0, 0, 1, 1], [], []>} : vector<8x2048xbf16>, vector<2048x128xbf16>, vector<8x128xf32> -> vector<8x128xf32>
    %c0_18 = arith.constant 0 : index
    %c0_19 = arith.constant 0 : index
    %36 = vector.load %arg7[%c0_18, %c0_19] : memref<1x128xf32, #tpu.memory_space<vmem>>, vector<1x128xf32>
    %37 = vector.broadcast %36 : vector<1x128xf32> to vector<8x128xf32>
    %38 = arith.addf %35, %37 : vector<8x128xf32>
    %cst_20 = arith.constant 2.000000e+00 : f32
    %39 = vector.broadcast %cst_20 : f32 to vector<8x128xf32>
    %40 = arith.mulf %39, %38 : vector<8x128xf32>
    %c0_21 = arith.constant 0 : index
    %c0_22 = arith.constant 0 : index
    %41 = vector.load %arg8[%c0_21, %c0_22] : memref<8x128xf32, #tpu.memory_space<vmem>>, vector<8x128xf32>
    tpu.vector_store %arg8[%c0_21, %c0_22], %40 {strides = array<i32>} : memref<8x128xf32, #tpu.memory_space<vmem>>, vector<8x128xf32>,
    return
  }
  func.func @transform_0(%arg0: i32) -> (i32, i32) {
    %c0_i32 = arith.constant 0 : i32
    %c0_i32_0 = arith.constant 0 : i32
    return %arg0, %c0_i32 : i32, i32
  }
  func.func @transform_1(%arg0: i32) -> (i32, i32) {
    %c0_i32 = arith.constant 0 : i32
    %c0_i32_0 = arith.constant 0 : i32
    %c0_i32_1 = arith.constant 0 : i32
    return %c0_i32, %c0_i32_0 : i32, i32
  }
  func.func @transform_2(%arg0: i32) -> (i32, i32) {
    %c0_i32 = arith.constant 0 : i32
    %c0_i32_0 = arith.constant 0 : i32
    %c0_i32_1 = arith.constant 0 : i32
    return %c0_i32, %c0_i32_0 : i32, i32
  }
  func.func @transform_3(%arg0: i32) -> (i32, i32) {
    %c0_i32 = arith.constant 0 : i32
    %c0_i32_0 = arith.constant 0 : i32
    %c0_i32_1 = arith.constant 0 : i32
    return %c0_i32, %c0_i32_0 : i32, i32
  }
  func.func @transform_4(%arg0: i32) -> (i32, i32) {
    %c0_i32 = arith.constant 0 : i32
    %c0_i32_0 = arith.constant 0 : i32
    %c0_i32_1 = arith.constant 0 : i32
    return %c0_i32, %c0_i32_0 : i32, i32
  }
  func.func @transform_5(%arg0: i32) -> (i32, i32) {
    %c0_i32 = arith.constant 0 : i32
    %c0_i32_0 = arith.constant 0 : i32
    %c0_i32_1 = arith.constant 0 : i32
    return %c0_i32, %c0_i32_0 : i32, i32
  }
  func.func @transform_6(%arg0: i32) -> (i32, i32) {
    %c0_i32 = arith.constant 0 : i32
    %c0_i32_0 = arith.constant 0 : i32
    %c0_i32_1 = arith.constant 0 : i32
    return %c0_i32, %c0_i32_0 : i32, i32
  }
  func.func @transform_7(%arg0: i32) -> (i32, i32) {
    %c0_i32 = arith.constant 0 : i32
    %c0_i32_0 = arith.constant 0 : i32
    return %arg0, %c0_i32 : i32, i32
  }
}

module attributes {stable_mosaic.version = 11 : i64} {
  func.func @attn_out_kernel(%arg0: i32, %arg1: memref<1x8x384xbf16, #tpu.memory_space<vmem>>, %arg2: memref<128x128xbf16, #tpu.memory_space<vmem>>, %arg3: memref<1x128xf32, #tpu.memory_space<vmem>>, %arg4: memref<1x8x128xf32, #tpu.memory_space<vmem>>) attributes {dimension_semantics = [#tpu.dimension_semantics<parallel>], iteration_bounds = array<i64: 2>, scalar_prefetch = 0 : i64, scratch_operands = 0 : i64, tpu.core_type = #tpu.core_type<tc>, window_params = [{transform_indices = @transform_0, window_bounds = array<i64: 1, 8, 384>}, {pipeline_mode = #tpu.pipeline_mode<synchronous>, transform_indices = @transform_1, window_bounds = array<i64: 128, 128>}, {pipeline_mode = #tpu.pipeline_mode<synchronous>, transform_indices = @transform_2, window_bounds = array<i64: 1, 128>}, {transform_indices = @transform_3, window_bounds = array<i64: 1, 8, 128>}]} {
    %c0 = arith.constant 0 : index
    %c0_0 = arith.constant 0 : index
    %c0_1 = arith.constant 0 : index
    %0 = vector.load %arg1[%c0, %c0_0, %c0_1] : memref<1x8x384xbf16, #tpu.memory_space<vmem>>, vector<1x8x384xbf16>
    %1 = vector.shape_cast %0 : vector<1x8x384xbf16> to vector<8x384xbf16>
    %cst = arith.constant 0.000000e+00 : f32
    %2 = vector.broadcast %cst : f32 to vector<8x128xf32>
    %3 = vector.extract_strided_slice %1 {offsets = [0, 0], sizes = [8, 32], strides = [1, 1]} : vector<8x384xbf16> to vector<8x32xbf16>
    %4 = vector.extract_strided_slice %1 {offsets = [0, 128], sizes = [8, 32], strides = [1, 1]} : vector<8x384xbf16> to vector<8x32xbf16>
    %5 = vector.extract_strided_slice %1 {offsets = [0, 256], sizes = [8, 32], strides = [1, 1]} : vector<8x384xbf16> to vector<8x32xbf16>
    %cst_2 = arith.constant dense<0.000000e+00> : vector<8x8xf32>
    %6 = tpu.matmul %3, %4, %cst_2 {dimension_numbers = #tpu.dot_dimension_numbers<[1], [1], [0], [0], [0, 0, 1, 0], [], []>} : vector<8x32xbf16>, vector<8x32xbf16>, vector<8x8xf32> -> vector<8x8xf32>
    %cst_3 = arith.constant 0.176776692 : f32
    %7 = vector.broadcast %cst_3 : f32 to vector<8x8xf32>
    %8 = arith.mulf %6, %7 : vector<8x8xf32>
    %cst_4 = arith.constant dense<0xFF800000> : vector<8xf32>
    %9 = vector.multi_reduction <maximumf>, %8, %cst_4 [1] : vector<8x8xf32> to vector<8xf32>
    %10 = vector.shape_cast %9 : vector<8xf32> to vector<8x1xf32>
    %11 = vector.broadcast %10 : vector<8x1xf32> to vector<8x8xf32>
    %12 = arith.subf %8, %11 : vector<8x8xf32>
    %13 = math.exp %12 : vector<8x8xf32>
    %cst_5 = arith.constant dense<0.000000e+00> : vector<8xf32>
    %14 = vector.multi_reduction <add>, %13, %cst_5 [1] : vector<8x8xf32> to vector<8xf32>
    %15 = vector.shape_cast %14 : vector<8xf32> to vector<8x1xf32>
    %16 = tpu.reciprocal %15 : vector<8x1xf32> -> vector<8x1xf32>
    %17 = vector.broadcast %16 : vector<8x1xf32> to vector<8x8xf32>
    %18 = arith.mulf %13, %17 : vector<8x8xf32>
    %19 = arith.truncf %18 : vector<8x8xf32> to vector<8x8xbf16>
    %cst_6 = arith.constant dense<0.000000e+00> : vector<8x32xf32>
    %20 = tpu.matmul %19, %5, %cst_6 {dimension_numbers = #tpu.dot_dimension_numbers<[1], [0], [0], [1], [0, 0, 1, 1], [], []>} : vector<8x8xbf16>, vector<8x32xbf16>, vector<8x32xf32> -> vector<8x32xf32>
    %21 = arith.truncf %20 : vector<8x32xf32> to vector<8x32xbf16>
    %c0_7 = arith.constant 0 : index
    %c0_8 = arith.constant 0 : index
    %22 = vector.load %arg2[%c0_7, %c0_8] : memref<128x128xbf16, #tpu.memory_space<vmem>>, vector<32x128xbf16>
    %cst_9 = arith.constant dense<0.000000e+00> : vector<8x128xf32>
    %23 = tpu.matmul %21, %22, %cst_9 {dimension_numbers = #tpu.dot_dimension_numbers<[1], [0], [0], [1], [0, 0, 1, 1], [], []>} : vector<8x32xbf16>, vector<32x128xbf16>, vector<8x128xf32> -> vector<8x128xf32>
    %24 = arith.addf %2, %23 : vector<8x128xf32>
    %25 = vector.extract_strided_slice %1 {offsets = [0, 32], sizes = [8, 32], strides = [1, 1]} : vector<8x384xbf16> to vector<8x32xbf16>
    %26 = vector.extract_strided_slice %1 {offsets = [0, 160], sizes = [8, 32], strides = [1, 1]} : vector<8x384xbf16> to vector<8x32xbf16>
    %27 = vector.extract_strided_slice %1 {offsets = [0, 288], sizes = [8, 32], strides = [1, 1]} : vector<8x384xbf16> to vector<8x32xbf16>
    %cst_10 = arith.constant dense<0.000000e+00> : vector<8x8xf32>
    %28 = tpu.matmul %25, %26, %cst_10 {dimension_numbers = #tpu.dot_dimension_numbers<[1], [1], [0], [0], [0, 0, 1, 0], [], []>} : vector<8x32xbf16>, vector<8x32xbf16>, vector<8x8xf32> -> vector<8x8xf32>
    %cst_11 = arith.constant 0.176776692 : f32
    %29 = vector.broadcast %cst_11 : f32 to vector<8x8xf32>
    %30 = arith.mulf %28, %29 : vector<8x8xf32>
    %cst_12 = arith.constant dense<0xFF800000> : vector<8xf32>
    %31 = vector.multi_reduction <maximumf>, %30, %cst_12 [1] : vector<8x8xf32> to vector<8xf32>
    %32 = vector.shape_cast %31 : vector<8xf32> to vector<8x1xf32>
    %33 = vector.broadcast %32 : vector<8x1xf32> to vector<8x8xf32>
    %34 = arith.subf %30, %33 : vector<8x8xf32>
    %35 = math.exp %34 : vector<8x8xf32>
    %cst_13 = arith.constant dense<0.000000e+00> : vector<8xf32>
    %36 = vector.multi_reduction <add>, %35, %cst_13 [1] : vector<8x8xf32> to vector<8xf32>
    %37 = vector.shape_cast %36 : vector<8xf32> to vector<8x1xf32>
    %38 = tpu.reciprocal %37 : vector<8x1xf32> -> vector<8x1xf32>
    %39 = vector.broadcast %38 : vector<8x1xf32> to vector<8x8xf32>
    %40 = arith.mulf %35, %39 : vector<8x8xf32>
    %41 = arith.truncf %40 : vector<8x8xf32> to vector<8x8xbf16>
    %cst_14 = arith.constant dense<0.000000e+00> : vector<8x32xf32>
    %42 = tpu.matmul %41, %27, %cst_14 {dimension_numbers = #tpu.dot_dimension_numbers<[1], [0], [0], [1], [0, 0, 1, 1], [], []>} : vector<8x8xbf16>, vector<8x32xbf16>, vector<8x32xf32> -> vector<8x32xf32>
    %43 = arith.truncf %42 : vector<8x32xf32> to vector<8x32xbf16>
    %c32 = arith.constant 32 : index
    %c0_15 = arith.constant 0 : index
    %44 = vector.load %arg2[%c32, %c0_15] : memref<128x128xbf16, #tpu.memory_space<vmem>>, vector<32x128xbf16>
    %cst_16 = arith.constant dense<0.000000e+00> : vector<8x128xf32>
    %45 = tpu.matmul %43, %44, %cst_16 {dimension_numbers = #tpu.dot_dimension_numbers<[1], [0], [0], [1], [0, 0, 1, 1], [], []>} : vector<8x32xbf16>, vector<32x128xbf16>, vector<8x128xf32> -> vector<8x128xf32>
    %46 = arith.addf %24, %45 : vector<8x128xf32>
    %47 = vector.extract_strided_slice %1 {offsets = [0, 64], sizes = [8, 32], strides = [1, 1]} : vector<8x384xbf16> to vector<8x32xbf16>
    %48 = vector.extract_strided_slice %1 {offsets = [0, 192], sizes = [8, 32], strides = [1, 1]} : vector<8x384xbf16> to vector<8x32xbf16>
    %49 = vector.extract_strided_slice %1 {offsets = [0, 320], sizes = [8, 32], strides = [1, 1]} : vector<8x384xbf16> to vector<8x32xbf16>
    %cst_17 = arith.constant dense<0.000000e+00> : vector<8x8xf32>
    %50 = tpu.matmul %47, %48, %cst_17 {dimension_numbers = #tpu.dot_dimension_numbers<[1], [1], [0], [0], [0, 0, 1, 0], [], []>} : vector<8x32xbf16>, vector<8x32xbf16>, vector<8x8xf32> -> vector<8x8xf32>
    %cst_18 = arith.constant 0.176776692 : f32
    %51 = vector.broadcast %cst_18 : f32 to vector<8x8xf32>
    %52 = arith.mulf %50, %51 : vector<8x8xf32>
    %cst_19 = arith.constant dense<0xFF800000> : vector<8xf32>
    %53 = vector.multi_reduction <maximumf>, %52, %cst_19 [1] : vector<8x8xf32> to vector<8xf32>
    %54 = vector.shape_cast %53 : vector<8xf32> to vector<8x1xf32>
    %55 = vector.broadcast %54 : vector<8x1xf32> to vector<8x8xf32>
    %56 = arith.subf %52, %55 : vector<8x8xf32>
    %57 = math.exp %56 : vector<8x8xf32>
    %cst_20 = arith.constant dense<0.000000e+00> : vector<8xf32>
    %58 = vector.multi_reduction <add>, %57, %cst_20 [1] : vector<8x8xf32> to vector<8xf32>
    %59 = vector.shape_cast %58 : vector<8xf32> to vector<8x1xf32>
    %60 = tpu.reciprocal %59 : vector<8x1xf32> -> vector<8x1xf32>
    %61 = vector.broadcast %60 : vector<8x1xf32> to vector<8x8xf32>
    %62 = arith.mulf %57, %61 : vector<8x8xf32>
    %63 = arith.truncf %62 : vector<8x8xf32> to vector<8x8xbf16>
    %cst_21 = arith.constant dense<0.000000e+00> : vector<8x32xf32>
    %64 = tpu.matmul %63, %49, %cst_21 {dimension_numbers = #tpu.dot_dimension_numbers<[1], [0], [0], [1], [0, 0, 1, 1], [], []>} : vector<8x8xbf16>, vector<8x32xbf16>, vector<8x32xf32> -> vector<8x32xf32>
    %65 = arith.truncf %64 : vector<8x32xf32> to vector<8x32xbf16>
    %c64 = arith.constant 64 : index
    %c0_22 = arith.constant 0 : index
    %66 = vector.load %arg2[%c64, %c0_22] : memref<128x128xbf16, #tpu.memory_space<vmem>>, vector<32x128xbf16>
    %cst_23 = arith.constant dense<0.000000e+00> : vector<8x128xf32>
    %67 = tpu.matmul %65, %66, %cst_23 {dimension_numbers = #tpu.dot_dimension_numbers<[1], [0], [0], [1], [0, 0, 1, 1], [], []>} : vector<8x32xbf16>, vector<32x128xbf16>, vector<8x128xf32> -> vector<8x128xf32>
    %68 = arith.addf %46, %67 : vector<8x128xf32>
    %69 = vector.extract_strided_slice %1 {offsets = [0, 96], sizes = [8, 32], strides = [1, 1]} : vector<8x384xbf16> to vector<8x32xbf16>
    %70 = vector.extract_strided_slice %1 {offsets = [0, 224], sizes = [8, 32], strides = [1, 1]} : vector<8x384xbf16> to vector<8x32xbf16>
    %71 = vector.extract_strided_slice %1 {offsets = [0, 352], sizes = [8, 32], strides = [1, 1]} : vector<8x384xbf16> to vector<8x32xbf16>
    %cst_24 = arith.constant dense<0.000000e+00> : vector<8x8xf32>
    %72 = tpu.matmul %69, %70, %cst_24 {dimension_numbers = #tpu.dot_dimension_numbers<[1], [1], [0], [0], [0, 0, 1, 0], [], []>} : vector<8x32xbf16>, vector<8x32xbf16>, vector<8x8xf32> -> vector<8x8xf32>
    %cst_25 = arith.constant 0.176776692 : f32
    %73 = vector.broadcast %cst_25 : f32 to vector<8x8xf32>
    %74 = arith.mulf %72, %73 : vector<8x8xf32>
    %cst_26 = arith.constant dense<0xFF800000> : vector<8xf32>
    %75 = vector.multi_reduction <maximumf>, %74, %cst_26 [1] : vector<8x8xf32> to vector<8xf32>
    %76 = vector.shape_cast %75 : vector<8xf32> to vector<8x1xf32>
    %77 = vector.broadcast %76 : vector<8x1xf32> to vector<8x8xf32>
    %78 = arith.subf %74, %77 : vector<8x8xf32>
    %79 = math.exp %78 : vector<8x8xf32>
    %cst_27 = arith.constant dense<0.000000e+00> : vector<8xf32>
    %80 = vector.multi_reduction <add>, %79, %cst_27 [1] : vector<8x8xf32> to vector<8xf32>
    %81 = vector.shape_cast %80 : vector<8xf32> to vector<8x1xf32>
    %82 = tpu.reciprocal %81 : vector<8x1xf32> -> vector<8x1xf32>
    %83 = vector.broadcast %82 : vector<8x1xf32> to vector<8x8xf32>
    %84 = arith.mulf %79, %83 : vector<8x8xf32>
    %85 = arith.truncf %84 : vector<8x8xf32> to vector<8x8xbf16>
    %cst_28 = arith.constant dense<0.000000e+00> : vector<8x32xf32>
    %86 = tpu.matmul %85, %71, %cst_28 {dimension_numbers = #tpu.dot_dimension_numbers<[1], [0], [0], [1], [0, 0, 1, 1], [], []>} : vector<8x8xbf16>, vector<8x32xbf16>, vector<8x32xf32> -> vector<8x32xf32>
    %87 = arith.truncf %86 : vector<8x32xf32> to vector<8x32xbf16>
    %c96 = arith.constant 96 : index
    %c0_29 = arith.constant 0 : index
    %88 = vector.load %arg2[%c96, %c0_29] : memref<128x128xbf16, #tpu.memory_space<vmem>>, vector<32x128xbf16>
    %cst_30 = arith.constant dense<0.000000e+00> : vector<8x128xf32>
    %89 = tpu.matmul %87, %88, %cst_30 {dimension_numbers = #tpu.dot_dimension_numbers<[1], [0], [0], [1], [0, 0, 1, 1], [], []>} : vector<8x32xbf16>, vector<32x128xbf16>, vector<8x128xf32> -> vector<8x128xf32>
    %90 = arith.addf %68, %89 : vector<8x128xf32>
    %c0_31 = arith.constant 0 : index
    %c0_32 = arith.constant 0 : index
    %91 = vector.load %arg3[%c0_31, %c0_32] : memref<1x128xf32, #tpu.memory_space<vmem>>, vector<1x128xf32>
    %92 = vector.broadcast %91 : vector<1x128xf32> to vector<8x128xf32>
    %93 = arith.addf %90, %92 : vector<8x128xf32>
    %cst_33 = arith.constant 2.000000e+00 : f32
    %94 = vector.broadcast %cst_33 : f32 to vector<8x128xf32>
    %95 = arith.mulf %94, %93 : vector<8x128xf32>
    %c0_34 = arith.constant 0 : index
    %c0_35 = arith.constant 0 : index
    %c0_36 = arith.constant 0 : index
    %96 = vector.load %arg4[%c0_34, %c0_35, %c0_36] : memref<1x8x128xf32, #tpu.memory_space<vmem>>, vector<1x8x128xf32>
    %97 = vector.shape_cast %96 : vector<1x8x128xf32> to vector<8x128xf32>
    %98 = vector.shape_cast %95 : vector<8x128xf32> to vector<1x8x128xf32>
    tpu.vector_store %arg4[%c0_34, %c0_35, %c0_36], %98 {strides = array<i32>} : memref<1x8x128xf32, #tpu.memory_space<vmem>>, vector<1x8x128xf32>,
    return
  }
  func.func @transform_0(%arg0: i32) -> (i32, i32, i32) {
    %c0_i32 = arith.constant 0 : i32
    %c0_i32_0 = arith.constant 0 : i32
    %c0_i32_1 = arith.constant 0 : i32
    return %arg0, %c0_i32, %c0_i32_0 : i32, i32, i32
  }
  func.func @transform_1(%arg0: i32) -> (i32, i32) {
    %c0_i32 = arith.constant 0 : i32
    %c0_i32_0 = arith.constant 0 : i32
    %c0_i32_1 = arith.constant 0 : i32
    return %c0_i32, %c0_i32_0 : i32, i32
  }
  func.func @transform_2(%arg0: i32) -> (i32, i32) {
    %c0_i32 = arith.constant 0 : i32
    %c0_i32_0 = arith.constant 0 : i32
    %c0_i32_1 = arith.constant 0 : i32
    return %c0_i32, %c0_i32_0 : i32, i32
  }
  func.func @transform_3(%arg0: i32) -> (i32, i32, i32) {
    %c0_i32 = arith.constant 0 : i32
    %c0_i32_0 = arith.constant 0 : i32
    %c0_i32_1 = arith.constant 0 : i32
    return %arg0, %c0_i32, %c0_i32_0 : i32, i32, i32
  }
}

module attributes {stable_mosaic.version = 11 : i64} {
  func.func @ln_qkv_kernel(%arg0: i32, %arg1: memref<8x128xf32, #tpu.memory_space<vmem>>, %arg2: memref<1x128xf32, #tpu.memory_space<vmem>>, %arg3: memref<1x128xf32, #tpu.memory_space<vmem>>, %arg4: memref<128x384xbf16, #tpu.memory_space<vmem>>, %arg5: memref<1x384xf32, #tpu.memory_space<vmem>>, %arg6: memref<8x384xbf16, #tpu.memory_space<vmem>>) attributes {dimension_semantics = [#tpu.dimension_semantics<parallel>], iteration_bounds = array<i64: 2>, scalar_prefetch = 0 : i64, scratch_operands = 0 : i64, tpu.core_type = #tpu.core_type<tc>, window_params = [{transform_indices = @transform_0, window_bounds = array<i64: 8, 128>}, {pipeline_mode = #tpu.pipeline_mode<synchronous>, transform_indices = @transform_1, window_bounds = array<i64: 1, 128>}, {pipeline_mode = #tpu.pipeline_mode<synchronous>, transform_indices = @transform_2, window_bounds = array<i64: 1, 128>}, {pipeline_mode = #tpu.pipeline_mode<synchronous>, transform_indices = @transform_3, window_bounds = array<i64: 128, 384>}, {pipeline_mode = #tpu.pipeline_mode<synchronous>, transform_indices = @transform_4, window_bounds = array<i64: 1, 384>}, {transform_indices = @transform_5, window_bounds = array<i64: 8, 384>}]} {
    %c0 = arith.constant 0 : index
    %c0_0 = arith.constant 0 : index
    %0 = vector.load %arg1[%c0, %c0_0] : memref<8x128xf32, #tpu.memory_space<vmem>>, vector<8x128xf32>
    %c0_1 = arith.constant 0 : index
    %c0_2 = arith.constant 0 : index
    %1 = vector.load %arg2[%c0_1, %c0_2] : memref<1x128xf32, #tpu.memory_space<vmem>>, vector<1x128xf32>
    %c0_3 = arith.constant 0 : index
    %c0_4 = arith.constant 0 : index
    %2 = vector.load %arg3[%c0_3, %c0_4] : memref<1x128xf32, #tpu.memory_space<vmem>>, vector<1x128xf32>
    %cst = arith.constant dense<0.000000e+00> : vector<8xf32>
    %3 = vector.multi_reduction <add>, %0, %cst [1] : vector<8x128xf32> to vector<8xf32>
    %4 = vector.shape_cast %3 : vector<8xf32> to vector<8x1xf32>
    %cst_5 = arith.constant 1.280000e+02 : f32
    %5 = vector.broadcast %cst_5 : f32 to vector<8x1xf32>
    %6 = arith.divf %4, %5 : vector<8x1xf32>
    %7 = vector.broadcast %6 : vector<8x1xf32> to vector<8x128xf32>
    %8 = arith.subf %0, %7 : vector<8x128xf32>
    %9 = arith.mulf %8, %8 : vector<8x128xf32>
    %cst_6 = arith.constant dense<0.000000e+00> : vector<8xf32>
    %10 = vector.multi_reduction <add>, %9, %cst_6 [1] : vector<8x128xf32> to vector<8xf32>
    %11 = vector.shape_cast %10 : vector<8xf32> to vector<8x1xf32>
    %cst_7 = arith.constant 1.280000e+02 : f32
    %12 = vector.broadcast %cst_7 : f32 to vector<8x1xf32>
    %13 = arith.divf %11, %12 : vector<8x1xf32>
    %14 = vector.broadcast %6 : vector<8x1xf32> to vector<8x128xf32>
    %15 = arith.subf %0, %14 : vector<8x128xf32>
    %cst_8 = arith.constant 9.99999974E-6 : f32
    %16 = vector.broadcast %cst_8 : f32 to vector<8x1xf32>
    %17 = arith.addf %13, %16 : vector<8x1xf32>
    %18 = math.rsqrt %17 : vector<8x1xf32>
    %19 = vector.broadcast %18 : vector<8x1xf32> to vector<8x128xf32>
    %20 = arith.mulf %15, %19 : vector<8x128xf32>
    %21 = vector.broadcast %1 : vector<1x128xf32> to vector<8x128xf32>
    %22 = arith.mulf %20, %21 : vector<8x128xf32>
    %23 = vector.broadcast %2 : vector<1x128xf32> to vector<8x128xf32>
    %24 = arith.addf %22, %23 : vector<8x128xf32>
    %25 = arith.truncf %24 : vector<8x128xf32> to vector<8x128xbf16>
    %c0_9 = arith.constant 0 : index
    %c0_10 = arith.constant 0 : index
    %26 = vector.load %arg4[%c0_9, %c0_10] : memref<128x384xbf16, #tpu.memory_space<vmem>>, vector<128x384xbf16>
    %cst_11 = arith.constant dense<0.000000e+00> : vector<8x384xf32>
    %27 = tpu.matmul %25, %26, %cst_11 {dimension_numbers = #tpu.dot_dimension_numbers<[1], [0], [0], [1], [0, 0, 1, 1], [], []>} : vector<8x128xbf16>, vector<128x384xbf16>, vector<8x384xf32> -> vector<8x384xf32>
    %c0_12 = arith.constant 0 : index
    %c0_13 = arith.constant 0 : index
    %28 = vector.load %arg5[%c0_12, %c0_13] : memref<1x384xf32, #tpu.memory_space<vmem>>, vector<1x384xf32>
    %29 = vector.broadcast %28 : vector<1x384xf32> to vector<8x384xf32>
    %30 = arith.addf %27, %29 : vector<8x384xf32>
    %31 = arith.truncf %30 : vector<8x384xf32> to vector<8x384xbf16>
    %c0_14 = arith.constant 0 : index
    %c0_15 = arith.constant 0 : index
    %32 = vector.load %arg6[%c0_14, %c0_15] : memref<8x384xbf16, #tpu.memory_space<vmem>>, vector<8x384xbf16>
    tpu.vector_store %arg6[%c0_14, %c0_15], %31 {strides = array<i32>} : memref<8x384xbf16, #tpu.memory_space<vmem>>, vector<8x384xbf16>,
    return
  }
  func.func @transform_0(%arg0: i32) -> (i32, i32) {
    %c0_i32 = arith.constant 0 : i32
    %c0_i32_0 = arith.constant 0 : i32
    return %arg0, %c0_i32 : i32, i32
  }
  func.func @transform_1(%arg0: i32) -> (i32, i32) {
    %c0_i32 = arith.constant 0 : i32
    %c0_i32_0 = arith.constant 0 : i32
    %c0_i32_1 = arith.constant 0 : i32
    return %c0_i32, %c0_i32_0 : i32, i32
  }
  func.func @transform_2(%arg0: i32) -> (i32, i32) {
    %c0_i32 = arith.constant 0 : i32
    %c0_i32_0 = arith.constant 0 : i32
    %c0_i32_1 = arith.constant 0 : i32
    return %c0_i32, %c0_i32_0 : i32, i32
  }
  func.func @transform_3(%arg0: i32) -> (i32, i32) {
    %c0_i32 = arith.constant 0 : i32
    %c0_i32_0 = arith.constant 0 : i32
    %c0_i32_1 = arith.constant 0 : i32
    return %c0_i32, %c0_i32_0 : i32, i32
  }
  func.func @transform_4(%arg0: i32) -> (i32, i32) {
    %c0_i32 = arith.constant 0 : i32
    %c0_i32_0 = arith.constant 0 : i32
    %c0_i32_1 = arith.constant 0 : i32
    return %c0_i32, %c0_i32_0 : i32, i32
  }
  func.func @transform_5(%arg0: i32) -> (i32, i32) {
    %c0_i32 = arith.constant 0 : i32
    %c0_i32_0 = arith.constant 0 : i32
    return %arg0, %c0_i32 : i32, i32
  }
}

module attributes {stable_mosaic.version = 11 : i64} {
  func.func @ln_ffn_kernel(%arg0: i32, %arg1: memref<8x128xf32, #tpu.memory_space<vmem>>, %arg2: memref<1x128xf32, #tpu.memory_space<vmem>>, %arg3: memref<1x128xf32, #tpu.memory_space<vmem>>, %arg4: memref<128x2048xbf16, #tpu.memory_space<vmem>>, %arg5: memref<1x2048xf32, #tpu.memory_space<vmem>>, %arg6: memref<2048x128xbf16, #tpu.memory_space<vmem>>, %arg7: memref<1x128xf32, #tpu.memory_space<vmem>>, %arg8: memref<8x128xf32, #tpu.memory_space<vmem>>) attributes {dimension_semantics = [#tpu.dimension_semantics<parallel>], iteration_bounds = array<i64: 2>, scalar_prefetch = 0 : i64, scratch_operands = 0 : i64, tpu.core_type = #tpu.core_type<tc>, window_params = [{transform_indices = @transform_0, window_bounds = array<i64: 8, 128>}, {pipeline_mode = #tpu.pipeline_mode<synchronous>, transform_indices = @transform_1, window_bounds = array<i64: 1, 128>}, {pipeline_mode = #tpu.pipeline_mode<synchronous>, transform_indices = @transform_2, window_bounds = array<i64: 1, 128>}, {pipeline_mode = #tpu.pipeline_mode<synchronous>, transform_indices = @transform_3, window_bounds = array<i64: 128, 2048>}, {pipeline_mode = #tpu.pipeline_mode<synchronous>, transform_indices = @transform_4, window_bounds = array<i64: 1, 2048>}, {pipeline_mode = #tpu.pipeline_mode<synchronous>, transform_indices = @transform_5, window_bounds = array<i64: 2048, 128>}, {pipeline_mode = #tpu.pipeline_mode<synchronous>, transform_indices = @transform_6, window_bounds = array<i64: 1, 128>}, {transform_indices = @transform_7, window_bounds = array<i64: 8, 128>}]} {
    %c0 = arith.constant 0 : index
    %c0_0 = arith.constant 0 : index
    %0 = vector.load %arg1[%c0, %c0_0] : memref<8x128xf32, #tpu.memory_space<vmem>>, vector<8x128xf32>
    %c0_1 = arith.constant 0 : index
    %c0_2 = arith.constant 0 : index
    %1 = vector.load %arg2[%c0_1, %c0_2] : memref<1x128xf32, #tpu.memory_space<vmem>>, vector<1x128xf32>
    %c0_3 = arith.constant 0 : index
    %c0_4 = arith.constant 0 : index
    %2 = vector.load %arg3[%c0_3, %c0_4] : memref<1x128xf32, #tpu.memory_space<vmem>>, vector<1x128xf32>
    %cst = arith.constant dense<0.000000e+00> : vector<8xf32>
    %3 = vector.multi_reduction <add>, %0, %cst [1] : vector<8x128xf32> to vector<8xf32>
    %4 = vector.shape_cast %3 : vector<8xf32> to vector<8x1xf32>
    %cst_5 = arith.constant 1.280000e+02 : f32
    %5 = vector.broadcast %cst_5 : f32 to vector<8x1xf32>
    %6 = arith.divf %4, %5 : vector<8x1xf32>
    %7 = vector.broadcast %6 : vector<8x1xf32> to vector<8x128xf32>
    %8 = arith.subf %0, %7 : vector<8x128xf32>
    %9 = arith.mulf %8, %8 : vector<8x128xf32>
    %cst_6 = arith.constant dense<0.000000e+00> : vector<8xf32>
    %10 = vector.multi_reduction <add>, %9, %cst_6 [1] : vector<8x128xf32> to vector<8xf32>
    %11 = vector.shape_cast %10 : vector<8xf32> to vector<8x1xf32>
    %cst_7 = arith.constant 1.280000e+02 : f32
    %12 = vector.broadcast %cst_7 : f32 to vector<8x1xf32>
    %13 = arith.divf %11, %12 : vector<8x1xf32>
    %14 = vector.broadcast %6 : vector<8x1xf32> to vector<8x128xf32>
    %15 = arith.subf %0, %14 : vector<8x128xf32>
    %cst_8 = arith.constant 9.99999974E-6 : f32
    %16 = vector.broadcast %cst_8 : f32 to vector<8x1xf32>
    %17 = arith.addf %13, %16 : vector<8x1xf32>
    %18 = math.rsqrt %17 : vector<8x1xf32>
    %19 = vector.broadcast %18 : vector<8x1xf32> to vector<8x128xf32>
    %20 = arith.mulf %15, %19 : vector<8x128xf32>
    %21 = vector.broadcast %1 : vector<1x128xf32> to vector<8x128xf32>
    %22 = arith.mulf %20, %21 : vector<8x128xf32>
    %23 = vector.broadcast %2 : vector<1x128xf32> to vector<8x128xf32>
    %24 = arith.addf %22, %23 : vector<8x128xf32>
    %25 = arith.truncf %24 : vector<8x128xf32> to vector<8x128xbf16>
    %c0_9 = arith.constant 0 : index
    %c0_10 = arith.constant 0 : index
    %26 = vector.load %arg4[%c0_9, %c0_10] : memref<128x2048xbf16, #tpu.memory_space<vmem>>, vector<128x2048xbf16>
    %cst_11 = arith.constant dense<0.000000e+00> : vector<8x2048xf32>
    %27 = tpu.matmul %25, %26, %cst_11 {dimension_numbers = #tpu.dot_dimension_numbers<[1], [0], [0], [1], [0, 0, 1, 1], [], []>} : vector<8x128xbf16>, vector<128x2048xbf16>, vector<8x2048xf32> -> vector<8x2048xf32>
    %c0_12 = arith.constant 0 : index
    %c0_13 = arith.constant 0 : index
    %28 = vector.load %arg5[%c0_12, %c0_13] : memref<1x2048xf32, #tpu.memory_space<vmem>>, vector<1x2048xf32>
    %29 = vector.broadcast %28 : vector<1x2048xf32> to vector<8x2048xf32>
    %30 = arith.addf %27, %29 : vector<8x2048xf32>
    %cst_14 = arith.constant 0.000000e+00 : f32
    %31 = vector.broadcast %cst_14 : f32 to vector<8x2048xf32>
    %32 = arith.maximumf %30, %31 : vector<8x2048xf32>
    %33 = arith.truncf %32 : vector<8x2048xf32> to vector<8x2048xbf16>
    %c0_15 = arith.constant 0 : index
    %c0_16 = arith.constant 0 : index
    %34 = vector.load %arg6[%c0_15, %c0_16] : memref<2048x128xbf16, #tpu.memory_space<vmem>>, vector<2048x128xbf16>
    %cst_17 = arith.constant dense<0.000000e+00> : vector<8x128xf32>
    %35 = tpu.matmul %33, %34, %cst_17 {dimension_numbers = #tpu.dot_dimension_numbers<[1], [0], [0], [1], [0, 0, 1, 1], [], []>} : vector<8x2048xbf16>, vector<2048x128xbf16>, vector<8x128xf32> -> vector<8x128xf32>
    %c0_18 = arith.constant 0 : index
    %c0_19 = arith.constant 0 : index
    %36 = vector.load %arg7[%c0_18, %c0_19] : memref<1x128xf32, #tpu.memory_space<vmem>>, vector<1x128xf32>
    %37 = vector.broadcast %36 : vector<1x128xf32> to vector<8x128xf32>
    %38 = arith.addf %35, %37 : vector<8x128xf32>
    %cst_20 = arith.constant 2.000000e+00 : f32
    %39 = vector.broadcast %cst_20 : f32 to vector<8x128xf32>
    %40 = arith.mulf %39, %38 : vector<8x128xf32>
    %c0_21 = arith.constant 0 : index
    %c0_22 = arith.constant 0 : index
    %41 = vector.load %arg8[%c0_21, %c0_22] : memref<8x128xf32, #tpu.memory_space<vmem>>, vector<8x128xf32>
    tpu.vector_store %arg8[%c0_21, %c0_22], %40 {strides = array<i32>} : memref<8x128xf32, #tpu.memory_space<vmem>>, vector<8x128xf32>,
    return
  }
  func.func @transform_0(%arg0: i32) -> (i32, i32) {
    %c0_i32 = arith.constant 0 : i32
    %c0_i32_0 = arith.constant 0 : i32
    return %arg0, %c0_i32 : i32, i32
  }
  func.func @transform_1(%arg0: i32) -> (i32, i32) {
    %c0_i32 = arith.constant 0 : i32
    %c0_i32_0 = arith.constant 0 : i32
    %c0_i32_1 = arith.constant 0 : i32
    return %c0_i32, %c0_i32_0 : i32, i32
  }
  func.func @transform_2(%arg0: i32) -> (i32, i32) {
    %c0_i32 = arith.constant 0 : i32
    %c0_i32_0 = arith.constant 0 : i32
    %c0_i32_1 = arith.constant 0 : i32
    return %c0_i32, %c0_i32_0 : i32, i32
  }
  func.func @transform_3(%arg0: i32) -> (i32, i32) {
    %c0_i32 = arith.constant 0 : i32
    %c0_i32_0 = arith.constant 0 : i32
    %c0_i32_1 = arith.constant 0 : i32
    return %c0_i32, %c0_i32_0 : i32, i32
  }
  func.func @transform_4(%arg0: i32) -> (i32, i32) {
    %c0_i32 = arith.constant 0 : i32
    %c0_i32_0 = arith.constant 0 : i32
    %c0_i32_1 = arith.constant 0 : i32
    return %c0_i32, %c0_i32_0 : i32, i32
  }
  func.func @transform_5(%arg0: i32) -> (i32, i32) {
    %c0_i32 = arith.constant 0 : i32
    %c0_i32_0 = arith.constant 0 : i32
    %c0_i32_1 = arith.constant 0 : i32
    return %c0_i32, %c0_i32_0 : i32, i32
  }
  func.func @transform_6(%arg0: i32) -> (i32, i32) {
    %c0_i32 = arith.constant 0 : i32
    %c0_i32_0 = arith.constant 0 : i32
    %c0_i32_1 = arith.constant 0 : i32
    return %c0_i32, %c0_i32_0 : i32, i32
  }
  func.func @transform_7(%arg0: i32) -> (i32, i32) {
    %c0_i32 = arith.constant 0 : i32
    %c0_i32_0 = arith.constant 0 : i32
    return %arg0, %c0_i32 : i32, i32
  }
}

module attributes {stable_mosaic.version = 11 : i64} {
  func.func @layernorm_kernel(%arg0: i32, %arg1: memref<8x128xf32, #tpu.memory_space<vmem>>, %arg2: memref<1x128xf32, #tpu.memory_space<vmem>>, %arg3: memref<1x128xf32, #tpu.memory_space<vmem>>, %arg4: memref<8x128xf32, #tpu.memory_space<vmem>>) attributes {dimension_semantics = [#tpu.dimension_semantics<parallel>], iteration_bounds = array<i64: 2>, scalar_prefetch = 0 : i64, scratch_operands = 0 : i64, tpu.core_type = #tpu.core_type<tc>, window_params = [{transform_indices = @transform_0, window_bounds = array<i64: 8, 128>}, {pipeline_mode = #tpu.pipeline_mode<synchronous>, transform_indices = @transform_1, window_bounds = array<i64: 1, 128>}, {pipeline_mode = #tpu.pipeline_mode<synchronous>, transform_indices = @transform_2, window_bounds = array<i64: 1, 128>}, {transform_indices = @transform_3, window_bounds = array<i64: 8, 128>}]} {
    %c0 = arith.constant 0 : index
    %c0_0 = arith.constant 0 : index
    %0 = vector.load %arg1[%c0, %c0_0] : memref<8x128xf32, #tpu.memory_space<vmem>>, vector<8x128xf32>
    %c0_1 = arith.constant 0 : index
    %c0_2 = arith.constant 0 : index
    %1 = vector.load %arg2[%c0_1, %c0_2] : memref<1x128xf32, #tpu.memory_space<vmem>>, vector<1x128xf32>
    %c0_3 = arith.constant 0 : index
    %c0_4 = arith.constant 0 : index
    %2 = vector.load %arg3[%c0_3, %c0_4] : memref<1x128xf32, #tpu.memory_space<vmem>>, vector<1x128xf32>
    %cst = arith.constant dense<0.000000e+00> : vector<8xf32>
    %3 = vector.multi_reduction <add>, %0, %cst [1] : vector<8x128xf32> to vector<8xf32>
    %4 = vector.shape_cast %3 : vector<8xf32> to vector<8x1xf32>
    %cst_5 = arith.constant 1.280000e+02 : f32
    %5 = vector.broadcast %cst_5 : f32 to vector<8x1xf32>
    %6 = arith.divf %4, %5 : vector<8x1xf32>
    %7 = vector.broadcast %6 : vector<8x1xf32> to vector<8x128xf32>
    %8 = arith.subf %0, %7 : vector<8x128xf32>
    %9 = arith.mulf %8, %8 : vector<8x128xf32>
    %cst_6 = arith.constant dense<0.000000e+00> : vector<8xf32>
    %10 = vector.multi_reduction <add>, %9, %cst_6 [1] : vector<8x128xf32> to vector<8xf32>
    %11 = vector.shape_cast %10 : vector<8xf32> to vector<8x1xf32>
    %cst_7 = arith.constant 1.280000e+02 : f32
    %12 = vector.broadcast %cst_7 : f32 to vector<8x1xf32>
    %13 = arith.divf %11, %12 : vector<8x1xf32>
    %14 = vector.broadcast %6 : vector<8x1xf32> to vector<8x128xf32>
    %15 = arith.subf %0, %14 : vector<8x128xf32>
    %cst_8 = arith.constant 9.99999974E-6 : f32
    %16 = vector.broadcast %cst_8 : f32 to vector<8x1xf32>
    %17 = arith.addf %13, %16 : vector<8x1xf32>
    %18 = math.rsqrt %17 : vector<8x1xf32>
    %19 = vector.broadcast %18 : vector<8x1xf32> to vector<8x128xf32>
    %20 = arith.mulf %15, %19 : vector<8x128xf32>
    %21 = vector.broadcast %1 : vector<1x128xf32> to vector<8x128xf32>
    %22 = arith.mulf %20, %21 : vector<8x128xf32>
    %23 = vector.broadcast %2 : vector<1x128xf32> to vector<8x128xf32>
    %24 = arith.addf %22, %23 : vector<8x128xf32>
    %c0_9 = arith.constant 0 : index
    %c0_10 = arith.constant 0 : index
    %25 = vector.load %arg4[%c0_9, %c0_10] : memref<8x128xf32, #tpu.memory_space<vmem>>, vector<8x128xf32>
    tpu.vector_store %arg4[%c0_9, %c0_10], %24 {strides = array<i32>} : memref<8x128xf32, #tpu.memory_space<vmem>>, vector<8x128xf32>,
    return
  }
  func.func @transform_0(%arg0: i32) -> (i32, i32) {
    %c0_i32 = arith.constant 0 : i32
    %c0_i32_0 = arith.constant 0 : i32
    return %arg0, %c0_i32 : i32, i32
  }
  func.func @transform_1(%arg0: i32) -> (i32, i32) {
    %c0_i32 = arith.constant 0 : i32
    %c0_i32_0 = arith.constant 0 : i32
    %c0_i32_1 = arith.constant 0 : i32
    return %c0_i32, %c0_i32_0 : i32, i32
  }
  func.func @transform_2(%arg0: i32) -> (i32, i32) {
    %c0_i32 = arith.constant 0 : i32
    %c0_i32_0 = arith.constant 0 : i32
    %c0_i32_1 = arith.constant 0 : i32
    return %c0_i32, %c0_i32_0 : i32, i32
  }
  func.func @transform_3(%arg0: i32) -> (i32, i32) {
    %c0_i32 = arith.constant 0 : i32
    %c0_i32_0 = arith.constant 0 : i32
    return %arg0, %c0_i32 : i32, i32
  }
}

</mosaic_0001>

<bundles_post_ra>
// kernel: transformer_forward.7
= control target key start
LH: loop header
LB: loop body
LE: loop exit
PB: predicated region body
PF: predicated region fallthrough
CT: control target
= control target key end

     0   :  { %10 = vsyncpa [#allocation3], 0  ;;  %s811_s18 = smov 0   ;;  %s855_s0 = inlined_call_operand.vmem [shape: f32[16,128], index: 0, kind: input, shape index: {}]   ;;  %s856_s1 = inlined_call_operand.vmem [shape: f32[1,128], index: 1, kind: input, shape index: {}]   ;;  %s857_s2 = inlined_call_operand.vmem [shape: f32[1,128], index: 2, kind: input, shape index: {}]   ;;  %s858_s3 = inlined_call_operand.hbm [shape: bf16[128,384], index: 3, kind: input, shape index: {}]   ;;  %s859_s4 = inlined_call_operand.vmem [shape: f32[1,384], index: 4, kind: input, shape index: {}]   ;;  %s860_s5 = inlined_call_operand.vmem [shape: bf16[16,384], index: 5, kind: output, shape index: {}]  }
   0x1 LB: > { %s608_s19 = sadd.s32 4294967295, %s773_s18   ;;  %p610_p0 = scmp.ge.s32.totalorder %s773_s18, 1  ;;  %s773_s18 = sphi %s811_s18, %s16_s18  }
   0x2   : > { %p157_p1 = scmp.lt.s32.totalorder %s773_s18, 3  ;;  %s775_s20 = smov [#allocation2]  }
   0x3   : > { %s175_s21 = sshll.u32 %s775_s20, 4  ;;  %p687_p3 = scmp.eq.s32.totalorder %s608_s19, 0  ;;  %s176_s21 = int_to_ptr.vmem [resolvable:$true] %s175_s21 }
   0x4   : > { %p819_p2 = pnand %p610_p0, %p157_p1  ;;  %s748_s23 = scalar_lea.vmem %s176_s21, 3072 }
   0x5   : > { %p749_p7 = scmp.ne.s32.totalorder %s176_s21, %s748_s23  ;;  %p756_p10 = scmp.lt.s32.totalorder %s176_s21, %s176_s21 }
   0x6   : > { %p683_p4 = pneg %p819_p2  ;;  %p757_p11 = scmp.lt.s32.totalorder %s748_s23, %s748_s23 }
   0x8   : > { %p684_p5 = pnand %p687_p3, %p683_p4  ;;  %p758_p12 = por %p757_p11, %p756_p10 }
   0xa   : > { %p739_p6 = pneg %p684_p5 }
   0xc   : > { %p751_p8 = pnand %p749_p7, %p739_p6 }
   0xe   : > { %p752_p9 = pneg %p751_p8 }
  0x10   : > { %p759_p13 = pnand %p758_p12, %p752_p9 }
  0x12   : > { %762 = shalt.err (!%p759_p13)
}
  0x13   : > { %s776_s24 = smov 192   ;;  %s777_s25 = smov 12  }
  0x14   : > { %686 = dma.hbm_to_vmem [thread:$0]  (!%p684_p5), %s858_s3, 3072, %s176_s21, [#allocation3], %s776_s24, %s776_s24, %s777_s25  }
  0x15   : > { %201 = sbr.rel (%p819_p2) target bundleno = 541 (0x21d), region = 40 }
  0x1a   : > { %768 = dma.done.wait (%p687_p3), [#allocation3], 3072  }
  0x1b   : > { %770 = vsyncadd (%p687_p3), [#allocation3], 4294964224  ;;  %p228_p0 = scmp.lt.s32.totalorder %s608_s19, 1  ;;  %v703_v1 = vld [vmem:[#allocation2 + $0xac] ss:$12 sps:$4 sm:$0xff]   ;;  %v778_v3 = vmov 0.0   ;;  %v302_v41 = vlaneseq }
  0x1c   : > { %v705_v2 = vld [vmem:[#allocation2 + $0xa8] ss:$12 sps:$4 sm:$0xff]   ;;  %658 = vmatprep.subr.bf16.mxu1 %v778_v3  ;;  %v706_v4 = vld [vmem:[#allocation2 + $0xb0] ss:$12 sps:$4 sm:$0xff]   ;;  %445 = vmatprep.subr.bf16.mxu0 %v703_v1  ;;  %v710_v7 = vld [vmem:[#allocation2 + $0x98] ss:$12 sps:$4 sm:$0xff]  }
  0x1d   : > { %s863_s19 = smov (!%p228_p0, %s608_s19), 1  ;;  %v707_v5 = vld [vmem:[#allocation2 + $0x94] ss:$12 sps:$4 sm:$0xff]   ;;  %446 = vmatpush1.bf16.msra.mxu0 %v705_v2  ;;  %659 = vmatpush3.bf16.msra.mxu1 %v706_v4  ;;  %v709_v6 = vld [vmem:[#allocation2 + $0x90] ss:$12 sps:$4 sm:$0xff]   ;;  %v779_v22 = vmov 0  }
  0x1e   : > { %s615_s28 = sshll.u32 %s863_s19, 3  ;;  %447 = vmatprep.subr.bf16.mxu0 %v707_v5  ;;  %660 = vmatprep.subr.bf16.mxu1 %v778_v3  ;;  %v711_v12 = vld [vmem:[#allocation2 + $0x7c] ss:$12 sps:$4 sm:$0xff]   ;;  %v713_v13 = vld [vmem:[#allocation2 + $0x78] ss:$12 sps:$4 sm:$0xff]   ;;  %vm780_vm0 = vmmov 0  }
  0x1f   : > { %s231_s6 = scalar_lea.vmem %s855_s0, %s615_s28  ;;  %v714_v14 = vld [vmem:[#allocation2 + $0x80] ss:$12 sps:$4 sm:$0xff]   ;;  %v715_v15 = vld [vmem:[#allocation2 + $0x64] ss:$12 sps:$4 sm:$0xff]   ;;  %v718_v17 = vld [vmem:[#allocation2 + $0x68] ss:$12 sps:$4 sm:$0xff]   ;;  %477 = vmatprep.mubr.bf16.mxu0 %v779_v22  ;;  %674 = vmatprep.mubr.msk.bf16.mxu1 %vm780_vm0, %v778_v3 }
  0x20   : > { %v238_v0 = vld [vmem:[%s231_s6] sm:$0xff]  ;;  %v719_v18 = vld [vmem:[#allocation2 + $0x4c] ss:$12 sps:$4 sm:$0xff]   ;;  %v721_v19 = vld [vmem:[#allocation2 + $0x48] ss:$12 sps:$4 sm:$0xff]   ;;  %v303_v42 = vshrl.u32 %v302_v41, 7 }
  0x21   : > { %241 = vadd.xlane.f32.xlu0 %v238_v0  ;;  %448 = vmatpush1.bf16.msra.mxu0 %v709_v6  ;;  %v717_v16 = vld [vmem:[#allocation2 + $0x60] ss:$12 sps:$4 sm:$0xff]   ;;  %v722_v20 = vld [vmem:[#allocation2 + $0x50] ss:$12 sps:$4 sm:$0xff]   ;;  %v726_v24 = vld [vmem:[#allocation2 + $0x38] ss:$12 sps:$4 sm:$0xff]  }
  0x22   : > { %661 = vmatpush3.bf16.msra.mxu1 %v710_v7  ;;  %449 = vmatprep.subr.bf16.mxu0 %v711_v12  ;;  %v723_v21 = vld [vmem:[#allocation2 + $0x34] ss:$12 sps:$4 sm:$0xff]   ;;  %v725_v23 = vld [vmem:[#allocation2 + $0x30] ss:$12 sps:$4 sm:$0xff]   ;;  %v729_v26 = vld [vmem:[#allocation2 + $0x18] ss:$12 sps:$4 sm:$0xff]  }
  0x23   : > { %662 = vmatprep.subr.bf16.mxu1 %v778_v3  ;;  %v727_v25 = vld [vmem:[#allocation2 + $0x1c] ss:$12 sps:$4 sm:$0xff]   ;;  %v730_v27 = vld [vmem:[#allocation2 + $0x20] ss:$12 sps:$4 sm:$0xff]   ;;  %v731_v28 = vld [vmem:[#allocation2 + $0x4] ss:$12 sps:$4 sm:$0xff]  }
  0x24   : > { %v733_v29 = vld [vmem:[#allocation2] ss:$12 sps:$4 sm:$0xff]   ;;  %v734_v30 = vld [vmem:[#allocation2 + $0x8] ss:$12 sps:$4 sm:$0xff]   ;;  %v312_v43 = vsub.s32 2, %v303_v42  ;;  %v304_v45 = vsub.s32 0, %v303_v42 }
  0x25   : > { %450 = vmatpush1.bf16.msra.mxu0 %v713_v13  ;;  %v617_v35 = vld [vmem:[%s856_s1] ss:$0 sm:$0xff]  ;;  %v308_v46 = vsub.s32 1, %v303_v42  ;;  %s678_s13 = smul.u32 12, %s863_s19 }
  0x26   : > { %663 = vmatpush3.bf16.msra.mxu1 %v714_v14  ;;  %451 = vmatprep.subr.bf16.mxu0 %v715_v15  ;;  %v618_v37 = vld [vmem:[%s857_s2] ss:$0 sm:$0xff] }
  0x27   : > { %664 = vmatprep.subr.bf16.mxu1 %v778_v3  ;;  %v300_v44 = vld [vmem:[%s859_s4] sm:$0x7]  ;;  %s236_s16 = scalar_lea.vmem %s860_s5, %s678_s13 }
  0x28   : > { %v313_v47 = vrot.slane %v300_v44, %v312_v43  ;;  %v305_v48 = vrot.slane %v300_v44, %v304_v45  ;;  %v309_v49 = vrot.slane %v300_v44, %v308_v46 }
  0x29   : > { %452 = vmatpush1.bf16.msra.mxu0 %v717_v16 }
  0x2a   : > { %665 = vmatpush3.bf16.msra.mxu1 %v718_v17  ;;  %453 = vmatprep.subr.bf16.mxu0 %v719_v18 }
  0x2b   : > { %666 = vmatprep.subr.bf16.mxu1 %v778_v3 }
  0x2d   : > { %454 = vmatpush1.bf16.msra.mxu0 %v721_v19 }
  0x2e   : > { %667 = vmatpush3.bf16.msra.mxu1 %v722_v20  ;;  %455 = vmatprep.subr.bf16.mxu0 %v723_v21 }
  0x2f   : > { %668 = vmatprep.subr.bf16.mxu1 %v778_v3 }
  0x31   : > { %456 = vmatpush1.bf16.msra.mxu0 %v725_v23 }
  0x32   : > { %669 = vmatpush3.bf16.msra.mxu1 %v726_v24  ;;  %457 = vmatprep.subr.bf16.mxu0 %v727_v25 }
  0x33   : > { %670 = vmatprep.subr.bf16.mxu1 %v778_v3 }
  0x35   : > { %458 = vmatpush1.bf16.msra.mxu0 %v729_v26 }
  0x36   : > { %671 = vmatpush3.bf16.msra.mxu1 %v730_v27  ;;  %459 = vmatprep.subr.bf16.mxu0 %v731_v28 }
  0x37   : > { %672 = vmatprep.subr.bf16.mxu1 %v778_v3 }
  0x39   : > { %460 = vmatpush1.bf16.msra.mxu0 %v733_v29 }
  0x3a   : > { %673 = vmatpush3.bf16.msra.mxu1 %v734_v30 }
  0xaa   : > { %v242_v8 = vpop.xlane.xlu0 %241 }
  0xab   : > { %v244_v9 = vmul.f32 0.0078125, %v242_v8 }
  0xad   : > { %v245_v10 = vsub.f32 %v238_v0, %v244_v9 }
  0xaf   : > { %v246_v11 = vmul.f32 %v245_v10, %v245_v10 }
  0xb1   : > { %247 = vadd.xlane.f32.xlu0 %v246_v11 }
 0x13a   : > { %v248_v31 = vpop.xlane.xlu0 %247 }
 0x13b   : > { %v249_v32 = vmul.f32 0.0078125, %v248_v31 }
 0x13d   : > { %v250_v33 = vadd.f32 1e-05, %v249_v32 }
 0x13f   : > { %735 = vrsqrt.f32 %v250_v33 }
 0x14c   : > { %v736_v34 = vpop.eup %735 }
 0x14d   : > { %v252_v36 = vmul.f32 %v736_v34, %v245_v10 }
 0x14f   : > { %v259_v38 = vmul.f32 %v617_v35, %v252_v36 }
 0x151   : > { %v266_v39 = vadd.f32 %v618_v37, %v259_v38 }
 0x153   : > { %v267_v40 = vpack.c.bf16 %v266_v39, %v266_v39 }
 0x155   : > { %478 = vmatmul.mubr.bf16.vlgmr.msra.gmra.mxu0 %v267_v40  ;;  %675 = vmatmul.mubr.bf16.vlgmr.msra.gmra.mxu1 %v267_v40 }
 0x215   : > { %v479_v50 = vpop.f32.mrf.mxu0  ;;  %v520_v51 = vpop.f32.mrf.mxu1 }
 0x216   : > { %v521_v52 = vadd.f32 %v520_v51, %v313_v47  ;;  %v480_v55 = vadd.f32 %v479_v50, %v305_v48 }
 0x217   : > { %v481_v53 = vpop.f32.mrf.mxu0  ;;  %v676_v54 = vpop.f32.mrf.mxu1 }
 0x218   : > { %v648_v56 = vpack.c.bf16 %v521_v52, %v521_v52  ;;  %v482_v57 = vadd.f32 %v481_v53, %v309_v49 }
 0x219   : > { %v483_v58 = vpop.f32.mrf.mxu0  ;;  %v523_v59 = vpop.f32.mrf.mxu1 }
 0x21a   : > { %540 = vst [vmem:[%s236_s16 + $0x8] sm:$0xf] %v648_v56  ;;  %v647_v60 = vpack.c.bf16 %v482_v57, %v480_v55 }
 0x21b   : > { %v484_v61 = vpop.f32.mrf.mxu0  ;;  %v677_v62 = vpop.f32.mrf.mxu1 }
 0x21c   : > { %539 = vst [vmem:[%s236_s16] sm:$0xff] %v647_v60 }
 0x21d PF: > { %s16_s18 = sadd.s32 1, %s773_s18  }
 0x21e   : > { %p13_p1 = scmp.ge.s32.totalorder %s16_s18, 4  }
 0x220   :  { %15 = sbr.rel (!%p13_p1) target bundleno = 1 (0x1), region = 75 }
 0x225   :  { %562 = vsyncpa [#allocation3], 1 }
 0x226   :  { %564 = vsyncpa [#allocation3 + $0x1], 1 }

// kernel: transformer_forward.8
= control target key start
LH: loop header
LB: loop body
LE: loop exit
PB: predicated region body
PF: predicated region fallthrough
CT: control target
= control target key end

     0   :  { %s1141_s12 = smov 0   ;;  %s1285_s0 = inlined_call_operand.vmem [shape: bf16[2,8,384], index: 0, kind: input, shape index: {}]   ;;  %s1286_s1 = inlined_call_operand.vmem [shape: bf16[128,128], index: 1, kind: input, shape index: {}]   ;;  %s1287_s2 = inlined_call_operand.vmem [shape: f32[1,128], index: 2, kind: input, shape index: {}]   ;;  %s1288_s3 = inlined_call_operand.vmem [shape: f32[2,8,128], index: 3, kind: output, shape index: {}]  }
   0x1 LB: > { %s926_s13 = sadd.s32 4294967295, %s1114_s12   ;;  %p930_p0 = scmp.ge.s32.totalorder %s1114_s12, 1  ;;  %s1114_s12 = sphi %s1141_s12, %s13_s12  }
   0x2   : > { %p137_p1 = scmp.lt.s32.totalorder %s1114_s12, 3 }
   0x4   : > { %p138_p2 = pnand %p930_p0, %p137_p1 }
   0x5   : > { %p160_p3 = scmp.lt.s32.totalorder (!%p138_p2), %s926_s13, 1  ;;  %s1118_s18 = smov (!%p138_p2), 96  }
   0x6   : > { %141 = sbr.rel (%p138_p2) target bundleno = 2676 (0xa74), region = 32  ;;  %s1119_s21 = smov (!%p138_p2), 64  }
   0x7   : > { %s1120_s28 = smov (!%p138_p2), 32  }
   0xb   : > { %v1116_v0 = vmov 0.0   ;;  %vm1117_vm0 = vmmov 0   ;;  %s1290_s13 = smov (!%p160_p3, %s926_s13), 1  ;;  %vm175_vm1 = vcmask 261120   ;;  %vm223_vm2 = vcmask 64512   ;;  %v1086_v43 = vld [vmem:[%s1286_s1 + $0x18] sm:$0xff]  }
   0xc   : > { %987 = vmatprep.subr.bf16.mxu0 %v1116_v0  ;;  %989 = vmatprep.mubr.msk.bf16.mxu0 %vm1117_vm0, %v1116_v0  ;;  %s1067_s14 = smul.u32 12, %s1290_s13  ;;  %vm239_vm3 = vcmask 1043456   ;;  %v1087_v44 = vld [vmem:[%s1286_s1 + $0x10] sm:$0xff]   ;;  %v1084_v48 = vld [vmem:[%s1286_s1 + $0x8] sm:$0xff]   ;;  %v1085_v50 = vld [vmem:[%s1286_s1] sm:$0xff]  }
   0xd   : > { %993 = vmatprep.subr.bf16.mxu1 %v1116_v0  ;;  %995 = vmatprep.mubr.msk.bf16.mxu1 %vm1117_vm0, %v1116_v0 }
   0xe   : > { %s164_s17 = scalar_lea.vmem %s1285_s0, %s1067_s14  ;;  %s932_s14 = sshll.u32 %s1290_s13, 3 }
   0xf   : > { %v170_v1 = vld [vmem:[%s164_s17] sm:$0xff]  ;;  %v171_v16 = vld [vmem:[%s164_s17 + $0x8] sm:$0xf]  ;;  %s168_s17 = scalar_lea.vmem %s1288_s3, %s932_s14 }
  0x10   : > { %v1161_v2 = vcombine.high %v170_v1, %v170_v1  ;;  %v1172_v10 = vcombine.low %v170_v1, %v170_v1  ;;  %v241_v17 = vsel %vm239_vm3, %v171_v16, 0  ;;  %v1188_v35 = vcombine.low %v171_v16, %v171_v16 }
  0x11   : > { %994 = vmatpush3.bf16.msra.mxu1 %v241_v17 }
  0x12   : > { %v180_v3 = vsel %vm175_vm1, %v1161_v2, 0  ;;  %292 = vrot.lane.b32.xlu1 %v1161_v2, %s1118_s18  ;;  %999 = vmatprep.subr.bf16.mxu1 %v1116_v0 }
  0x13   : > { %988 = vmatpush3.bf16.xpose.msra.mxu0 %v180_v3 }
  0x14   : > { %1005 = vmatprep.subr.bf16.mxu0 %v1116_v0 }
  0x16   : > { %290 = vrot.lane.b32.xlu1 %v1172_v10, %s1118_s18 }
  0x1a   : > { %990 = vmatmul.mubr.msk.bf16.vlgmr.msra.gmra.mxu0 %vm175_vm1, %v170_v1 }
  0x1b   : > { %1007 = vmatprep.mubr.msk.bf16.mxu0 %vm1117_vm0, %v1116_v0 }
  0x84   : > { %v293_v20 = vpop.permute.xlu1 %292 }
  0x85   : > { %v298_v22 = vsel %vm175_vm1, %v293_v20, 0  ;;  %v1088_v20 = vld [vmem:[%s1286_s1 + $0x28] sm:$0xff]  }
  0x88   : > { %v291_v24 = vpop.permute.xlu1 %290 }
  0xda   : > { %v216_v4 = vpop.f32.mrf.mxu0 }
  0xdb   : > { %v222_v5 = vmul.f32 0.17677669, %v216_v4 }
  0xdc   : > { %v991_v6 = vpop.f32.mrf.mxu0 }
  0xdd   : > { %v224_v7 = vsel %vm223_vm2, %v222_v5, -inf }
  0xde   : > { %225 = vmax.xlane.f32.xlu0 %v224_v7  ;;  %v219_v8 = vpop.f32.mrf.mxu0 }
  0xe0   : > { %v992_v9 = vpop.f32.mrf.mxu0 }
 0x167   : > { %v226_v11 = vpop.xlane.xlu0 %225 }
 0x168   : > { %v227_v12 = vsub.f32 %v222_v5, %v226_v11 }
 0x16a   : > { %v228_v13 = vmul.f32 1.442695, %v227_v12 }
 0x16c   : > { %1092 = vpow2.f32 %v228_v13 }
 0x179   : > { %v1093_v14 = vpop.eup %1092 }
 0x17a   : > { %v230_v15 = vsel %vm223_vm2, %v1093_v14, 0.0 }
 0x17b   : > { %231 = vadd.xlane.f32.xlu0 %v230_v15 }
 0x204   : > { %v232_v18 = vpop.xlane.xlu0 %231 }
 0x205   : > { %1094 = vrcp.f32 %v232_v18 }
 0x212   : > { %v1095_v19 = vpop.eup %1094 }
 0x213   : > { %v234_v21 = vmul.f32 %v1095_v19, %v1093_v14 }
 0x215   : > { %v235_v23 = vpack.c.bf16 %v234_v21, %v234_v21 }
 0x217   : > { %996 = vmatmul.mubr.msk.bf16.vlgmr.msra.gmra.mxu1 %vm223_vm2, %v235_v23 }
 0x218   : > { %1000 = vmatpush3.bf16.xpose.msra.mxu1 %v298_v22  ;;  %1001 = vmatprep.mubr.msk.bf16.mxu1 %vm1117_vm0, %v1116_v0 }
 0x219   : > { %1011 = vmatprep.subr.bf16.mxu1 %v1116_v0 }
 0x21f   : > { %1002 = vmatmul.mubr.msk.bf16.vlgmr.msra.gmra.mxu1 %vm175_vm1, %v291_v24 }
 0x220   : > { %1015 = vmatprep.mubr.msk.bf16.mxu1 %vm1117_vm0, %v1116_v0  ;;  %1012 = vmatpush3.bf16.msra.mxu1 %v1086_v43 }
 0x221   : > { %1013 = vmatprep.subr.bf16.mxu1 %v1116_v0 }
 0x224   : > { %1014 = vmatpush3.bf16.msra.mxu1 %v1087_v44 }
 0x225   : > { %1027 = vmatprep.subr.bf16.mxu1 %v1116_v0 }
 0x2d7   : > { %v277_v25 = vpop.f32.mrf.mxu1 }
 0x2d8   : > { %v283_v51 = vpack.c.bf16 %v277_v25, %v277_v25 }
 0x2d9   : > { %v997_v26 = vpop.f32.mrf.mxu1 }
 0x2db   : > { %v280_v27 = vpop.f32.mrf.mxu1 }
 0x2dd   : > { %v998_v28 = vpop.f32.mrf.mxu1 }
 0x2df   : > { %v334_v29 = vpop.f32.mrf.mxu1 }
 0x2e0   : > { %v340_v30 = vmul.f32 0.17677669, %v334_v29 }
 0x2e1   : > { %v1003_v31 = vpop.f32.mrf.mxu1 }
 0x2e2   : > { %v341_v32 = vsel %vm223_vm2, %v340_v30, -inf }
 0x2e3   : > { %342 = vmax.xlane.f32.xlu0 %v341_v32  ;;  %v337_v33 = vpop.f32.mrf.mxu1 }
 0x2e5   : > { %v1004_v34 = vpop.f32.mrf.mxu1 }
 0x2f9   : > { %356 = vrot.lane.b32.xlu0 %v1188_v35, %s1118_s18 }
 0x2fd   : > { %521 = vrot.lane.b32.xlu0 %v1161_v2, %s1119_s21 }
 0x301   : > { %519 = vrot.lane.b32.xlu0 %v1172_v10, %s1119_s21 }
 0x36c   : > { %v343_v36 = vpop.xlane.xlu0 %342 }
 0x36d   : > { %v344_v37 = vsub.f32 %v340_v30, %v343_v36 }
 0x36f   : > { %v345_v38 = vmul.f32 1.442695, %v344_v37 }
 0x370   : > { %v357_v41 = vpop.permute.xlu0 %356 }
 0x371   : > { %1096 = vpow2.f32 %v345_v38  ;;  %v362_v42 = vsel %vm239_vm3, %v357_v41, 0 }
 0x372   : > { %1006 = vmatpush3.bf16.msra.mxu0 %v362_v42 }
 0x373   : > { %1019 = vmatprep.subr.bf16.mxu0 %v1116_v0 }
 0x374   : > { %v522_v52 = vpop.permute.xlu0 %521 }
 0x375   : > { %v527_v55 = vsel %vm175_vm1, %v522_v52, 0 }
 0x378   : > { %v520_v60 = vpop.permute.xlu0 %519 }
 0x37e   : > { %v1097_v39 = vpop.eup %1096 }
 0x37f   : > { %v347_v40 = vsel %vm223_vm2, %v1097_v39, 0.0 }
 0x380   : > { %348 = vadd.xlane.f32.xlu1 %v347_v40 }
 0x391   : > { %582 = vrot.lane.b32.xlu1 %v1188_v35, %s1119_s21 }
 0x409   : > { %v349_v45 = vpop.xlane.xlu1 %348 }
 0x40a   : > { %1098 = vrcp.f32 %v349_v45 }
 0x40d   : > { %v583_v13 = vpop.permute.xlu1 %582 }
 0x40e   : > { %v588_v14 = vsel %vm239_vm3, %v583_v13, 0 }
 0x417   : > { %v1099_v46 = vpop.eup %1098 }
 0x418   : > { %v351_v47 = vmul.f32 %v1099_v46, %v1097_v39 }
 0x41a   : > { %v352_v49 = vpack.c.bf16 %v351_v47, %v351_v47 }
 0x41c   : > { %1008 = vmatmul.mubr.msk.bf16.vlgmr.msra.gmra.mxu0 %vm223_vm2, %v352_v49 }
 0x41d   : > { %1020 = vmatpush3.bf16.msra.mxu0 %v1084_v48  ;;  %1023 = vmatprep.mubr.msk.bf16.mxu0 %vm1117_vm0, %v1116_v0 }
 0x41e   : > { %1021 = vmatprep.subr.bf16.mxu0 %v1116_v0 }
 0x421   : > { %1022 = vmatpush3.bf16.msra.mxu0 %v1085_v50 }
 0x422   : > { %1033 = vmatprep.subr.bf16.mxu0 %v1116_v0 }
 0x424   : > { %1024 = vmatmul.mubr.msk.bf16.vlgmr.msra.gmra.mxu0 %vm175_vm1, %v283_v51  ;;  %v1091_v51 = vld [vmem:[%s1286_s1 + $0x30] sm:$0xff]  }
 0x425   : > { %1035 = vmatprep.mubr.msk.bf16.mxu0 %vm1117_vm0, %v1116_v0  ;;  %1034 = vmatpush3.bf16.msra.mxu0 %v588_v14 }
 0x426   : > { %1047 = vmatprep.subr.bf16.mxu0 %v1116_v0 }
 0x4dc   : > { %v398_v53 = vpop.f32.mrf.mxu0 }
 0x4dd   : > { %v404_v54 = vpack.c.bf16 %v398_v53, %v398_v53 }
 0x4de   : > { %v1009_v56 = vpop.f32.mrf.mxu0 }
 0x4df   : > { %1016 = vmatmul.mubr.msk.bf16.vlgmr.msra.gmra.mxu1 %vm175_vm1, %v404_v54 }
 0x4e0   : > { %1028 = vmatpush3.bf16.xpose.msra.mxu1 %v527_v55  ;;  %v401_v57 = vpop.f32.mrf.mxu0  ;;  %1029 = vmatprep.mubr.msk.bf16.mxu1 %vm1117_vm0, %v1116_v0 }
 0x4e1   : > { %1039 = vmatprep.subr.bf16.mxu1 %v1116_v0 }
 0x4e2   : > { %v1010_v58 = vpop.f32.mrf.mxu0 }
 0x4e4   : > { %v1225_v59 = vpop.f32.mrf.mxu0 }
 0x4e6   : > { %v1025_v61 = vpop.f32.mrf.mxu0 }
 0x4e7   : > { %1030 = vmatmul.mubr.msk.bf16.vlgmr.msra.gmra.mxu1 %vm175_vm1, %v520_v60 }
 0x4e8   : > { %v516_v62 = vpop.f32.mrf.mxu0  ;;  %1043 = vmatprep.mubr.msk.bf16.mxu1 %vm1117_vm0, %v1116_v0  ;;  %1040 = vmatpush3.bf16.msra.mxu1 %v1088_v20 }
 0x4e9   : > { %1041 = vmatprep.subr.bf16.mxu1 %v1116_v0 }
 0x4ea   : > { %v1026_v63 = vpop.f32.mrf.mxu0 }
 0x59f   : > { %v1230_v1 = vpop.f32.mrf.mxu1 }
 0x5a0   : > { %v514_v46 = vadd.f32 %v1225_v59, %v1230_v1 }
 0x5a1   : > { %v1017_v3 = vpop.f32.mrf.mxu1 }
 0x5a3   : > { %v461_v4 = vpop.f32.mrf.mxu1 }
 0x5a5   : > { %v1018_v5 = vpop.f32.mrf.mxu1 }
 0x5a7   : > { %v563_v6 = vpop.f32.mrf.mxu1 }
 0x5a8   : > { %v569_v7 = vmul.f32 0.17677669, %v563_v6 }
 0x5a9   : > { %v1031_v8 = vpop.f32.mrf.mxu1 }
 0x5aa   : > { %v570_v9 = vsel %vm223_vm2, %v569_v7, -inf }
 0x5ab   : > { %571 = vmax.xlane.f32.xlu0 %v570_v9  ;;  %v566_v11 = vpop.f32.mrf.mxu1 }
 0x5ad   : > { %v1032_v12 = vpop.f32.mrf.mxu1 }
 0x634   : > { %v572_v15 = vpop.xlane.xlu0 %571 }
 0x635   : > { %v573_v16 = vsub.f32 %v569_v7, %v572_v15 }
 0x637   : > { %v574_v17 = vmul.f32 1.442695, %v573_v16 }
 0x639   : > { %1100 = vpow2.f32 %v574_v17 }
 0x646   : > { %v1101_v18 = vpop.eup %1100 }
 0x647   : > { %v576_v19 = vsel %vm223_vm2, %v1101_v18, 0.0 }
 0x648   : > { %577 = vadd.xlane.f32.xlu1 %v576_v19 }
 0x659   : > { %693 = vrot.lane.b32.xlu1 %v1161_v2, %s1120_s28 }
 0x65d   : > { %691 = vrot.lane.b32.xlu1 %v1172_v10, %s1120_s28  ;;  %v1089_v10 = vld [vmem:[%s1286_s1 + $0x20] sm:$0xff]  }
 0x65e   : > { %1042 = vmatpush3.bf16.msra.mxu1 %v1089_v10 }
 0x65f   : > { %1053 = vmatprep.subr.bf16.mxu1 %v1116_v0 }
 0x6d1   : > { %v578_v21 = vpop.xlane.xlu1 %577 }
 0x6d2   : > { %1102 = vrcp.f32 %v578_v21 }
 0x6d5   : > { %v694_v23 = vpop.permute.xlu1 %693 }
 0x6d6   : > { %v699_v25 = vsel %vm175_vm1, %v694_v23, 0 }
 0x6d9   : > { %v692_v2 = vpop.permute.xlu1 %691 }
 0x6df   : > { %v1103_v22 = vpop.eup %1102 }
 0x6e0   : > { %v580_v24 = vmul.f32 %v1103_v22, %v1101_v18 }
 0x6e2   : > { %v581_v26 = vpack.c.bf16 %v580_v24, %v580_v24 }
 0x6e4   : > { %1036 = vmatmul.mubr.msk.bf16.vlgmr.msra.gmra.mxu0 %vm223_vm2, %v581_v26 }
 0x6e5   : > { %1048 = vmatpush3.bf16.xpose.msra.mxu0 %v699_v25  ;;  %1049 = vmatprep.mubr.msk.bf16.mxu0 %vm1117_vm0, %v1116_v0 }
 0x6e6   : > { %1059 = vmatprep.subr.bf16.mxu0 %v1116_v0 }
 0x6ec   : > { %1050 = vmatmul.mubr.msk.bf16.vlgmr.msra.gmra.mxu0 %vm175_vm1, %v692_v2 }
 0x6ed   : > { %1063 = vmatprep.mubr.msk.bf16.mxu0 %vm1117_vm0, %v1116_v0 }
 0x7a4   : > { %v624_v27 = vpop.f32.mrf.mxu0 }
 0x7a5   : > { %v630_v28 = vpack.c.bf16 %v624_v27, %v624_v27 }
 0x7a6   : > { %v1037_v29 = vpop.f32.mrf.mxu0 }
 0x7a7   : > { %1044 = vmatmul.mubr.msk.bf16.vlgmr.msra.gmra.mxu1 %vm175_vm1, %v630_v28 }
 0x7a8   : > { %v627_v30 = vpop.f32.mrf.mxu0  ;;  %1055 = vmatprep.mubr.msk.bf16.mxu1 %vm1117_vm0, %v1116_v0 }
 0x7aa   : > { %v1038_v31 = vpop.f32.mrf.mxu0 }
 0x7ac   : > { %v735_v32 = vpop.f32.mrf.mxu0 }
 0x7ad   : > { %v741_v33 = vmul.f32 0.17677669, %v735_v32 }
 0x7ae   : > { %v1051_v34 = vpop.f32.mrf.mxu0 }
 0x7af   : > { %v742_v36 = vsel %vm223_vm2, %v741_v33, -inf }
 0x7b0   : > { %743 = vmax.xlane.f32.xlu0 %v742_v36  ;;  %v738_v37 = vpop.f32.mrf.mxu0 }
 0x7b2   : > { %v1052_v38 = vpop.f32.mrf.mxu0 }
 0x7c6   : > { %754 = vrot.lane.b32.xlu0 %v1188_v35, %s1120_s28  ;;  %v1090_v35 = vld [vmem:[%s1286_s1 + $0x38] sm:$0xff]  }
 0x7c7   : > { %1060 = vmatpush3.bf16.msra.mxu0 %v1090_v35 }
 0x7c8   : > { %1061 = vmatprep.subr.bf16.mxu0 %v1116_v0  ;;  %v956_v0 = vld [vmem:[%s1287_s2] ss:$0 sm:$0xff] }
 0x7cb   : > { %1062 = vmatpush3.bf16.msra.mxu0 %v1091_v51 }
 0x839   : > { %v744_v39 = vpop.xlane.xlu0 %743 }
 0x83a   : > { %v745_v40 = vsub.f32 %v741_v33, %v744_v39 }
 0x83c   : > { %v746_v41 = vmul.f32 1.442695, %v745_v40 }
 0x83d   : > { %v755_v44 = vpop.permute.xlu0 %754 }
 0x83e   : > { %1104 = vpow2.f32 %v746_v41  ;;  %v760_v45 = vsel %vm239_vm3, %v755_v44, 0 }
 0x83f   : > { %1054 = vmatpush3.bf16.msra.mxu1 %v760_v45 }
 0x84b   : > { %v1105_v42 = vpop.eup %1104 }
 0x84c   : > { %v748_v43 = vsel %vm223_vm2, %v1105_v42, 0.0 }
 0x84d   : > { %749 = vadd.xlane.f32.xlu1 %v748_v43 }
 0x867   : > { %v684_v47 = vpop.f32.mrf.mxu1 }
 0x868   : > { %v690_v48 = vadd.f32 %v684_v47, %v514_v46 }
 0x869   : > { %v1045_v49 = vpop.f32.mrf.mxu1 }
 0x86b   : > { %v687_v50 = vpop.f32.mrf.mxu1 }
 0x86d   : > { %v1046_v52 = vpop.f32.mrf.mxu1 }
 0x8d6   : > { %v750_v53 = vpop.xlane.xlu1 %749 }
 0x8d7   : > { %1106 = vrcp.f32 %v750_v53 }
 0x8e4   : > { %v1107_v54 = vpop.eup %1106 }
 0x8e5   : > { %v752_v55 = vmul.f32 %v1107_v54, %v1105_v42 }
 0x8e7   : > { %v753_v56 = vpack.c.bf16 %v752_v55, %v752_v55 }
 0x8e9   : > { %1056 = vmatmul.mubr.msk.bf16.vlgmr.msra.gmra.mxu1 %vm223_vm2, %v753_v56 }
 0x9a9   : > { %v796_v57 = vpop.f32.mrf.mxu1 }
 0x9aa   : > { %v802_v58 = vpack.c.bf16 %v796_v57, %v796_v57 }
 0x9ab   : > { %v1057_v59 = vpop.f32.mrf.mxu1 }
 0x9ac   : > { %1064 = vmatmul.mubr.msk.bf16.vlgmr.msra.gmra.mxu0 %vm175_vm1, %v802_v58 }
 0x9ad   : > { %v799_v60 = vpop.f32.mrf.mxu1 }
 0x9af   : > { %v1058_v61 = vpop.f32.mrf.mxu1 }
 0xa6c   : > { %v856_v62 = vpop.f32.mrf.mxu0 }
 0xa6d   : > { %v862_v63 = vadd.f32 %v856_v62, %v690_v48 }
 0xa6e   : > { %v1065_v1 = vpop.f32.mrf.mxu0 }
 0xa6f   : > { %v870_v3 = vadd.f32 %v956_v0, %v862_v63 }
 0xa70   : > { %v859_v4 = vpop.f32.mrf.mxu0 }
 0xa71   : > { %v871_v5 = vmul.f32 2.0, %v870_v3 }
 0xa72   : > { %v1066_v6 = vpop.f32.mrf.mxu0 }
 0xa73   : > { %872 = vst [vmem:[%s168_s17] sm:$0xff] %v871_v5 }
 0xa74 PF: > { %s13_s12 = sadd.s32 1, %s1114_s12  }
 0xa75   : > { %p10_p4 = scmp.ge.s32.totalorder %s13_s12, 4  }
 0xa77   :  { %12 = sbr.rel (!%p10_p4) target bundleno = 1 (0x1), region = 62 }

// kernel: transformer_forward.10
= control target key start
LH: loop header
LB: loop body
LE: loop exit
PB: predicated region body
PF: predicated region fallthrough
CT: control target
= control target key end

     0   :  { %s736_s18 = smov 0   ;;  %s838_s0 = inlined_call_operand.vmem [shape: f32[16,128], index: 0, kind: input, shape index: {}]   ;;  %s839_s1 = inlined_call_operand.vmem [shape: f32[1,128], index: 1, kind: input, shape index: {}]   ;;  %s840_s2 = inlined_call_operand.vmem [shape: f32[1,128], index: 2, kind: input, shape index: {}]   ;;  %s841_s3 = inlined_call_operand.vmem [shape: bf16[128,384], index: 3, kind: input, shape index: {}]   ;;  %s842_s4 = inlined_call_operand.vmem [shape: f32[1,384], index: 4, kind: input, shape index: {}]   ;;  %s843_s5 = inlined_call_operand.vmem [shape: bf16[16,384], index: 5, kind: output, shape index: {}]  }
   0x1 LB: > { %s581_s19 = sadd.s32 4294967295, %s701_s18   ;;  %p585_p0 = scmp.ge.s32.totalorder %s701_s18, 1  ;;  %s701_s18 = sphi %s736_s18, %s15_s18  }
   0x2   : > { %p186_p1 = scmp.lt.s32.totalorder %s701_s18, 3 }
   0x4   : > { %p187_p2 = pnand %p585_p0, %p186_p1 }
   0x5   : > { %p213_p3 = scmp.lt.s32.totalorder (!%p187_p2), %s581_s19, 1 }
   0x6   : > { %190 = sbr.rel (%p187_p2) target bundleno = 523 (0x20b), region = 40 }
   0xb   : > { %s845_s19 = smov (!%p213_p3, %s581_s19), 1  ;;  %v661_v1 = vld [vmem:[%s841_s3 + $0xac] ss:$12 sps:$4 sm:$0xff]   ;;  %v663_v2 = vld [vmem:[%s841_s3 + $0xa8] ss:$12 sps:$4 sm:$0xff]   ;;  %v703_v3 = vmov 0.0   ;;  %v287_v41 = vlaneseq }
   0xc   : > { %s586_s20 = sshll.u32 %s845_s19, 3  ;;  %629 = vmatprep.subr.bf16.mxu1 %v703_v3  ;;  %v664_v4 = vld [vmem:[%s841_s3 + $0xb0] ss:$12 sps:$4 sm:$0xff]   ;;  %v665_v5 = vld [vmem:[%s841_s3 + $0x94] ss:$12 sps:$4 sm:$0xff]   ;;  %430 = vmatprep.subr.bf16.mxu0 %v661_v1  ;;  %v704_v22 = vmov 0  }
   0xd   : > { %s216_s23 = scalar_lea.vmem %s838_s0, %s586_s20  ;;  %431 = vmatpush1.bf16.msra.mxu0 %v663_v2  ;;  %630 = vmatpush3.bf16.msra.mxu1 %v664_v4  ;;  %v667_v6 = vld [vmem:[%s841_s3 + $0x90] ss:$12 sps:$4 sm:$0xff]   ;;  %v668_v7 = vld [vmem:[%s841_s3 + $0x98] ss:$12 sps:$4 sm:$0xff]   ;;  %v672_v14 = vld [vmem:[%s841_s3 + $0x80] ss:$12 sps:$4 sm:$0xff]  }
   0xe   : > { %v223_v0 = vld [vmem:[%s216_s23] sm:$0xff]  ;;  %432 = vmatprep.subr.bf16.mxu0 %v665_v5  ;;  %631 = vmatprep.subr.bf16.mxu1 %v703_v3  ;;  %v669_v12 = vld [vmem:[%s841_s3 + $0x7c] ss:$12 sps:$4 sm:$0xff]   ;;  %v677_v18 = vld [vmem:[%s841_s3 + $0x4c] ss:$12 sps:$4 sm:$0xff]   ;;  %vm705_vm0 = vmmov 0  }
   0xf   : > { %226 = vadd.xlane.f32.xlu0 %v223_v0  ;;  %v671_v13 = vld [vmem:[%s841_s3 + $0x78] ss:$12 sps:$4 sm:$0xff]   ;;  %v675_v16 = vld [vmem:[%s841_s3 + $0x60] ss:$12 sps:$4 sm:$0xff]   ;;  %v676_v17 = vld [vmem:[%s841_s3 + $0x68] ss:$12 sps:$4 sm:$0xff]   ;;  %462 = vmatprep.mubr.bf16.mxu0 %v704_v22 }
  0x10   : > { %v673_v15 = vld [vmem:[%s841_s3 + $0x64] ss:$12 sps:$4 sm:$0xff]   ;;  %v679_v19 = vld [vmem:[%s841_s3 + $0x48] ss:$12 sps:$4 sm:$0xff]   ;;  %645 = vmatprep.mubr.msk.bf16.mxu1 %vm705_vm0, %v703_v3  ;;  %v688_v27 = vld [vmem:[%s841_s3 + $0x20] ss:$12 sps:$4 sm:$0xff]  }
  0x11   : > { %433 = vmatpush1.bf16.msra.mxu0 %v667_v6  ;;  %632 = vmatpush3.bf16.msra.mxu1 %v668_v7  ;;  %v680_v20 = vld [vmem:[%s841_s3 + $0x50] ss:$12 sps:$4 sm:$0xff]   ;;  %v681_v21 = vld [vmem:[%s841_s3 + $0x34] ss:$12 sps:$4 sm:$0xff]   ;;  %v684_v24 = vld [vmem:[%s841_s3 + $0x38] ss:$12 sps:$4 sm:$0xff]  }
  0x12   : > { %633 = vmatprep.subr.bf16.mxu1 %v703_v3  ;;  %434 = vmatprep.subr.bf16.mxu0 %v669_v12  ;;  %v683_v23 = vld [vmem:[%s841_s3 + $0x30] ss:$12 sps:$4 sm:$0xff]   ;;  %v687_v26 = vld [vmem:[%s841_s3 + $0x18] ss:$12 sps:$4 sm:$0xff]   ;;  %v691_v29 = vld [vmem:[%s841_s3] ss:$12 sps:$4 sm:$0xff]  }
  0x13   : > { %v685_v25 = vld [vmem:[%s841_s3 + $0x1c] ss:$12 sps:$4 sm:$0xff]   ;;  %v689_v28 = vld [vmem:[%s841_s3 + $0x4] ss:$12 sps:$4 sm:$0xff]   ;;  %v588_v35 = vld [vmem:[%s839_s1] ss:$0 sm:$0xff] }
  0x14   : > { %v692_v30 = vld [vmem:[%s841_s3 + $0x8] ss:$12 sps:$4 sm:$0xff]   ;;  %v589_v37 = vld [vmem:[%s840_s2] ss:$0 sm:$0xff]  ;;  %v288_v42 = vshrl.u32 %v287_v41, 7  ;;  %s649_s7 = smul.u32 12, %s845_s19 }
  0x15   : > { %435 = vmatpush1.bf16.msra.mxu0 %v671_v13  ;;  %634 = vmatpush3.bf16.msra.mxu1 %v672_v14  ;;  %v285_v44 = vld [vmem:[%s842_s4] sm:$0x7] }
  0x16   : > { %635 = vmatprep.subr.bf16.mxu1 %v703_v3  ;;  %436 = vmatprep.subr.bf16.mxu0 %v673_v15  ;;  %v297_v43 = vsub.s32 2, %v288_v42  ;;  %v289_v45 = vsub.s32 0, %v288_v42  ;;  %v293_v46 = vsub.s32 1, %v288_v42  ;;  %s221_s10 = scalar_lea.vmem %s843_s5, %s649_s7 }
  0x18   : > { %v298_v47 = vrot.slane %v285_v44, %v297_v43  ;;  %v290_v48 = vrot.slane %v285_v44, %v289_v45  ;;  %v294_v49 = vrot.slane %v285_v44, %v293_v46 }
  0x19   : > { %437 = vmatpush1.bf16.msra.mxu0 %v675_v16  ;;  %636 = vmatpush3.bf16.msra.mxu1 %v676_v17 }
  0x1a   : > { %438 = vmatprep.subr.bf16.mxu0 %v677_v18  ;;  %637 = vmatprep.subr.bf16.mxu1 %v703_v3 }
  0x1d   : > { %439 = vmatpush1.bf16.msra.mxu0 %v679_v19  ;;  %638 = vmatpush3.bf16.msra.mxu1 %v680_v20 }
  0x1e   : > { %440 = vmatprep.subr.bf16.mxu0 %v681_v21  ;;  %639 = vmatprep.subr.bf16.mxu1 %v703_v3 }
  0x21   : > { %441 = vmatpush1.bf16.msra.mxu0 %v683_v23  ;;  %640 = vmatpush3.bf16.msra.mxu1 %v684_v24 }
  0x22   : > { %442 = vmatprep.subr.bf16.mxu0 %v685_v25  ;;  %641 = vmatprep.subr.bf16.mxu1 %v703_v3 }
  0x25   : > { %443 = vmatpush1.bf16.msra.mxu0 %v687_v26  ;;  %642 = vmatpush3.bf16.msra.mxu1 %v688_v27 }
  0x26   : > { %444 = vmatprep.subr.bf16.mxu0 %v689_v28  ;;  %643 = vmatprep.subr.bf16.mxu1 %v703_v3 }
  0x29   : > { %445 = vmatpush1.bf16.msra.mxu0 %v691_v29  ;;  %644 = vmatpush3.bf16.msra.mxu1 %v692_v30 }
  0x98   : > { %v227_v8 = vpop.xlane.xlu0 %226 }
  0x99   : > { %v229_v9 = vmul.f32 0.0078125, %v227_v8 }
  0x9b   : > { %v230_v10 = vsub.f32 %v223_v0, %v229_v9 }
  0x9d   : > { %v231_v11 = vmul.f32 %v230_v10, %v230_v10 }
  0x9f   : > { %232 = vadd.xlane.f32.xlu0 %v231_v11 }
 0x128   : > { %v233_v31 = vpop.xlane.xlu0 %232 }
 0x129   : > { %v234_v32 = vmul.f32 0.0078125, %v233_v31 }
 0x12b   : > { %v235_v33 = vadd.f32 1e-05, %v234_v32 }
 0x12d   : > { %693 = vrsqrt.f32 %v235_v33 }
 0x13a   : > { %v694_v34 = vpop.eup %693 }
 0x13b   : > { %v237_v36 = vmul.f32 %v694_v34, %v230_v10 }
 0x13d   : > { %v244_v38 = vmul.f32 %v588_v35, %v237_v36 }
 0x13f   : > { %v251_v39 = vadd.f32 %v589_v37, %v244_v38 }
 0x141   : > { %v252_v40 = vpack.c.bf16 %v251_v39, %v251_v39 }
 0x143   : > { %463 = vmatmul.mubr.bf16.vlgmr.msra.gmra.mxu0 %v252_v40  ;;  %646 = vmatmul.mubr.bf16.vlgmr.msra.gmra.mxu1 %v252_v40 }
 0x203   : > { %v464_v50 = vpop.f32.mrf.mxu0  ;;  %v505_v51 = vpop.f32.mrf.mxu1 }
 0x204   : > { %v506_v52 = vadd.f32 %v505_v51, %v298_v47  ;;  %v465_v55 = vadd.f32 %v464_v50, %v290_v48 }
 0x205   : > { %v466_v53 = vpop.f32.mrf.mxu0  ;;  %v647_v54 = vpop.f32.mrf.mxu1 }
 0x206   : > { %v619_v56 = vpack.c.bf16 %v506_v52, %v506_v52  ;;  %v467_v57 = vadd.f32 %v466_v53, %v294_v49 }
 0x207   : > { %v468_v58 = vpop.f32.mrf.mxu0  ;;  %v508_v59 = vpop.f32.mrf.mxu1 }
 0x208   : > { %525 = vst [vmem:[%s221_s10 + $0x8] sm:$0xf] %v619_v56  ;;  %v618_v60 = vpack.c.bf16 %v467_v57, %v465_v55 }
 0x209   : > { %v469_v61 = vpop.f32.mrf.mxu0  ;;  %v648_v62 = vpop.f32.mrf.mxu1 }
 0x20a   : > { %524 = vst [vmem:[%s221_s10] sm:$0xff] %v618_v60 }
 0x20b PF: > { %s15_s18 = sadd.s32 1, %s701_s18  }
 0x20c   : > { %p12_p4 = scmp.ge.s32.totalorder %s15_s18, 4  }
 0x20e   :  { %14 = sbr.rel (!%p12_p4) target bundleno = 1 (0x1), region = 70 }

// kernel: transformer_forward.13
= control target key start
LH: loop header
LB: loop body
LE: loop exit
PB: predicated region body
PF: predicated region fallthrough
CT: control target
= control target key end

     0   :  { %8 = vsyncpa [#allocation3], 0  ;;  %s498_s0 = inlined_call_operand.vmem [shape: f32[16,128], index: 0, kind: input, shape index: {}]   ;;  %s499_s1 = inlined_call_operand.vmem [shape: f32[1,128], index: 1, kind: input, shape index: {}]   ;;  %s500_s2 = inlined_call_operand.vmem [shape: f32[1,128], index: 2, kind: input, shape index: {}]   ;;  %s501_s3 = inlined_call_operand.hbm [shape: f32[16,128], index: 3, kind: output, shape index: {}]  }
   0x1   :  { %10 = vsyncpa [#allocation3 + $0x1], 0  ;;  %s405_s12 = smov 0   ;;  %s407_s13 = smov 0  }
   0x2   :  { %s409_s14 = smov 0   ;;  %s411_s15 = smov 0  }
   0x3 LB: > { %s426_s16 = sadd.s32 4294967295, %s382_s15   ;;  %s269_s17 = sadd.s32 4294967294, %s382_s15   ;;  %s382_s15 = sphi %s411_s15, %s507_s15   ;;  %s378_s14 = sphi %s409_s14, %s506_s14   ;;  %s374_s13 = sphi %s407_s13, %s505_s13   ;;  %s370_s12 = sphi %s405_s12, %s504_s12  }
   0x4   : > { %s430_s18 = sadd.s32 1, %s382_s15   ;;  %s91_s19 = sadd.s32 1, %s378_s14 }
   0x5   : > { %s88_s20 = ssub.s32 %s382_s15, %s430_s18  ;;  %p101_p0 = scmp.ne.s32.totalorder %s378_s14, %s374_s13 }
   0x6   : > { %p89_p1 = scmp.eq.s32.totalorder %s88_s20, 0  ;;  %p102_p2 = scmp.eq.s32.totalorder %s426_s16, 1 }
   0x7   : > { %p107_p3 = scmp.ne.s32.totalorder %s374_s13, %s370_s12  ;;  %p108_p4 = scmp.eq.s32.totalorder %s269_s17, 1 }
   0x8   : > { %s441_s21 = scalar_select %p89_p1, %s378_s14, %s91_s19  }
   0x9   : > { %p443_p5 = por %p102_p2, %p101_p0  ;;  %p447_p6 = por %p108_p4, %p107_p3 }
   0xa   : > { %p272_p7 = scmp.ge.s32.totalorder %s382_s15, 1  ;;  %p139_p8 = scmp.lt.s32.totalorder %s382_s15, 3 }
   0xc   : > { %p140_p9 = pnand %p272_p7, %p139_p8 }
   0xd   : > { %p162_p10 = scmp.lt.s32.totalorder (!%p140_p9), %s426_s16, 1  ;;  %s159_s29 = sand.u32 (!%p140_p9), 1, %s374_s13  }
   0xe   : > { %143 = sbr.rel (%p140_p9) target bundleno = 343 (0x157), region = 32  ;;  %s273_s30 = sshll.u32 (!%p140_p9), %s159_s29, 3 }
   0xf   : > { %s278_s8 = sshll.u32 (!%p140_p9), %s426_s16, 7  ;;  %s161_s9 = scalar_lea.vmem (!%p140_p9), [#allocation2], %s273_s30 }
  0x10   : > { %s210_s10 = sshll.u32 (!%p140_p9), %s161_s9, 4  ;;  %s208_s19 = scalar_lea.hbm (!%p140_p9), %s501_s3, %s278_s8  ;;  %s211_s10 = int_to_ptr.vmem [resolvable:$true] %s210_s10 }
  0x11   : > { %s197_s20 = scalar_lea.sflag (!%p140_p9), [#allocation3], %s159_s29 }
  0x13   : > { %s163_s24 = scalar_select %p162_p10, %s426_s16, 1  ;;  %v275_v9 = vld [vmem:[%s499_s1] ss:$0 sm:$0xff] }
  0x14   : > { %v276_v11 = vld [vmem:[%s500_s2] ss:$0 sm:$0xff] }
  0x15   : > { %s274_s25 = sshll.u32 %s163_s24, 3  ;;  %s322_s24 = scalar_lea.vmem %s211_s10, 128 }
  0x16   : > { %s165_s28 = scalar_lea.vmem %s498_s0, %s274_s25  ;;  %p323_p11 = scmp.ne.s32.totalorder %s211_s10, %s322_s24 }
  0x17   : > { %v166_v0 = vld [vmem:[%s165_s28] sm:$0xff]  ;;  %s384_s25 = smov [#allocation2]  }
  0x18   : > { %169 = vadd.xlane.f32.xlu0 %v166_v0  ;;  %p324_p12 = pnand %p323_p11, %p443_p5  ;;  %s326_s26 = sshll.u32 %s384_s25, 4  ;;  %s327_s26 = int_to_ptr.vmem [resolvable:$false] %s326_s26 }
  0x19   : > { %s328_s16 = scalar_lea.vmem %s327_s26, 256  ;;  %p329_p0 = scmp.lt.s32.totalorder %s211_s10, %s327_s26 }
  0x1a   : > { %p325_p13 = pneg %p324_p12  ;;  %p330_p1 = scmp.lt.s32.totalorder %s328_s16, %s322_s24 }
  0x1c   : > { %p331_p2 = por %p330_p1, %p329_p0 }
  0x1e   : > { %p332_p3 = pnand %p331_p2, %p325_p13 }
  0xa1   : > { %v170_v1 = vpop.xlane.xlu0 %169 }
  0xa2   : > { %v172_v2 = vmul.f32 0.0078125, %v170_v1 }
  0xa4   : > { %v173_v3 = vsub.f32 %v166_v0, %v172_v2 }
  0xa6   : > { %v174_v4 = vmul.f32 %v173_v3, %v173_v3 }
  0xa8   : > { %175 = vadd.xlane.f32.xlu0 %v174_v4 }
 0x131   : > { %v176_v5 = vpop.xlane.xlu0 %175 }
 0x132   : > { %v177_v6 = vmul.f32 0.0078125, %v176_v5 }
 0x134   : > { %v178_v7 = vadd.f32 1e-05, %v177_v6 }
 0x136   : > { %320 = vrsqrt.f32 %v178_v7 }
 0x143   : > { %v321_v8 = vpop.eup %320 }
 0x144   : > { %v180_v10 = vmul.f32 %v321_v8, %v173_v3 }
 0x146   : > { %v187_v12 = vmul.f32 %v275_v9, %v180_v10 }
 0x148   : > { %v194_v13 = vadd.f32 %v276_v11, %v187_v12 }
 0x14a   : > { %195 = vst [vmem:[%s161_s9] sm:$0xff] %v194_v13 }
 0x14b   : > { %335 = shalt.err (!%p332_p3)
}
 0x14c   : > { %s336_s27 = scalar_lea.hbm %s208_s19, 128  ;;  %s340_s30 = scalar_lea.hbm %s501_s3, 256 }
 0x14d   : > { %p337_p4 = scmp.ne.s32.totalorder %s208_s19, %s336_s27  ;;  %p341_p9 = scmp.lt.s32.totalorder %s208_s19, %s501_s3 }
 0x14e   : > { %p342_p10 = scmp.lt.s32.totalorder %s340_s30, %s336_s27 }
 0x14f   : > { %p338_p7 = pnand %p337_p4, %p443_p5 }
 0x150   : > { %p343_p11 = por %p342_p10, %p341_p9 }
 0x151   : > { %p339_p8 = pneg %p338_p7 }
 0x153   : > { %p344_p12 = pnand %p343_p11, %p339_p8 }
 0x155   : > { %347 = shalt.err (!%p344_p12)
}
 0x156   : > { %281 = dma.vmem_to_hbm [thread:$0]  (%p443_p5), %s211_s10, 128, %s208_s19, %s197_s20  }
 0x157 PF: > { %p287_p13 = scmp.ge.s32.totalorder %s382_s15, 2  ;;  %s222_s6 = sand.u32 1, %s370_s12  }
 0x158   : > { %s223_s7 = scalar_lea.sflag [#allocation3], %s222_s6 }
 0x159   : > { %p284_p0 = pnand %p287_p13, %p447_p6 }
 0x15b   : > { %p285_p1 = pneg %p284_p0 }
 0x15d   : > { %365 = dma.done.wait (%p285_p1), %s223_s7, 128  }
 0x15e   : > { %367 = vsyncadd (%p285_p1), %s223_s7, 4294967168  ;;  %p13_p2 = scmp.ge.s32.totalorder %s430_s18, 4   ;;  %s504_s12 = smov %s374_s13 }
 0x15f   : > { %s505_s13 = smov %s378_s14  ;;  %s506_s14 = smov %s441_s21 }
 0x160   : > { %s507_s15 = smov %s430_s18  ;;  %15 = sbr.rel (!%p13_p2) target bundleno = 3 (0x3), region = 67 }
 0x165   :  { %228 = vsyncpa [#allocation3], 1 }
 0x166   :  { %230 = vsyncpa [#allocation3 + $0x1], 1 }

// kernel: transformer_forward.9
= control target key start
LH: loop header
LB: loop body
LE: loop exit
PB: predicated region body
PF: predicated region fallthrough
CT: control target
= control target key end

     0   :  { %12 = vsyncpa [#allocation3], 0  ;;  %s3869_s0 = inlined_call_operand.vmem [shape: f32[16,128], index: 0, kind: input, shape index: {}]   ;;  %s3870_s1 = inlined_call_operand.vmem [shape: f32[1,128], index: 1, kind: input, shape index: {}]   ;;  %s3871_s2 = inlined_call_operand.vmem [shape: f32[1,128], index: 2, kind: input, shape index: {}]   ;;  %s3872_s3 = inlined_call_operand.hbm [shape: bf16[128,2048], index: 3, kind: input, shape index: {}]   ;;  %s3873_s4 = inlined_call_operand.vmem [shape: f32[1,2048], index: 4, kind: input, shape index: {}]   ;;  %s3874_s5 = inlined_call_operand.hbm [shape: bf16[2048,128], index: 5, kind: input, shape index: {}]   ;;  %s3875_s6 = inlined_call_operand.vmem [shape: f32[1,128], index: 6, kind: input, shape index: {}]   ;;  %s3876_s7 = inlined_call_operand.vmem [shape: f32[16,128], index: 7, kind: output, shape index: {}]  }
   0x1   :  { %13 = vsyncpa [#allocation5], 0  ;;  %s3700_s24 = smov 0  }
   0x2 LB: > { %s3706_s25 = sadd.s32 4294967295, %s3652_s24   ;;  %p2977_p0 = scmp.ge.s32.totalorder %s3652_s24, 1  ;;  %s3652_s24 = sphi %s3700_s24, %s19_s24  }
   0x3   : > { %p202_p1 = scmp.lt.s32.totalorder %s3652_s24, 3  ;;  %s3654_s26 = smov [#allocation2]  }
   0x4   : > { %s220_s27 = sshll.u32 %s3654_s26, 4  ;;  %p3438_p3 = scmp.eq.s32.totalorder %s3706_s25, 0  ;;  %s221_s27 = int_to_ptr.vmem [resolvable:$true] %s220_s27 }
   0x5   : > { %p3710_p2 = pnand %p2977_p0, %p202_p1  ;;  %s3655_s29 = smov [#allocation4]  }
   0x6   : > { %s236_s30 = sshll.u32 %s3655_s29, 4  ;;  %s3597_s9 = scalar_lea.vmem %s221_s27, 16384  ;;  %s237_s30 = int_to_ptr.vmem [resolvable:$true] %s236_s30 }
   0x7   : > { %p3431_p4 = pneg %p3710_p2  ;;  %p3598_p7 = scmp.ne.s32.totalorder %s221_s27, %s3597_s9 }
   0x8   : > { %p3605_p10 = scmp.lt.s32.totalorder %s221_s27, %s221_s27  ;;  %p3606_p11 = scmp.lt.s32.totalorder %s3597_s9, %s3597_s9 }
   0x9   : > { %p3719_p5 = pnand %p3438_p3, %p3431_p4 }
   0xa   : > { %p3607_p12 = por %p3606_p11, %p3605_p10 }
   0xb   : > { %p3588_p6 = pneg %p3719_p5 }
   0xd   : > { %p3600_p8 = pnand %p3598_p7, %p3588_p6 }
   0xf   : > { %p3601_p9 = pneg %p3600_p8 }
  0x11   : > { %p3608_p13 = pnand %p3607_p12, %p3601_p9 }
  0x13   : > { %3611 = shalt.err (!%p3608_p13)
}
  0x14   : > { %s3656_s10 = smov 1024   ;;  %s3657_s11 = smov 64  }
  0x15   : > { %3434 = dma.hbm_to_vmem [thread:$0]  (!%p3719_p5), %s3872_s3, 16384, %s221_s27, [#allocation3], %s3656_s10, %s3656_s10, %s3657_s11  }
  0x16   : > { %s3623_s14 = scalar_lea.vmem %s237_s30, 16384  ;;  %p3631_p7 = scmp.lt.s32.totalorder %s237_s30, %s237_s30 }
  0x17   : > { %p3624_p0 = scmp.ne.s32.totalorder %s237_s30, %s3623_s14  ;;  %p3632_p8 = scmp.lt.s32.totalorder %s3623_s14, %s3623_s14 }
  0x19   : > { %p3626_p1 = pnand %p3624_p0, %p3588_p6  ;;  %p3633_p10 = por %p3632_p8, %p3631_p7 }
  0x1b   : > { %p3627_p4 = pneg %p3626_p1 }
  0x1d   : > { %p3634_p9 = pnand %p3633_p10, %p3627_p4 }
  0x1f   : > { %3637 = shalt.err (!%p3634_p9)
}
  0x20   : > { %s3658_s15 = smov 4   ;;  %262 = sbr.rel (%p3710_p2) target bundleno = 856 (0x358), region = 48 }
  0x21   : > { %3437 = dma.hbm_to_vmem [thread:$0]  (!%p3719_p5), %s3874_s5, 16384, %s237_s30, [#allocation5], %s3657_s11, %s3657_s11, %s3658_s15  }
  0x25   : > { %3643 = dma.done.wait (%p3438_p3), [#allocation3], 16384  }
  0x26   : > { %3645 = vsyncadd (%p3438_p3), [#allocation3], 4294950912 }
  0x27   : > { %3647 = dma.done.wait (%p3438_p3), [#allocation5], 16384  }
  0x28   : > { %3649 = vsyncadd (%p3438_p3), [#allocation5], 4294950912  ;;  %p296_p6 = scmp.lt.s32.totalorder %s3706_s25, 1  ;;  %v447_v1 = vld [vmem:[#allocation2 + $0x380] sm:$0xff]  ;;  %v448_v3 = vld [vmem:[#allocation2 + $0x388] sm:$0xff] }
  0x29   : > { %v455_v2 = vld [vmem:[#allocation2 + $0x3c0] sm:$0xff]  ;;  %v456_v5 = vld [vmem:[#allocation2 + $0x3c8] sm:$0xff] }
  0x2a   : > { %s3880_s25 = smov (!%p296_p6, %s3706_s25), 1  ;;  %v3101_v4 = vcombine.high %v447_v1, %v455_v2  ;;  %v3100_v6 = vcombine.low %v447_v1, %v455_v2  ;;  %v431_v7 = vld [vmem:[#allocation2 + $0x300] sm:$0xff]  ;;  %v3103_v9 = vcombine.high %v448_v3, %v456_v5  ;;  %v3102_v10 = vcombine.low %v448_v3, %v456_v5  ;;  %v432_v12 = vld [vmem:[#allocation2 + $0x308] sm:$0xff]  ;;  %v449_v5 = vld [vmem:[#allocation2 + $0x390] sm:$0xff] }
  0x2b   : > { %s2984_s18 = sshll.u32 %s3880_s25, 3  ;;  %v439_v8 = vld [vmem:[#allocation2 + $0x340] sm:$0xff]  ;;  %v440_v13 = vld [vmem:[#allocation2 + $0x348] sm:$0xff] }
  0x2c   : > { %s299_s21 = scalar_lea.vmem %s3869_s0, %s2984_s18  ;;  %v3085_v11 = vcombine.high %v431_v7, %v439_v8  ;;  %1187 = vmatprep.subr.bf16.mxu0 %v3101_v4  ;;  %v3087_v14 = vcombine.high %v432_v12, %v440_v13  ;;  %1228 = vmatprep.subr.bf16.mxu1 %v3103_v9  ;;  %v3084_v15 = vcombine.low %v431_v7, %v439_v8  ;;  %v415_v21 = vld [vmem:[#allocation2 + $0x280] sm:$0xff]  ;;  %v416_v23 = vld [vmem:[#allocation2 + $0x288] sm:$0xff]  ;;  %v450_v7 = vld [vmem:[#allocation2 + $0x398] sm:$0xff]  ;;  %s303_s13 = scalar_lea.vmem %s3876_s7, %s2984_s18 }
  0x2d   : > { %v305_v0 = vld [vmem:[%s299_s21] sm:$0xff]  ;;  %1188 = vmatpush1.bf16.msra.mxu0 %v3100_v6  ;;  %1229 = vmatpush1.bf16.msra.mxu1 %v3102_v10  ;;  %v3086_v16 = vcombine.low %v432_v12, %v440_v13  ;;  %v424_v25 = vld [vmem:[#allocation2 + $0x2c8] sm:$0xff]  ;;  %v457_v6 = vld [vmem:[#allocation2 + $0x3d0] sm:$0xff]  ;;  %v3659_v13 = vmov 0  }
  0x2e   : > { %308 = vadd.xlane.f32.xlu0 %v305_v0  ;;  %1189 = vmatprep.subr.bf16.mxu0 %v3085_v11  ;;  %v423_v22 = vld [vmem:[#allocation2 + $0x2c0] sm:$0xff]  ;;  %v3071_v26 = vcombine.high %v416_v23, %v424_v25  ;;  %v3070_v28 = vcombine.low %v416_v23, %v424_v25  ;;  %v400_v31 = vld [vmem:[#allocation2 + $0x208] sm:$0xff]  ;;  %v3105_v8 = vcombine.high %v449_v5, %v457_v6  ;;  %v458_v9 = vld [vmem:[#allocation2 + $0x3d8] sm:$0xff] }
  0x2f   : > { %1230 = vmatprep.subr.bf16.mxu1 %v3087_v14  ;;  %v3069_v24 = vcombine.high %v415_v21, %v423_v22  ;;  %v3068_v27 = vcombine.low %v415_v21, %v423_v22  ;;  %v399_v29 = vld [vmem:[#allocation2 + $0x200] sm:$0xff]  ;;  %v408_v33 = vld [vmem:[#allocation2 + $0x248] sm:$0xff]  ;;  %v3104_v10 = vcombine.low %v449_v5, %v457_v6  ;;  %v3106_v11 = vcombine.low %v450_v7, %v458_v9  ;;  %v433_v23 = vld [vmem:[#allocation2 + $0x310] sm:$0xff] }
  0x30   : > { %v407_v30 = vld [vmem:[#allocation2 + $0x240] sm:$0xff]  ;;  %v3055_v34 = vcombine.high %v400_v31, %v408_v33  ;;  %v3054_v36 = vcombine.low %v400_v31, %v408_v33  ;;  %v384_v39 = vld [vmem:[#allocation2 + $0x188] sm:$0xff]  ;;  %v3107_v12 = vcombine.high %v450_v7, %v458_v9  ;;  %1219 = vmatprep.mubr.bf16.mxu0 %v3659_v13  ;;  %1260 = vmatprep.mubr.bf16.mxu1 %v3659_v13  ;;  %v434_v25 = vld [vmem:[#allocation2 + $0x318] sm:$0xff] }
  0x31   : > { %1190 = vmatpush1.bf16.msra.mxu0 %v3084_v15  ;;  %1231 = vmatpush1.bf16.msra.mxu1 %v3086_v16  ;;  %v3053_v32 = vcombine.high %v399_v29, %v407_v30  ;;  %v3052_v35 = vcombine.low %v399_v29, %v407_v30  ;;  %v383_v37 = vld [vmem:[#allocation2 + $0x180] sm:$0xff]  ;;  %v392_v41 = vld [vmem:[#allocation2 + $0x1c8] sm:$0xff]  ;;  %v417_v31 = vld [vmem:[#allocation2 + $0x290] sm:$0xff] }
  0x32   : > { %1191 = vmatprep.subr.bf16.mxu0 %v3069_v24  ;;  %1232 = vmatprep.subr.bf16.mxu1 %v3071_v26  ;;  %v391_v38 = vld [vmem:[#allocation2 + $0x1c0] sm:$0xff]  ;;  %v3039_v42 = vcombine.high %v384_v39, %v392_v41  ;;  %v3038_v44 = vcombine.low %v384_v39, %v392_v41  ;;  %v368_v47 = vld [vmem:[#allocation2 + $0x108] sm:$0xff]  ;;  %v441_v24 = vld [vmem:[#allocation2 + $0x350] sm:$0xff] }
  0x33   : > { %v3037_v40 = vcombine.high %v383_v37, %v391_v38  ;;  %v3036_v43 = vcombine.low %v383_v37, %v391_v38  ;;  %v367_v45 = vld [vmem:[#allocation2 + $0x100] sm:$0xff]  ;;  %v376_v49 = vld [vmem:[#allocation2 + $0x148] sm:$0xff]  ;;  %v442_v26 = vld [vmem:[#allocation2 + $0x358] sm:$0xff]  ;;  %v3089_v29 = vcombine.high %v433_v23, %v441_v24 }
  0x34   : > { %v375_v46 = vld [vmem:[#allocation2 + $0x140] sm:$0xff]  ;;  %v3023_v50 = vcombine.high %v368_v47, %v376_v49  ;;  %v3022_v52 = vcombine.low %v368_v47, %v376_v49  ;;  %v352_v55 = vld [vmem:[#allocation2 + $0x88] sm:$0xff]  ;;  %v3091_v30 = vcombine.high %v434_v25, %v442_v26  ;;  %v418_v33 = vld [vmem:[#allocation2 + $0x298] sm:$0xff] }
  0x35   : > { %1192 = vmatpush1.bf16.msra.mxu0 %v3068_v27  ;;  %1233 = vmatpush1.bf16.msra.mxu1 %v3070_v28  ;;  %v3021_v48 = vcombine.high %v367_v45, %v375_v46  ;;  %v3020_v51 = vcombine.low %v367_v45, %v375_v46  ;;  %v351_v53 = vld [vmem:[#allocation2 + $0x80] sm:$0xff]  ;;  %v360_v57 = vld [vmem:[#allocation2 + $0xc8] sm:$0xff]  ;;  %v401_v38 = vld [vmem:[#allocation2 + $0x210] sm:$0xff] }
  0x36   : > { %1193 = vmatprep.subr.bf16.mxu0 %v3053_v32  ;;  %1234 = vmatprep.subr.bf16.mxu1 %v3055_v34  ;;  %v359_v54 = vld [vmem:[#allocation2 + $0xc0] sm:$0xff]  ;;  %v3007_v58 = vcombine.high %v352_v55, %v360_v57  ;;  %v3006_v60 = vcombine.low %v352_v55, %v360_v57  ;;  %v336_v63 = vld [vmem:[#allocation2 + $0x8] sm:$0xff]  ;;  %v425_v32 = vld [vmem:[#allocation2 + $0x2d0] sm:$0xff] }
  0x37   : > { %v3005_v56 = vcombine.high %v351_v53, %v359_v54  ;;  %v3004_v59 = vcombine.low %v351_v53, %v359_v54  ;;  %v335_v61 = vld [vmem:[#allocation2] sm:$0xff]  ;;  %v344_v1 = vld [vmem:[#allocation2 + $0x48] sm:$0xff]  ;;  %v426_v34 = vld [vmem:[#allocation2 + $0x2d8] sm:$0xff] }
  0x38   : > { %v343_v62 = vld [vmem:[#allocation2 + $0x40] sm:$0xff]  ;;  %v2991_v2 = vcombine.high %v336_v63, %v344_v1  ;;  %v2990_v4 = vcombine.low %v336_v63, %v344_v1  ;;  %v3075_v37 = vcombine.high %v418_v33, %v426_v34  ;;  %v409_v39 = vld [vmem:[#allocation2 + $0x250] sm:$0xff]  ;;  %v410_v41 = vld [vmem:[#allocation2 + $0x258] sm:$0xff] }
  0x39   : > { %1194 = vmatpush1.bf16.msra.mxu0 %v3052_v35  ;;  %1235 = vmatpush1.bf16.msra.mxu1 %v3054_v36  ;;  %v2988_v3 = vcombine.low %v335_v61, %v343_v62  ;;  %v2987_v21 = vld [vmem:[%s3871_s2] ss:$0 sm:$0xff]  ;;  %v3090_v35 = vcombine.low %v434_v25, %v442_v26  ;;  %v3073_v36 = vcombine.high %v417_v31, %v425_v32  ;;  %v385_v46 = vld [vmem:[#allocation2 + $0x190] sm:$0xff]  ;;  %v394_v49 = vld [vmem:[#allocation2 + $0x1d8] sm:$0xff] }
  0x3a   : > { %1195 = vmatprep.subr.bf16.mxu0 %v3037_v40  ;;  %1236 = vmatprep.subr.bf16.mxu1 %v3039_v42  ;;  %v402_v40 = vld [vmem:[#allocation2 + $0x218] sm:$0xff]  ;;  %v3072_v42 = vcombine.low %v417_v31, %v425_v32  ;;  %v393_v47 = vld [vmem:[#allocation2 + $0x1d0] sm:$0xff]  ;;  %v443_v25 = vld [vmem:[#allocation2 + $0x360] sm:$0xff] }
  0x3b   : > { %v3059_v45 = vcombine.high %v402_v40, %v410_v41  ;;  %v369_v54 = vld [vmem:[#allocation2 + $0x110] sm:$0xff]  ;;  %v378_v57 = vld [vmem:[#allocation2 + $0x158] sm:$0xff]  ;;  %v436_v26 = vld [vmem:[#allocation2 + $0x328] sm:$0xff] }
  0x3c   : > { %v377_v55 = vld [vmem:[#allocation2 + $0x150] sm:$0xff]  ;;  %v362_v1 = vld [vmem:[#allocation2 + $0xd8] sm:$0xff] }
  0x3d   : > { %1196 = vmatpush1.bf16.msra.mxu0 %v3036_v43  ;;  %1237 = vmatpush1.bf16.msra.mxu1 %v3038_v44  ;;  %v3074_v43 = vcombine.low %v418_v33, %v426_v34  ;;  %v3057_v44 = vcombine.high %v401_v38, %v409_v39  ;;  %v361_v63 = vld [vmem:[#allocation2 + $0xd0] sm:$0xff]  ;;  %v346_v9 = vld [vmem:[#allocation2 + $0x58] sm:$0xff]  ;;  %v419_v33 = vld [vmem:[#allocation2 + $0x2a0] sm:$0xff] }
  0x3e   : > { %1197 = vmatprep.subr.bf16.mxu0 %v3021_v48  ;;  %1238 = vmatprep.subr.bf16.mxu1 %v3023_v50  ;;  %v386_v48 = vld [vmem:[#allocation2 + $0x198] sm:$0xff]  ;;  %v3056_v50 = vcombine.low %v401_v38, %v409_v39  ;;  %v337_v6 = vld [vmem:[#allocation2 + $0x10] sm:$0xff]  ;;  %v427_v34 = vld [vmem:[#allocation2 + $0x2e0] sm:$0xff] }
  0x3f   : > { %v3043_v53 = vcombine.high %v386_v48, %v394_v49  ;;  %v345_v7 = vld [vmem:[#allocation2 + $0x50] sm:$0xff]  ;;  %v3077_v38 = vcombine.high %v419_v33, %v427_v34 }
  0x41   : > { %1198 = vmatpush1.bf16.msra.mxu0 %v3020_v51  ;;  %1239 = vmatpush1.bf16.msra.mxu1 %v3022_v52  ;;  %v3058_v51 = vcombine.low %v402_v40, %v410_v41  ;;  %v3041_v52 = vcombine.high %v385_v46, %v393_v47  ;;  %v403_v40 = vld [vmem:[#allocation2 + $0x220] sm:$0xff] }
  0x42   : > { %1199 = vmatprep.subr.bf16.mxu0 %v3005_v56  ;;  %1240 = vmatprep.subr.bf16.mxu1 %v3007_v58  ;;  %v370_v56 = vld [vmem:[#allocation2 + $0x118] sm:$0xff]  ;;  %v3040_v58 = vcombine.low %v385_v46, %v393_v47  ;;  %v411_v41 = vld [vmem:[#allocation2 + $0x260] sm:$0xff] }
  0x43   : > { %v3061_v46 = vcombine.high %v403_v40, %v411_v41 }
  0x45   : > { %1200 = vmatpush1.bf16.msra.mxu0 %v3004_v59  ;;  %1241 = vmatpush1.bf16.msra.mxu1 %v3006_v60  ;;  %v3042_v59 = vcombine.low %v386_v48, %v394_v49  ;;  %v3025_v60 = vcombine.high %v369_v54, %v377_v55  ;;  %v387_v48 = vld [vmem:[#allocation2 + $0x1a0] sm:$0xff] }
  0x46   : > { %1242 = vmatprep.subr.bf16.mxu1 %v2991_v2  ;;  %v3024_v2 = vcombine.low %v369_v54, %v377_v55  ;;  %v395_v49 = vld [vmem:[#allocation2 + $0x1e0] sm:$0xff] }
  0x47   : > { %v3045_v54 = vcombine.high %v387_v48, %v395_v49 }
  0x49   : > { %1243 = vmatpush1.bf16.msra.mxu1 %v2990_v4 }
  0x4a   : > { %1310 = vmatprep.subr.bf16.mxu1 %v3107_v12  ;;  %v2993_v12 = vcombine.high %v337_v6, %v345_v7 }
  0xb7   : > { %v309_v17 = vpop.xlane.xlu0 %308 }
  0xb8   : > { %v311_v18 = vmul.f32 0.0078125, %v309_v17 }
  0xba   : > { %v3761_v19 = vsub.f32 %v305_v0, %v311_v18  ;;  %v2989_v0 = vcombine.high %v335_v61, %v343_v62  ;;  %v2986_v18 = vld [vmem:[%s3870_s1] ss:$0 sm:$0xff]  ;;  %v3027_v61 = vcombine.high %v370_v56, %v378_v57  ;;  %v353_v62 = vld [vmem:[#allocation2 + $0x90] sm:$0xff] }
  0xbb   : > { %v3009_v4 = vcombine.high %v353_v62, %v361_v63 }
  0xbc   : > { %v313_v20 = vmul.f32 %v3761_v19, %v3761_v19  ;;  %1201 = vmatprep.subr.bf16.mxu0 %v2989_v0  ;;  %v354_v0 = vld [vmem:[#allocation2 + $0x98] sm:$0xff] }
  0xbd   : > { %1202 = vmatpush1.bf16.msra.mxu0 %v2988_v3  ;;  %v3026_v3 = vcombine.low %v370_v56, %v378_v57  ;;  %v3011_v5 = vcombine.high %v354_v0, %v362_v1  ;;  %v371_v56 = vld [vmem:[#allocation2 + $0x120] sm:$0xff] }
  0xbe   : > { %314 = vadd.xlane.f32.xlu0 %v313_v20  ;;  %1269 = vmatprep.subr.bf16.mxu0 %v3105_v8  ;;  %v338_v8 = vld [vmem:[#allocation2 + $0x18] sm:$0xff]  ;;  %v379_v57 = vld [vmem:[#allocation2 + $0x160] sm:$0xff] }
 0x147   : > { %v315_v14 = vpop.xlane.xlu0 %314 }
 0x148   : > { %v316_v15 = vmul.f32 0.0078125, %v315_v14  ;;  %v2995_v14 = vcombine.high %v338_v8, %v346_v9 }
 0x14a   : > { %v317_v16 = vadd.f32 1e-05, %v316_v15  ;;  %v451_v15 = vld [vmem:[#allocation2 + $0x3a0] sm:$0xff] }
 0x14c   : > { %3584 = vrsqrt.f32 %v317_v16  ;;  %v459_v16 = vld [vmem:[#allocation2 + $0x3e0] sm:$0xff] }
 0x159   : > { %v3585_v17 = vpop.eup %3584 }
 0x15a   : > { %v319_v20 = vmul.f32 %v3585_v17, %v3761_v19  ;;  %v3088_v19 = vcombine.low %v433_v23, %v441_v24  ;;  %v452_v17 = vld [vmem:[#allocation2 + $0x3a8] sm:$0xff]  ;;  %v435_v24 = vld [vmem:[#allocation2 + $0x320] sm:$0xff] }
 0x15b   : > { %v3093_v31 = vcombine.high %v435_v24, %v443_v25 }
 0x15c   : > { %v326_v22 = vmul.f32 %v2986_v18, %v319_v20  ;;  %v460_v18 = vld [vmem:[#allocation2 + $0x3e8] sm:$0xff]  ;;  %v2992_v20 = vcombine.low %v337_v6, %v345_v7 }
 0x15d   : > { %v3111_v23 = vcombine.high %v452_v17, %v460_v18 }
 0x15e   : > { %v333_v27 = vadd.f32 %v2987_v21, %v326_v22  ;;  %v2994_v21 = vcombine.low %v338_v8, %v346_v9  ;;  %v3109_v22 = vcombine.high %v451_v15, %v459_v16  ;;  %v339_v8 = vld [vmem:[#allocation2 + $0x20] sm:$0xff] }
 0x15f   : > { %v347_v9 = vld [vmem:[#allocation2 + $0x60] sm:$0xff] }
 0x160   : > { %v3774_v28 = vpack.c.bf16 %v333_v27, %v333_v27  ;;  %v444_v27 = vld [vmem:[#allocation2 + $0x368] sm:$0xff] }
 0x161   : > { %v3095_v32 = vcombine.high %v436_v26, %v444_v27 }
 0x162   : > { %1220 = vmatmul.mubr.bf16.vlgmr.msra.gmra.mxu0 %v3774_v28  ;;  %1261 = vmatmul.mubr.bf16.vlgmr.msra.gmra.mxu1 %v3774_v28 }
 0x163   : > { %1270 = vmatpush1.bf16.msra.mxu0 %v3104_v10  ;;  %1311 = vmatpush1.bf16.msra.mxu1 %v3106_v11  ;;  %v3008_v10 = vcombine.low %v353_v62, %v361_v63  ;;  %v3010_v11 = vcombine.low %v354_v0, %v362_v1  ;;  %v3029_v62 = vcombine.high %v371_v56, %v379_v57  ;;  %v355_v0 = vld [vmem:[#allocation2 + $0xa0] sm:$0xff] }
 0x164   : > { %1271 = vmatprep.subr.bf16.mxu0 %v3089_v29  ;;  %1312 = vmatprep.subr.bf16.mxu1 %v3091_v30  ;;  %v3108_v29 = vcombine.low %v451_v15, %v459_v16  ;;  %v3110_v30 = vcombine.low %v452_v17, %v460_v18  ;;  %v363_v1 = vld [vmem:[#allocation2 + $0xe0] sm:$0xff]  ;;  %v2997_v15 = vcombine.high %v339_v8, %v347_v9  ;;  %v453_v17 = vld [vmem:[#allocation2 + $0x3b0] sm:$0xff] }
 0x165   : > { %1301 = vmatprep.mubr.bf16.mxu0 %v3659_v13  ;;  %1342 = vmatprep.mubr.bf16.mxu1 %v3659_v13  ;;  %v3013_v6 = vcombine.high %v355_v0, %v363_v1  ;;  %v461_v18 = vld [vmem:[#allocation2 + $0x3f0] sm:$0xff] }
 0x167   : > { %1272 = vmatpush1.bf16.msra.mxu0 %v3088_v19  ;;  %1313 = vmatpush1.bf16.msra.mxu1 %v3090_v35  ;;  %v420_v19 = vld [vmem:[#allocation2 + $0x2a8] sm:$0xff] }
 0x168   : > { %1273 = vmatprep.subr.bf16.mxu0 %v3073_v36  ;;  %1314 = vmatprep.subr.bf16.mxu1 %v3075_v37  ;;  %v428_v35 = vld [vmem:[#allocation2 + $0x2e8] sm:$0xff]  ;;  %v3092_v36 = vcombine.low %v435_v24, %v443_v25  ;;  %v3094_v37 = vcombine.low %v436_v26, %v444_v27  ;;  %v3113_v24 = vcombine.high %v453_v17, %v461_v18  ;;  %v437_v26 = vld [vmem:[#allocation2 + $0x330] sm:$0xff] }
 0x169   : > { %v3079_v39 = vcombine.high %v420_v19, %v428_v35  ;;  %v445_v27 = vld [vmem:[#allocation2 + $0x370] sm:$0xff] }
 0x16b   : > { %1274 = vmatpush1.bf16.msra.mxu0 %v3072_v42  ;;  %1315 = vmatpush1.bf16.msra.mxu1 %v3074_v43  ;;  %v404_v42 = vld [vmem:[#allocation2 + $0x228] sm:$0xff] }
 0x16c   : > { %1275 = vmatprep.subr.bf16.mxu0 %v3057_v44  ;;  %1316 = vmatprep.subr.bf16.mxu1 %v3059_v45  ;;  %v412_v43 = vld [vmem:[#allocation2 + $0x268] sm:$0xff]  ;;  %v3076_v44 = vcombine.low %v419_v33, %v427_v34  ;;  %v3078_v45 = vcombine.low %v420_v19, %v428_v35  ;;  %v3097_v33 = vcombine.high %v437_v26, %v445_v27  ;;  %v421_v19 = vld [vmem:[#allocation2 + $0x2b0] sm:$0xff] }
 0x16d   : > { %v3063_v47 = vcombine.high %v404_v42, %v412_v43  ;;  %v429_v35 = vld [vmem:[#allocation2 + $0x2f0] sm:$0xff] }
 0x16f   : > { %1276 = vmatpush1.bf16.msra.mxu0 %v3056_v50  ;;  %1317 = vmatpush1.bf16.msra.mxu1 %v3058_v51  ;;  %v388_v50 = vld [vmem:[#allocation2 + $0x1a8] sm:$0xff] }
 0x170   : > { %1277 = vmatprep.subr.bf16.mxu0 %v3041_v52  ;;  %1318 = vmatprep.subr.bf16.mxu1 %v3043_v53  ;;  %v396_v51 = vld [vmem:[#allocation2 + $0x1e8] sm:$0xff]  ;;  %v3060_v52 = vcombine.low %v403_v40, %v411_v41  ;;  %v3062_v53 = vcombine.low %v404_v42, %v412_v43  ;;  %v3081_v40 = vcombine.high %v421_v19, %v429_v35  ;;  %v405_v42 = vld [vmem:[#allocation2 + $0x230] sm:$0xff] }
 0x171   : > { %v3047_v55 = vcombine.high %v388_v50, %v396_v51  ;;  %v413_v43 = vld [vmem:[#allocation2 + $0x270] sm:$0xff] }
 0x173   : > { %1278 = vmatpush1.bf16.msra.mxu0 %v3040_v58  ;;  %1319 = vmatpush1.bf16.msra.mxu1 %v3042_v59  ;;  %v372_v58 = vld [vmem:[#allocation2 + $0x128] sm:$0xff] }
 0x174   : > { %1279 = vmatprep.subr.bf16.mxu0 %v3025_v60  ;;  %1320 = vmatprep.subr.bf16.mxu1 %v3027_v61  ;;  %v380_v59 = vld [vmem:[#allocation2 + $0x168] sm:$0xff]  ;;  %v3044_v60 = vcombine.low %v387_v48, %v395_v49  ;;  %v3046_v61 = vcombine.low %v388_v50, %v396_v51  ;;  %v3065_v48 = vcombine.high %v405_v42, %v413_v43  ;;  %v389_v50 = vld [vmem:[#allocation2 + $0x1b0] sm:$0xff] }
 0x175   : > { %v3031_v63 = vcombine.high %v372_v58, %v380_v59  ;;  %v397_v51 = vld [vmem:[#allocation2 + $0x1f0] sm:$0xff] }
 0x177   : > { %1280 = vmatpush1.bf16.msra.mxu0 %v3024_v2  ;;  %1321 = vmatpush1.bf16.msra.mxu1 %v3026_v3  ;;  %v356_v2 = vld [vmem:[#allocation2 + $0xa8] sm:$0xff] }
 0x178   : > { %1281 = vmatprep.subr.bf16.mxu0 %v3009_v4  ;;  %1322 = vmatprep.subr.bf16.mxu1 %v3011_v5  ;;  %v364_v3 = vld [vmem:[#allocation2 + $0xe8] sm:$0xff]  ;;  %v3028_v4 = vcombine.low %v371_v56, %v379_v57  ;;  %v3030_v5 = vcombine.low %v372_v58, %v380_v59  ;;  %v3049_v56 = vcombine.high %v389_v50, %v397_v51  ;;  %v373_v57 = vld [vmem:[#allocation2 + $0x130] sm:$0xff]  ;;  %v374_v59 = vld [vmem:[#allocation2 + $0x138] sm:$0xff] }
 0x179   : > { %v3015_v7 = vcombine.high %v356_v2, %v364_v3  ;;  %v381_v58 = vld [vmem:[#allocation2 + $0x170] sm:$0xff] }
 0x17b   : > { %1282 = vmatpush1.bf16.msra.mxu0 %v3008_v10  ;;  %1323 = vmatpush1.bf16.msra.mxu1 %v3010_v11  ;;  %v340_v10 = vld [vmem:[#allocation2 + $0x28] sm:$0xff] }
 0x17c   : > { %1283 = vmatprep.subr.bf16.mxu0 %v2993_v12  ;;  %1324 = vmatprep.subr.bf16.mxu1 %v2995_v14  ;;  %v348_v11 = vld [vmem:[#allocation2 + $0x68] sm:$0xff]  ;;  %v3012_v12 = vcombine.low %v355_v0, %v363_v1  ;;  %v3014_v14 = vcombine.low %v356_v2, %v364_v3  ;;  %v357_v1 = vld [vmem:[#allocation2 + $0xb0] sm:$0xff]  ;;  %v358_v3 = vld [vmem:[#allocation2 + $0xb8] sm:$0xff] }
 0x17d   : > { %v2999_v16 = vcombine.high %v340_v10, %v348_v11  ;;  %v365_v2 = vld [vmem:[#allocation2 + $0xf0] sm:$0xff] }
 0x17f   : > { %1284 = vmatpush1.bf16.msra.mxu0 %v2992_v20  ;;  %1325 = vmatpush1.bf16.msra.mxu1 %v2994_v21  ;;  %v454_v20 = vld [vmem:[#allocation2 + $0x3b8] sm:$0xff] }
 0x180   : > { %1351 = vmatprep.subr.bf16.mxu0 %v3109_v22  ;;  %1392 = vmatprep.subr.bf16.mxu1 %v3111_v23  ;;  %v462_v21 = vld [vmem:[#allocation2 + $0x3f8] sm:$0xff]  ;;  %v2996_v22 = vcombine.low %v339_v8, %v347_v9  ;;  %v2998_v23 = vcombine.low %v340_v10, %v348_v11  ;;  %v341_v9 = vld [vmem:[#allocation2 + $0x30] sm:$0xff] }
 0x181   : > { %v3115_v25 = vcombine.high %v454_v20, %v462_v21  ;;  %v349_v10 = vld [vmem:[#allocation2 + $0x70] sm:$0xff]  ;;  %v342_v11 = vld [vmem:[#allocation2 + $0x38] sm:$0xff] }
 0x182   : > { %1302 = vmatmul.mubr.bf16.vlgmr.msra.gmra.mxu0 %v3774_v28  ;;  %1343 = vmatmul.mubr.bf16.vlgmr.msra.gmra.mxu1 %v3774_v28 }
 0x183   : > { %1352 = vmatpush1.bf16.msra.mxu0 %v3108_v29  ;;  %1393 = vmatpush1.bf16.msra.mxu1 %v3110_v30  ;;  %v438_v29 = vld [vmem:[#allocation2 + $0x338] sm:$0xff] }
 0x184   : > { %1353 = vmatprep.subr.bf16.mxu0 %v3093_v31  ;;  %1394 = vmatprep.subr.bf16.mxu1 %v3095_v32  ;;  %v446_v30 = vld [vmem:[#allocation2 + $0x378] sm:$0xff]  ;;  %v3112_v31 = vcombine.low %v453_v17, %v461_v18  ;;  %v3114_v32 = vcombine.low %v454_v20, %v462_v21  ;;  %v3000_v18 = vcombine.low %v341_v9, %v349_v10 }
 0x185   : > { %1383 = vmatprep.mubr.bf16.mxu0 %v3659_v13  ;;  %1424 = vmatprep.mubr.bf16.mxu1 %v3659_v13  ;;  %v3099_v34 = vcombine.high %v438_v29, %v446_v30  ;;  %v3456_v21 = vld [vmem:[#allocation4 + $0x78] sm:$0xff]  }
 0x187   : > { %1354 = vmatpush1.bf16.msra.mxu0 %v3092_v36  ;;  %1395 = vmatpush1.bf16.msra.mxu1 %v3094_v37  ;;  %v422_v36 = vld [vmem:[#allocation2 + $0x2b8] sm:$0xff] }
 0x188   : > { %1355 = vmatprep.subr.bf16.mxu0 %v3077_v38  ;;  %1396 = vmatprep.subr.bf16.mxu1 %v3079_v39  ;;  %v430_v37 = vld [vmem:[#allocation2 + $0x2f8] sm:$0xff]  ;;  %v3096_v38 = vcombine.low %v437_v26, %v445_v27  ;;  %v3098_v39 = vcombine.low %v438_v29, %v446_v30  ;;  %v3461_v26 = vld [vmem:[#allocation4 + $0xf0] sm:$0xff]   ;;  %v3464_v30 = vld [vmem:[#allocation4 + $0x68] sm:$0xff]  }
 0x189   : > { %v3083_v41 = vcombine.high %v422_v36, %v430_v37  ;;  %v3462_v27 = vld [vmem:[#allocation4 + $0x30] sm:$0xff]  }
 0x18a   : > { %v3463_v29 = vld [vmem:[#allocation4 + $0xb0] sm:$0xff]  }
 0x18b   : > { %1356 = vmatpush1.bf16.msra.mxu0 %v3076_v44  ;;  %1397 = vmatpush1.bf16.msra.mxu1 %v3078_v45  ;;  %v406_v44 = vld [vmem:[#allocation2 + $0x238] sm:$0xff] }
 0x18c   : > { %1357 = vmatprep.subr.bf16.mxu0 %v3061_v46  ;;  %1398 = vmatprep.subr.bf16.mxu1 %v3063_v47  ;;  %v414_v45 = vld [vmem:[#allocation2 + $0x278] sm:$0xff]  ;;  %v3080_v46 = vcombine.low %v421_v19, %v429_v35  ;;  %v3082_v47 = vcombine.low %v422_v36, %v430_v37  ;;  %v3469_v19 = vld [vmem:[#allocation4 + $0xe0] sm:$0xff]  }
 0x18d   : > { %v3067_v49 = vcombine.high %v406_v44, %v414_v45  ;;  %v3470_v35 = vld [vmem:[#allocation4 + $0x20] sm:$0xff]   ;;  %v3472_v36 = vld [vmem:[#allocation4 + $0x58] sm:$0xff]  }
 0x18e   : > { %v3473_v37 = vld [vmem:[#allocation4 + $0xd8] sm:$0xff]  }
 0x18f   : > { %1358 = vmatpush1.bf16.msra.mxu0 %v3060_v52  ;;  %1399 = vmatpush1.bf16.msra.mxu1 %v3062_v53  ;;  %v390_v52 = vld [vmem:[#allocation2 + $0x1b8] sm:$0xff] }
 0x190   : > { %1359 = vmatprep.subr.bf16.mxu0 %v3045_v54  ;;  %1400 = vmatprep.subr.bf16.mxu1 %v3047_v55  ;;  %v398_v53 = vld [vmem:[#allocation2 + $0x1f8] sm:$0xff]  ;;  %v3064_v54 = vcombine.low %v405_v42, %v413_v43  ;;  %v3066_v55 = vcombine.low %v406_v44, %v414_v45  ;;  %v3478_v42 = vld [vmem:[#allocation4 + $0x10] sm:$0xff]   ;;  %v3480_v44 = vld [vmem:[#allocation4 + $0x48] sm:$0xff]  }
 0x191   : > { %v3479_v43 = vld [vmem:[#allocation4 + $0x90] sm:$0xff]   ;;  %v3481_v45 = vld [vmem:[#allocation4 + $0xc8] sm:$0xff]  }
 0x193   : > { %1360 = vmatpush1.bf16.msra.mxu0 %v3044_v60  ;;  %1401 = vmatpush1.bf16.msra.mxu1 %v3046_v61  ;;  %v382_v60 = vld [vmem:[#allocation2 + $0x178] sm:$0xff]  ;;  %v3048_v61 = vcombine.low %v389_v50, %v397_v51  ;;  %v3486_v50 = vld [vmem:[#allocation4] sm:$0xff]  }
 0x194   : > { %1361 = vmatprep.subr.bf16.mxu0 %v3029_v62  ;;  %1402 = vmatprep.subr.bf16.mxu1 %v3031_v63  ;;  %v3050_v62 = vcombine.low %v390_v52, %v398_v53  ;;  %v3033_v63 = vcombine.high %v373_v57, %v381_v58  ;;  %v3035_v0 = vcombine.high %v374_v59, %v382_v60  ;;  %v3487_v51 = vld [vmem:[#allocation4 + $0x80] sm:$0xff]  }
 0x197   : > { %1362 = vmatpush1.bf16.msra.mxu0 %v3028_v4  ;;  %1403 = vmatpush1.bf16.msra.mxu1 %v3030_v5  ;;  %v366_v4 = vld [vmem:[#allocation2 + $0xf8] sm:$0xff]  ;;  %v3032_v5 = vcombine.low %v373_v57, %v381_v58  ;;  %v3797_v57 = vld [vmem:[%s3873_s4] sm:$0xff] }
 0x198   : > { %1363 = vmatprep.subr.bf16.mxu0 %v3013_v6  ;;  %1404 = vmatprep.subr.bf16.mxu1 %v3015_v7  ;;  %v3034_v6 = vcombine.low %v374_v59, %v382_v60  ;;  %v3017_v7 = vcombine.high %v357_v1, %v365_v2  ;;  %v3019_v8 = vcombine.high %v358_v3, %v366_v4 }
 0x19b   : > { %1364 = vmatpush1.bf16.msra.mxu0 %v3012_v12  ;;  %1405 = vmatpush1.bf16.msra.mxu1 %v3014_v14  ;;  %v350_v12 = vld [vmem:[#allocation2 + $0x78] sm:$0xff]  ;;  %v3016_v14 = vcombine.low %v357_v1, %v365_v2 }
 0x19c   : > { %1365 = vmatprep.subr.bf16.mxu0 %v2997_v15  ;;  %1406 = vmatprep.subr.bf16.mxu1 %v2999_v16  ;;  %v3018_v15 = vcombine.low %v358_v3, %v366_v4  ;;  %v3001_v16 = vcombine.high %v341_v9, %v349_v10  ;;  %v3003_v17 = vcombine.high %v342_v11, %v350_v12 }
 0x19d   : > { %v3002_v20 = vcombine.low %v342_v11, %v350_v12 }
 0x19f   : > { %1366 = vmatpush1.bf16.msra.mxu0 %v2996_v22  ;;  %1407 = vmatpush1.bf16.msra.mxu1 %v2998_v23  ;;  %v3457_v22 = vld [vmem:[#allocation4 + $0xf8] sm:$0xff]  }
 0x1a0   : > { %1433 = vmatprep.subr.bf16.mxu0 %v3113_v24  ;;  %1474 = vmatprep.subr.bf16.mxu1 %v3115_v25  ;;  %v3458_v23 = vld [vmem:[#allocation4 + $0x38] sm:$0xff]   ;;  %v3460_v25 = vld [vmem:[#allocation4 + $0x70] sm:$0xff]  }
 0x1a1   : > { %v3459_v24 = vld [vmem:[#allocation4 + $0xb8] sm:$0xff]  }
 0x1a2   : > { %1384 = vmatmul.mubr.bf16.vlgmr.msra.gmra.mxu0 %v3774_v28  ;;  %1425 = vmatmul.mubr.bf16.vlgmr.msra.gmra.mxu1 %v3774_v28 }
 0x1a3   : > { %1434 = vmatpush1.bf16.msra.mxu0 %v3112_v31  ;;  %1475 = vmatpush1.bf16.msra.mxu1 %v3114_v32  ;;  %v3465_v31 = vld [vmem:[#allocation4 + $0xe8] sm:$0xff]  }
 0x1a4   : > { %1435 = vmatprep.subr.bf16.mxu0 %v3097_v33  ;;  %1476 = vmatprep.subr.bf16.mxu1 %v3099_v34  ;;  %v3466_v32 = vld [vmem:[#allocation4 + $0x28] sm:$0xff]   ;;  %v3468_v34 = vld [vmem:[#allocation4 + $0x60] sm:$0xff]  }
 0x1a5   : > { %1465 = vmatprep.mubr.bf16.mxu0 %v3659_v13  ;;  %1506 = vmatprep.mubr.bf16.mxu1 %v3659_v13  ;;  %v3051_v13 = vcombine.high %v390_v52, %v398_v53  ;;  %v3467_v33 = vld [vmem:[#allocation4 + $0xa8] sm:$0xff]   ;;  %v3488_v52 = vld [vmem:[#allocation4 + $0x178] sm:$0xff]  }
 0x1a6   : > { %v3489_v53 = vld [vmem:[#allocation4 + $0x1f8] sm:$0xff]  }
 0x1a7   : > { %1436 = vmatpush1.bf16.msra.mxu0 %v3096_v38  ;;  %1477 = vmatpush1.bf16.msra.mxu1 %v3098_v39  ;;  %v3474_v38 = vld [vmem:[#allocation4 + $0x18] sm:$0xff]  }
 0x1a8   : > { %1437 = vmatprep.subr.bf16.mxu0 %v3081_v40  ;;  %1478 = vmatprep.subr.bf16.mxu1 %v3083_v41  ;;  %v3475_v39 = vld [vmem:[#allocation4 + $0x98] sm:$0xff]   ;;  %v3476_v40 = vld [vmem:[#allocation4 + $0x50] sm:$0xff]  }
 0x1a9   : > { %v3477_v41 = vld [vmem:[#allocation4 + $0xd0] sm:$0xff]  }
 0x1ab   : > { %1438 = vmatpush1.bf16.msra.mxu0 %v3080_v46  ;;  %1479 = vmatpush1.bf16.msra.mxu1 %v3082_v47  ;;  %v3482_v46 = vld [vmem:[#allocation4 + $0x8] sm:$0xff]  }
 0x1ac   : > { %1439 = vmatprep.subr.bf16.mxu0 %v3065_v48  ;;  %1480 = vmatprep.subr.bf16.mxu1 %v3067_v49  ;;  %v3483_v47 = vld [vmem:[#allocation4 + $0x88] sm:$0xff]   ;;  %v3484_v48 = vld [vmem:[#allocation4 + $0x40] sm:$0xff]  }
 0x1ad   : > { %v3485_v49 = vld [vmem:[#allocation4 + $0xc0] sm:$0xff]  }
 0x1af   : > { %1440 = vmatpush1.bf16.msra.mxu0 %v3064_v54  ;;  %1481 = vmatpush1.bf16.msra.mxu1 %v3066_v55  ;;  %v467_v54 = vlaneseq }
 0x1b0   : > { %1441 = vmatprep.subr.bf16.mxu0 %v3049_v56  ;;  %1482 = vmatprep.subr.bf16.mxu1 %v3051_v13 }
 0x1b1   : > { %v3790_v55 = vshrl.u32 %v467_v54, 7  ;;  %v3515_v54 = vld [vmem:[#allocation4 + $0x188] sm:$0xff]  }
 0x1b3   : > { %1442 = vmatpush1.bf16.msra.mxu0 %v3048_v61  ;;  %1483 = vmatpush1.bf16.msra.mxu1 %v3050_v62  ;;  %v469_v56 = vsub.s32 0, %v3790_v55  ;;  %v477_v13 = vsub.s32 2, %v3790_v55  ;;  %v473_v58 = vsub.s32 1, %v3790_v55  ;;  %v481_v59 = vsub.s32 3, %v3790_v55 }
 0x1b4   : > { %1443 = vmatprep.subr.bf16.mxu0 %v3033_v63  ;;  %1484 = vmatprep.subr.bf16.mxu1 %v3035_v0 }
 0x1b5   : > { %v470_v60 = vrot.slane %v3797_v57, %v469_v56  ;;  %v478_v61 = vrot.slane %v3797_v57, %v477_v13  ;;  %v474_v62 = vrot.slane %v3797_v57, %v473_v58  ;;  %v482_v63 = vrot.slane %v3797_v57, %v481_v59 }
 0x1b7   : > { %1444 = vmatpush1.bf16.msra.mxu0 %v3032_v5  ;;  %1485 = vmatpush1.bf16.msra.mxu1 %v3034_v6 }
 0x1b8   : > { %1445 = vmatprep.subr.bf16.mxu0 %v3017_v7  ;;  %1486 = vmatprep.subr.bf16.mxu1 %v3019_v8 }
 0x1bb   : > { %1446 = vmatpush1.bf16.msra.mxu0 %v3016_v14  ;;  %1487 = vmatpush1.bf16.msra.mxu1 %v3018_v15 }
 0x1bc   : > { %1447 = vmatprep.subr.bf16.mxu0 %v3001_v16  ;;  %1488 = vmatprep.subr.bf16.mxu1 %v3003_v17 }
 0x1bf   : > { %1448 = vmatpush1.bf16.msra.mxu0 %v3000_v18  ;;  %1489 = vmatpush1.bf16.msra.mxu1 %v3002_v20  ;;  %v3490_v20 = vld [vmem:[#allocation4 + $0x138] sm:$0xff]  }
 0x1c0   : > { %3247 = vmatprep.subr.bf16.mxu0 %v3456_v21  ;;  %3269 = vmatprep.subr.bf16.mxu1 %v3457_v22  ;;  %v3491_v21 = vld [vmem:[#allocation4 + $0x1b8] sm:$0xff]  }
 0x1c2   : > { %1466 = vmatmul.mubr.bf16.vlgmr.msra.gmra.mxu0 %v3774_v28  ;;  %1507 = vmatmul.mubr.bf16.vlgmr.msra.gmra.mxu1 %v3774_v28  ;;  %v3471_v28 = vld [vmem:[#allocation4 + $0xa0] sm:$0xff]  }
 0x1c3   : > { %3248 = vmatpush3.bf16.msra.mxu0 %v3458_v23  ;;  %3270 = vmatpush3.bf16.msra.mxu1 %v3459_v24  ;;  %v3492_v24 = vld [vmem:[#allocation4 + $0x170] sm:$0xff]  }
 0x1c4   : > { %3249 = vmatprep.subr.bf16.mxu0 %v3460_v25  ;;  %3271 = vmatprep.subr.bf16.mxu1 %v3461_v26  ;;  %v3493_v25 = vld [vmem:[#allocation4 + $0x1f0] sm:$0xff]  }
 0x1c5   : > { %v3494_v26 = vld [vmem:[#allocation4 + $0x130] sm:$0xff]  }
 0x1c7   : > { %3250 = vmatpush3.bf16.msra.mxu0 %v3462_v27  ;;  %3272 = vmatpush3.bf16.msra.mxu1 %v3463_v29  ;;  %v3495_v27 = vld [vmem:[#allocation4 + $0x1b0] sm:$0xff]   ;;  %v3496_v29 = vld [vmem:[#allocation4 + $0x168] sm:$0xff]  }
 0x1c8   : > { %3251 = vmatprep.subr.bf16.mxu0 %v3464_v30  ;;  %3273 = vmatprep.subr.bf16.mxu1 %v3465_v31  ;;  %v3497_v30 = vld [vmem:[#allocation4 + $0x1e8] sm:$0xff]  }
 0x1c9   : > { %v3498_v31 = vld [vmem:[#allocation4 + $0x128] sm:$0xff]  }
 0x1cb   : > { %3252 = vmatpush3.bf16.msra.mxu0 %v3466_v32  ;;  %3274 = vmatpush3.bf16.msra.mxu1 %v3467_v33  ;;  %v3499_v32 = vld [vmem:[#allocation4 + $0x1a8] sm:$0xff]   ;;  %v3500_v33 = vld [vmem:[#allocation4 + $0x160] sm:$0xff]  }
 0x1cc   : > { %3253 = vmatprep.subr.bf16.mxu0 %v3468_v34  ;;  %3275 = vmatprep.subr.bf16.mxu1 %v3469_v19  ;;  %v3501_v34 = vld [vmem:[#allocation4 + $0x1e0] sm:$0xff]  }
 0x1cd   : > { %v3502_v19 = vld [vmem:[#allocation4 + $0x120] sm:$0xff]  }
 0x1cf   : > { %3254 = vmatpush3.bf16.msra.mxu0 %v3470_v35  ;;  %3276 = vmatpush3.bf16.msra.mxu1 %v3471_v28  ;;  %v3503_v35 = vld [vmem:[#allocation4 + $0x1a0] sm:$0xff]   ;;  %v3504_v28 = vld [vmem:[#allocation4 + $0x158] sm:$0xff]  }
 0x1d0   : > { %3255 = vmatprep.subr.bf16.mxu0 %v3472_v36  ;;  %3277 = vmatprep.subr.bf16.mxu1 %v3473_v37  ;;  %v3505_v36 = vld [vmem:[#allocation4 + $0x1d8] sm:$0xff]  }
 0x1d1   : > { %v3506_v37 = vld [vmem:[#allocation4 + $0x118] sm:$0xff]  }
 0x1d3   : > { %3256 = vmatpush3.bf16.msra.mxu0 %v3474_v38  ;;  %3278 = vmatpush3.bf16.msra.mxu1 %v3475_v39  ;;  %v3507_v38 = vld [vmem:[#allocation4 + $0x198] sm:$0xff]   ;;  %v3508_v39 = vld [vmem:[#allocation4 + $0x150] sm:$0xff]  }
 0x1d4   : > { %3257 = vmatprep.subr.bf16.mxu0 %v3476_v40  ;;  %3279 = vmatprep.subr.bf16.mxu1 %v3477_v41  ;;  %v3509_v40 = vld [vmem:[#allocation4 + $0x1d0] sm:$0xff]   ;;  %v485_v41 = vsub.s32 4, %v3790_v55 }
 0x1d7   : > { %3258 = vmatpush3.bf16.msra.mxu0 %v3478_v42  ;;  %3280 = vmatpush3.bf16.msra.mxu1 %v3479_v43  ;;  %v493_v42 = vsub.s32 6, %v3790_v55  ;;  %v3510_v43 = vld [vmem:[#allocation4 + $0x110] sm:$0xff]  }
 0x1d8   : > { %3259 = vmatprep.subr.bf16.mxu0 %v3480_v44  ;;  %3281 = vmatprep.subr.bf16.mxu1 %v3481_v45  ;;  %v3511_v44 = vld [vmem:[#allocation4 + $0x190] sm:$0xff]   ;;  %v489_v45 = vsub.s32 5, %v3790_v55 }
 0x1db   : > { %3260 = vmatpush3.bf16.msra.mxu0 %v3482_v46  ;;  %3282 = vmatpush3.bf16.msra.mxu1 %v3483_v47  ;;  %v497_v46 = vsub.s32 7, %v3790_v55  ;;  %v3512_v47 = vld [vmem:[#allocation4 + $0x148] sm:$0xff]   ;;  %v3583_v55 = vld [vmem:[#allocation4 + $0x380] sm:$0xff]  }
 0x1dc   : > { %3261 = vmatprep.subr.bf16.mxu0 %v3484_v48  ;;  %3283 = vmatprep.subr.bf16.mxu1 %v3485_v49  ;;  %v3513_v48 = vld [vmem:[#allocation4 + $0x1c8] sm:$0xff]   ;;  %v486_v49 = vrot.slane %v3797_v57, %v485_v41 }
 0x1df   : > { %3262 = vmatpush3.bf16.msra.mxu0 %v3486_v50  ;;  %3284 = vmatpush3.bf16.msra.mxu1 %v3487_v51  ;;  %v494_v50 = vrot.slane %v3797_v57, %v493_v42  ;;  %v490_v51 = vrot.slane %v3797_v57, %v489_v45 }
 0x1e0   : > { %3291 = vmatprep.subr.bf16.mxu0 %v3488_v52  ;;  %3313 = vmatprep.subr.bf16.mxu1 %v3489_v53  ;;  %v498_v52 = vrot.slane %v3797_v57, %v497_v46  ;;  %v3514_v53 = vld [vmem:[#allocation4 + $0x108] sm:$0xff]  }
 0x222   : > { %v1221_v0 = vpop.f32.mrf.mxu0  ;;  %v1262_v1 = vpop.f32.mrf.mxu1 }
 0x223   : > { %v1222_v2 = vadd.f32 %v1221_v0, %v470_v60  ;;  %v1263_v3 = vadd.f32 %v1262_v1, %v478_v61 }
 0x224   : > { %v1223_v4 = vpop.f32.mrf.mxu0  ;;  %v1264_v5 = vpop.f32.mrf.mxu1 }
 0x225   : > { %v1224_v6 = vadd.f32 %v1223_v4, %v474_v62  ;;  %v1265_v7 = vadd.f32 %v1264_v5, %v482_v63  ;;  %v1515_v8 = vmax.f32 %v1222_v2, 0.0  ;;  %v1517_v9 = vmax.f32 %v1263_v3, 0.0  ;;  %v3516_v62 = vld [vmem:[#allocation4 + $0x140] sm:$0xff]  }
 0x226   : > { %v1225_v10 = vpop.f32.mrf.mxu0  ;;  %v1266_v11 = vpop.f32.mrf.mxu1  ;;  %v3517_v63 = vld [vmem:[#allocation4 + $0x1c0] sm:$0xff]  }
 0x227   : > { %v1516_v12 = vmax.f32 %v1224_v6, 0.0  ;;  %v1518_v14 = vmax.f32 %v1265_v7, 0.0  ;;  %v1531_v22 = vpack.c.bf16 %v1515_v8, %v1515_v8  ;;  %v1533_v23 = vpack.c.bf16 %v1517_v9, %v1517_v9  ;;  %v3518_v6 = vld [vmem:[#allocation4 + $0x100] sm:$0xff]   ;;  %v3520_v11 = vld [vmem:[#allocation4 + $0x278] sm:$0xff]  }
 0x228   : > { %v1226_v15 = vpop.f32.mrf.mxu0  ;;  %v1267_v16 = vpop.f32.mrf.mxu1  ;;  %v3519_v7 = vld [vmem:[#allocation4 + $0x180] sm:$0xff]  }
 0x229   : > { %v1532_v17 = vpack.c.bf16 %v1516_v12, %v1516_v12  ;;  %v1534_v18 = vpack.c.bf16 %v1518_v14, %v1518_v14  ;;  %v3521_v12 = vld [vmem:[#allocation4 + $0x2f8] sm:$0xff]  }
 0x22b   : > { %2610 = vmatprep.mubr.bf16.mxu0 %v1532_v17  ;;  %2650 = vmatprep.mubr.bf16.mxu1 %v1534_v18 }
 0x22c   : > { %2611 = vmatmul.mubr.bf16.vlgmr.msra.gmra.mxu0 %v1531_v22  ;;  %2651 = vmatmul.mubr.bf16.vlgmr.msra.gmra.mxu1 %v1533_v23  ;;  %v3523_v22 = vld [vmem:[#allocation4 + $0x2b8] sm:$0xff]  }
 0x22d   : > { %3292 = vmatpush3.bf16.msra.mxu0 %v3490_v20  ;;  %3314 = vmatpush3.bf16.msra.mxu1 %v3491_v21  ;;  %v3522_v21 = vld [vmem:[#allocation4 + $0x238] sm:$0xff]  }
 0x22e   : > { %3293 = vmatprep.subr.bf16.mxu0 %v3492_v24  ;;  %3315 = vmatprep.subr.bf16.mxu1 %v3493_v25  ;;  %v3524_v25 = vld [vmem:[#allocation4 + $0x270] sm:$0xff]  }
 0x231   : > { %3294 = vmatpush3.bf16.msra.mxu0 %v3494_v26  ;;  %3316 = vmatpush3.bf16.msra.mxu1 %v3495_v27  ;;  %v3525_v26 = vld [vmem:[#allocation4 + $0x2f0] sm:$0xff]  }
 0x232   : > { %3295 = vmatprep.subr.bf16.mxu0 %v3496_v29  ;;  %3317 = vmatprep.subr.bf16.mxu1 %v3497_v30  ;;  %v3526_v27 = vld [vmem:[#allocation4 + $0x230] sm:$0xff]   ;;  %v3528_v30 = vld [vmem:[#allocation4 + $0x268] sm:$0xff]  }
 0x233   : > { %v3527_v29 = vld [vmem:[#allocation4 + $0x2b0] sm:$0xff]  }
 0x235   : > { %3296 = vmatpush3.bf16.msra.mxu0 %v3498_v31  ;;  %3318 = vmatpush3.bf16.msra.mxu1 %v3499_v32  ;;  %v3529_v31 = vld [vmem:[#allocation4 + $0x2e8] sm:$0xff]  }
 0x236   : > { %3297 = vmatprep.subr.bf16.mxu0 %v3500_v33  ;;  %3319 = vmatprep.subr.bf16.mxu1 %v3501_v34  ;;  %v3530_v32 = vld [vmem:[#allocation4 + $0x228] sm:$0xff]   ;;  %v3532_v34 = vld [vmem:[#allocation4 + $0x260] sm:$0xff]  }
 0x237   : > { %v3531_v33 = vld [vmem:[#allocation4 + $0x2a8] sm:$0xff]  }
 0x239   : > { %3298 = vmatpush3.bf16.msra.mxu0 %v3502_v19  ;;  %3320 = vmatpush3.bf16.msra.mxu1 %v3503_v35  ;;  %v3533_v19 = vld [vmem:[#allocation4 + $0x2e0] sm:$0xff]  }
 0x23a   : > { %3299 = vmatprep.subr.bf16.mxu0 %v3504_v28  ;;  %3321 = vmatprep.subr.bf16.mxu1 %v3505_v36  ;;  %v3534_v35 = vld [vmem:[#allocation4 + $0x220] sm:$0xff]   ;;  %v3536_v36 = vld [vmem:[#allocation4 + $0x258] sm:$0xff]  }
 0x23b   : > { %v3535_v28 = vld [vmem:[#allocation4 + $0x2a0] sm:$0xff]  }
 0x23d   : > { %3300 = vmatpush3.bf16.msra.mxu0 %v3506_v37  ;;  %3322 = vmatpush3.bf16.msra.mxu1 %v3507_v38  ;;  %v3537_v37 = vld [vmem:[#allocation4 + $0x2d8] sm:$0xff]  }
 0x23e   : > { %3301 = vmatprep.subr.bf16.mxu0 %v3508_v39  ;;  %3323 = vmatprep.subr.bf16.mxu1 %v3509_v40  ;;  %v3538_v38 = vld [vmem:[#allocation4 + $0x218] sm:$0xff]   ;;  %v3540_v40 = vld [vmem:[#allocation4 + $0x250] sm:$0xff]  }
 0x23f   : > { %v3539_v39 = vld [vmem:[#allocation4 + $0x298] sm:$0xff]  }
 0x241   : > { %3302 = vmatpush3.bf16.msra.mxu0 %v3510_v43  ;;  %3324 = vmatpush3.bf16.msra.mxu1 %v3511_v44  ;;  %v3541_v43 = vld [vmem:[#allocation4 + $0x2d0] sm:$0xff]   ;;  %v3832_v44 = vld [vmem:[%s3873_s4 + $0x8] sm:$0xff] }
 0x242   : > { %v1303_v60 = vpop.f32.mrf.mxu0  ;;  %v1344_v61 = vpop.f32.mrf.mxu1  ;;  %3303 = vmatprep.subr.bf16.mxu0 %v3512_v47  ;;  %3325 = vmatprep.subr.bf16.mxu1 %v3513_v48  ;;  %v3542_v47 = vld [vmem:[#allocation4 + $0x210] sm:$0xff]  }
 0x243   : > { %v1304_v0 = vadd.f32 %v1303_v60, %v486_v49  ;;  %v1345_v1 = vadd.f32 %v1344_v61, %v494_v50  ;;  %v3543_v48 = vld [vmem:[#allocation4 + $0x290] sm:$0xff]   ;;  %v3544_v49 = vld [vmem:[#allocation4 + $0x248] sm:$0xff]  }
 0x244   : > { %v1305_v2 = vpop.f32.mrf.mxu0  ;;  %v1346_v3 = vpop.f32.mrf.mxu1  ;;  %v3545_v50 = vld [vmem:[#allocation4 + $0x2c8] sm:$0xff]  }
 0x245   : > { %v1306_v4 = vadd.f32 %v1305_v2, %v490_v51  ;;  %v1347_v5 = vadd.f32 %v1346_v3, %v498_v52  ;;  %3304 = vmatpush3.bf16.msra.mxu0 %v3514_v53  ;;  %3326 = vmatpush3.bf16.msra.mxu1 %v3515_v54  ;;  %v1519_v8 = vmax.f32 %v1304_v0, 0.0  ;;  %v1521_v57 = vmax.f32 %v1345_v1, 0.0  ;;  %v3546_v60 = vld [vmem:[#allocation4 + $0x208] sm:$0xff]   ;;  %v3549_v0 = vld [vmem:[#allocation4 + $0x2c0] sm:$0xff]  }
 0x246   : > { %v1307_v9 = vpop.f32.mrf.mxu0  ;;  %v1348_v10 = vpop.f32.mrf.mxu1  ;;  %3305 = vmatprep.subr.bf16.mxu0 %v3516_v62  ;;  %3327 = vmatprep.subr.bf16.mxu1 %v3517_v63  ;;  %v502_v51 = vrot.slane %v3832_v44, %v469_v56  ;;  %v510_v52 = vrot.slane %v3832_v44, %v477_v13  ;;  %v506_v53 = vrot.slane %v3832_v44, %v473_v58  ;;  %v3547_v61 = vld [vmem:[#allocation4 + $0x288] sm:$0xff]   ;;  %v3548_v56 = vld [vmem:[#allocation4 + $0x240] sm:$0xff]  }
 0x247   : > { %v1520_v14 = vmax.f32 %v1306_v4, 0.0  ;;  %v1522_v15 = vmax.f32 %v1347_v5, 0.0  ;;  %v1535_v23 = vpack.c.bf16 %v1519_v8, %v1519_v8  ;;  %v1537_v24 = vpack.c.bf16 %v1521_v57, %v1521_v57  ;;  %v3550_v58 = vld [vmem:[#allocation4 + $0x200] sm:$0xff]   ;;  %v3552_v9 = vld [vmem:[#allocation4 + $0x378] sm:$0xff]  }
 0x248   : > { %v1308_v16 = vpop.f32.mrf.mxu0  ;;  %v1349_v17 = vpop.f32.mrf.mxu1  ;;  %v514_v54 = vrot.slane %v3832_v44, %v481_v59  ;;  %v3553_v10 = vld [vmem:[#allocation4 + $0x3f8] sm:$0xff]  }
 0x249   : > { %v1536_v18 = vpack.c.bf16 %v1520_v14, %v1520_v14  ;;  %v1538_v20 = vpack.c.bf16 %v1522_v15, %v1522_v15  ;;  %3306 = vmatpush3.bf16.msra.mxu0 %v3518_v6  ;;  %3328 = vmatpush3.bf16.msra.mxu1 %v3519_v7  ;;  %v3551_v6 = vld [vmem:[#allocation4 + $0x280] sm:$0xff]  }
 0x24a   : > { %3335 = vmatprep.subr.bf16.mxu0 %v3520_v11  ;;  %3357 = vmatprep.subr.bf16.mxu1 %v3521_v12 }
 0x24b   : > { %2690 = vmatprep.mubr.bf16.mxu0 %v1536_v18  ;;  %2730 = vmatprep.mubr.bf16.mxu1 %v1538_v20  ;;  %v3554_v18 = vld [vmem:[#allocation4 + $0x338] sm:$0xff]  }
 0x24c   : > { %2691 = vmatmul.mubr.bf16.vlgmr.msra.gmra.mxu0 %v1535_v23  ;;  %2731 = vmatmul.mubr.bf16.vlgmr.msra.gmra.mxu1 %v1537_v24  ;;  %v3555_v20 = vld [vmem:[#allocation4 + $0x3b8] sm:$0xff]   ;;  %v3556_v23 = vld [vmem:[#allocation4 + $0x370] sm:$0xff]  }
 0x24d   : > { %3336 = vmatpush3.bf16.msra.mxu0 %v3522_v21  ;;  %3358 = vmatpush3.bf16.msra.mxu1 %v3523_v22  ;;  %v3557_v24 = vld [vmem:[#allocation4 + $0x3f0] sm:$0xff]  }
 0x24e   : > { %3337 = vmatprep.subr.bf16.mxu0 %v3524_v25  ;;  %3359 = vmatprep.subr.bf16.mxu1 %v3525_v26  ;;  %v3558_v25 = vld [vmem:[#allocation4 + $0x330] sm:$0xff]  }
 0x24f   : > { %v3559_v26 = vld [vmem:[#allocation4 + $0x3b0] sm:$0xff]  }
 0x251   : > { %3338 = vmatpush3.bf16.msra.mxu0 %v3526_v27  ;;  %3360 = vmatpush3.bf16.msra.mxu1 %v3527_v29  ;;  %v3560_v27 = vld [vmem:[#allocation4 + $0x368] sm:$0xff]  }
 0x252   : > { %3339 = vmatprep.subr.bf16.mxu0 %v3528_v30  ;;  %3361 = vmatprep.subr.bf16.mxu1 %v3529_v31  ;;  %v3561_v29 = vld [vmem:[#allocation4 + $0x3e8] sm:$0xff]  }
 0x253   : > { %v3562_v30 = vld [vmem:[#allocation4 + $0x328] sm:$0xff]  }
 0x254   : > { %v3563_v31 = vld [vmem:[#allocation4 + $0x3a8] sm:$0xff]  }
 0x255   : > { %3340 = vmatpush3.bf16.msra.mxu0 %v3530_v32  ;;  %3362 = vmatpush3.bf16.msra.mxu1 %v3531_v33  ;;  %v3564_v32 = vld [vmem:[#allocation4 + $0x360] sm:$0xff]  }
 0x256   : > { %3341 = vmatprep.subr.bf16.mxu0 %v3532_v34  ;;  %3363 = vmatprep.subr.bf16.mxu1 %v3533_v19  ;;  %v3565_v33 = vld [vmem:[#allocation4 + $0x3e0] sm:$0xff]  }
 0x257   : > { %v3566_v34 = vld [vmem:[#allocation4 + $0x320] sm:$0xff]  }
 0x258   : > { %v3567_v19 = vld [vmem:[#allocation4 + $0x3a0] sm:$0xff]  }
 0x259   : > { %3342 = vmatpush3.bf16.msra.mxu0 %v3534_v35  ;;  %3364 = vmatpush3.bf16.msra.mxu1 %v3535_v28  ;;  %v3568_v35 = vld [vmem:[#allocation4 + $0x358] sm:$0xff]  }
 0x25a   : > { %3343 = vmatprep.subr.bf16.mxu0 %v3536_v36  ;;  %3365 = vmatprep.subr.bf16.mxu1 %v3537_v37  ;;  %v3569_v28 = vld [vmem:[#allocation4 + $0x3d8] sm:$0xff]  }
 0x25b   : > { %v3570_v36 = vld [vmem:[#allocation4 + $0x318] sm:$0xff]  }
 0x25c   : > { %v3571_v37 = vld [vmem:[#allocation4 + $0x398] sm:$0xff]  }
 0x25d   : > { %3344 = vmatpush3.bf16.msra.mxu0 %v3538_v38  ;;  %3366 = vmatpush3.bf16.msra.mxu1 %v3539_v39  ;;  %v3572_v38 = vld [vmem:[#allocation4 + $0x350] sm:$0xff]  }
 0x25e   : > { %3345 = vmatprep.subr.bf16.mxu0 %v3540_v40  ;;  %3367 = vmatprep.subr.bf16.mxu1 %v3541_v43  ;;  %v3573_v39 = vld [vmem:[#allocation4 + $0x3d0] sm:$0xff]  }
 0x25f   : > { %v3574_v40 = vld [vmem:[#allocation4 + $0x310] sm:$0xff]  }
 0x260   : > { %v3575_v43 = vld [vmem:[#allocation4 + $0x390] sm:$0xff]  }
 0x261   : > { %3346 = vmatpush3.bf16.msra.mxu0 %v3542_v47  ;;  %3368 = vmatpush3.bf16.msra.mxu1 %v3543_v48  ;;  %v3576_v47 = vld [vmem:[#allocation4 + $0x348] sm:$0xff]  }
 0x262   : > { %v1385_v62 = vpop.f32.mrf.mxu0  ;;  %v1426_v63 = vpop.f32.mrf.mxu1  ;;  %3347 = vmatprep.subr.bf16.mxu0 %v3544_v49  ;;  %3369 = vmatprep.subr.bf16.mxu1 %v3545_v50  ;;  %v3577_v48 = vld [vmem:[#allocation4 + $0x3c8] sm:$0xff]   ;;  %v518_v49 = vrot.slane %v3832_v44, %v485_v41  ;;  %v526_v50 = vrot.slane %v3832_v44, %v493_v42  ;;  %v3580_v41 = vld [vmem:[#allocation4 + $0x340] sm:$0xff]  }
 0x263   : > { %v1386_v1 = vadd.f32 %v1385_v62, %v502_v51  ;;  %v1427_v13 = vadd.f32 %v1426_v63, %v510_v52  ;;  %v522_v51 = vrot.slane %v3832_v44, %v489_v45  ;;  %v530_v52 = vrot.slane %v3832_v44, %v497_v46  ;;  %v3581_v62 = vld [vmem:[#allocation4 + $0x3c0] sm:$0xff]  }
 0x264   : > { %v1387_v2 = vpop.f32.mrf.mxu0  ;;  %v1428_v3 = vpop.f32.mrf.mxu1  ;;  %v3582_v45 = vld [vmem:[#allocation4 + $0x300] sm:$0xff]  }
 0x265   : > { %v1388_v4 = vadd.f32 %v1387_v2, %v506_v53  ;;  %v1429_v5 = vadd.f32 %v1428_v3, %v514_v54  ;;  %3348 = vmatpush3.bf16.msra.mxu0 %v3546_v60  ;;  %3370 = vmatpush3.bf16.msra.mxu1 %v3547_v61  ;;  %v1523_v7 = vmax.f32 %v1386_v1, 0.0  ;;  %v1525_v59 = vmax.f32 %v1427_v13, 0.0  ;;  %v3578_v53 = vld [vmem:[#allocation4 + $0x308] sm:$0xff]  }
 0x266   : > { %v1389_v8 = vpop.f32.mrf.mxu0  ;;  %v1430_v57 = vpop.f32.mrf.mxu1  ;;  %3349 = vmatprep.subr.bf16.mxu0 %v3548_v56  ;;  %3371 = vmatprep.subr.bf16.mxu1 %v3549_v0  ;;  %v3579_v54 = vld [vmem:[#allocation4 + $0x388] sm:$0xff]  }
 0x267   : > { %v1524_v11 = vmax.f32 %v1388_v4, 0.0  ;;  %v1526_v12 = vmax.f32 %v1429_v5, 0.0  ;;  %v1539_v21 = vpack.c.bf16 %v1523_v7, %v1523_v7  ;;  %v1541_v22 = vpack.c.bf16 %v1525_v59, %v1525_v59 }
 0x268   : > { %v1390_v14 = vpop.f32.mrf.mxu0  ;;  %v1431_v15 = vpop.f32.mrf.mxu1 }
 0x269   : > { %v1540_v16 = vpack.c.bf16 %v1524_v11, %v1524_v11  ;;  %v1542_v17 = vpack.c.bf16 %v1526_v12, %v1526_v12  ;;  %3350 = vmatpush3.bf16.msra.mxu0 %v3550_v58  ;;  %3372 = vmatpush3.bf16.msra.mxu1 %v3551_v6  ;;  %v3116_v11 = vld [vmem:[%s3875_s6] ss:$0 sm:$0xff] }
 0x26a   : > { %3379 = vmatprep.subr.bf16.mxu0 %v3552_v9  ;;  %3401 = vmatprep.subr.bf16.mxu1 %v3553_v10 }
 0x26b   : > { %2770 = vmatprep.mubr.bf16.mxu0 %v1540_v16  ;;  %2810 = vmatprep.mubr.bf16.mxu1 %v1542_v17 }
 0x26c   : > { %2771 = vmatmul.mubr.bf16.vlgmr.msra.gmra.mxu0 %v1539_v21  ;;  %2811 = vmatmul.mubr.bf16.vlgmr.msra.gmra.mxu1 %v1541_v22 }
 0x26d   : > { %3380 = vmatpush3.bf16.msra.mxu0 %v3554_v18  ;;  %3402 = vmatpush3.bf16.msra.mxu1 %v3555_v20 }
 0x26e   : > { %3381 = vmatprep.subr.bf16.mxu0 %v3556_v23  ;;  %3403 = vmatprep.subr.bf16.mxu1 %v3557_v24 }
 0x271   : > { %3382 = vmatpush3.bf16.msra.mxu0 %v3558_v25  ;;  %3404 = vmatpush3.bf16.msra.mxu1 %v3559_v26 }
 0x272   : > { %3383 = vmatprep.subr.bf16.mxu0 %v3560_v27  ;;  %3405 = vmatprep.subr.bf16.mxu1 %v3561_v29 }
 0x275   : > { %3384 = vmatpush3.bf16.msra.mxu0 %v3562_v30  ;;  %3406 = vmatpush3.bf16.msra.mxu1 %v3563_v31 }
 0x276   : > { %3385 = vmatprep.subr.bf16.mxu0 %v3564_v32  ;;  %3407 = vmatprep.subr.bf16.mxu1 %v3565_v33 }
 0x279   : > { %3386 = vmatpush3.bf16.msra.mxu0 %v3566_v34  ;;  %3408 = vmatpush3.bf16.msra.mxu1 %v3567_v19 }
 0x27a   : > { %3387 = vmatprep.subr.bf16.mxu0 %v3568_v35  ;;  %3409 = vmatprep.subr.bf16.mxu1 %v3569_v28 }
 0x27d   : > { %3388 = vmatpush3.bf16.msra.mxu0 %v3570_v36  ;;  %3410 = vmatpush3.bf16.msra.mxu1 %v3571_v37 }
 0x27e   : > { %3389 = vmatprep.subr.bf16.mxu0 %v3572_v38  ;;  %3411 = vmatprep.subr.bf16.mxu1 %v3573_v39 }
 0x281   : > { %3390 = vmatpush3.bf16.msra.mxu0 %v3574_v40  ;;  %3412 = vmatpush3.bf16.msra.mxu1 %v3575_v43 }
 0x282   : > { %v1467_v60 = vpop.f32.mrf.mxu0  ;;  %v1508_v61 = vpop.f32.mrf.mxu1  ;;  %3391 = vmatprep.subr.bf16.mxu0 %v3576_v47  ;;  %3413 = vmatprep.subr.bf16.mxu1 %v3577_v48 }
 0x283   : > { %v1468_v63 = vadd.f32 %v1467_v60, %v518_v49  ;;  %v1509_v42 = vadd.f32 %v1508_v61, %v526_v50 }
 0x284   : > { %v1469_v56 = vpop.f32.mrf.mxu0  ;;  %v1510_v0 = vpop.f32.mrf.mxu1 }
 0x285   : > { %v1470_v1 = vadd.f32 %v1469_v56, %v522_v51  ;;  %v1511_v13 = vadd.f32 %v1510_v0, %v530_v52  ;;  %3392 = vmatpush3.bf16.msra.mxu0 %v3578_v53  ;;  %3414 = vmatpush3.bf16.msra.mxu1 %v3579_v54  ;;  %v1527_v2 = vmax.f32 %v1468_v63, 0.0  ;;  %v1529_v46 = vmax.f32 %v1509_v42, 0.0 }
 0x286   : > { %v1471_v44 = vpop.f32.mrf.mxu0  ;;  %v1512_v3 = vpop.f32.mrf.mxu1  ;;  %3393 = vmatprep.subr.bf16.mxu0 %v3580_v41  ;;  %3415 = vmatprep.subr.bf16.mxu1 %v3581_v62 }
 0x287   : > { %v1528_v4 = vmax.f32 %v1470_v1, 0.0  ;;  %v1530_v5 = vmax.f32 %v1511_v13, 0.0  ;;  %v1543_v8 = vpack.c.bf16 %v1527_v2, %v1527_v2  ;;  %v1545_v57 = vpack.c.bf16 %v1529_v46, %v1529_v46 }
 0x288   : > { %v1472_v58 = vpop.f32.mrf.mxu0  ;;  %v1513_v6 = vpop.f32.mrf.mxu1 }
 0x289   : > { %v1544_v7 = vpack.c.bf16 %v1528_v4, %v1528_v4  ;;  %v1546_v59 = vpack.c.bf16 %v1530_v5, %v1530_v5  ;;  %3394 = vmatpush3.bf16.msra.mxu0 %v3582_v45  ;;  %3416 = vmatpush3.bf16.msra.mxu1 %v3583_v55 }
 0x28b   : > { %2850 = vmatprep.mubr.bf16.mxu0 %v1544_v7  ;;  %2890 = vmatprep.mubr.bf16.mxu1 %v1546_v59 }
 0x28c   : > { %2851 = vmatmul.mubr.bf16.vlgmr.msra.gmra.mxu0 %v1543_v8  ;;  %2891 = vmatmul.mubr.bf16.vlgmr.msra.gmra.mxu1 %v1545_v57 }
 0x2ec   : > { %v3263_v9 = vpop.f32.mrf.mxu0  ;;  %v3285_v10 = vpop.f32.mrf.mxu1 }
 0x2ee   : > { %v3264_v12 = vpop.f32.mrf.mxu0  ;;  %v3286_v14 = vpop.f32.mrf.mxu1 }
 0x2ef   : > { %v3265_v15 = vadd.f32 %v3264_v12, %v3263_v9  ;;  %v3287_v16 = vadd.f32 %v3286_v14, %v3285_v10 }
 0x2f0   : > { %v3266_v17 = vpop.f32.mrf.mxu0  ;;  %v3288_v18 = vpop.f32.mrf.mxu1 }
 0x2f1   : > { %v2613_v20 = vadd.f32 %v3265_v15, %v3116_v11 }
 0x2f2   : > { %v3267_v21 = vpop.f32.mrf.mxu0  ;;  %v3289_v22 = vpop.f32.mrf.mxu1 }
 0x2f3   : > { %v2653_v23 = vadd.f32 %v3287_v16, %v2613_v20 }
 0x30c   : > { %v3307_v24 = vpop.f32.mrf.mxu0  ;;  %v3329_v25 = vpop.f32.mrf.mxu1 }
 0x30e   : > { %v3308_v26 = vpop.f32.mrf.mxu0  ;;  %v3330_v27 = vpop.f32.mrf.mxu1 }
 0x30f   : > { %v3309_v39 = vadd.f32 %v3308_v26, %v3307_v24  ;;  %v3331_v43 = vadd.f32 %v3330_v27, %v3329_v25 }
 0x310   : > { %v3310_v29 = vpop.f32.mrf.mxu0  ;;  %v3332_v30 = vpop.f32.mrf.mxu1 }
 0x311   : > { %v2693_v40 = vadd.f32 %v3309_v39, %v2653_v23 }
 0x312   : > { %v3311_v31 = vpop.f32.mrf.mxu0  ;;  %v3333_v32 = vpop.f32.mrf.mxu1 }
 0x313   : > { %v2733_v48 = vadd.f32 %v3331_v43, %v2693_v40 }
 0x32c   : > { %v3351_v33 = vpop.f32.mrf.mxu0  ;;  %v3373_v34 = vpop.f32.mrf.mxu1 }
 0x32e   : > { %v3352_v19 = vpop.f32.mrf.mxu0  ;;  %v3374_v35 = vpop.f32.mrf.mxu1 }
 0x32f   : > { %v3353_v47 = vadd.f32 %v3352_v19, %v3351_v33  ;;  %v3375_v52 = vadd.f32 %v3374_v35, %v3373_v34 }
 0x330   : > { %v3354_v28 = vpop.f32.mrf.mxu0  ;;  %v3376_v36 = vpop.f32.mrf.mxu1 }
 0x331   : > { %v2773_v49 = vadd.f32 %v3353_v47, %v2733_v48 }
 0x332   : > { %v3355_v37 = vpop.f32.mrf.mxu0  ;;  %v3377_v38 = vpop.f32.mrf.mxu1 }
 0x333   : > { %v2813_v60 = vadd.f32 %v3375_v52, %v2773_v49 }
 0x34c   : > { %v3395_v50 = vpop.f32.mrf.mxu0  ;;  %v3417_v51 = vpop.f32.mrf.mxu1 }
 0x34e   : > { %v3396_v53 = vpop.f32.mrf.mxu0  ;;  %v3418_v54 = vpop.f32.mrf.mxu1 }
 0x34f   : > { %v3397_v61 = vadd.f32 %v3396_v53, %v3395_v50  ;;  %v3419_v42 = vadd.f32 %v3418_v54, %v3417_v51 }
 0x350   : > { %v3398_v41 = vpop.f32.mrf.mxu0  ;;  %v3420_v62 = vpop.f32.mrf.mxu1 }
 0x351   : > { %v2853_v63 = vadd.f32 %v3397_v61, %v2813_v60 }
 0x352   : > { %v3399_v56 = vpop.f32.mrf.mxu0  ;;  %v3421_v0 = vpop.f32.mrf.mxu1 }
 0x353   : > { %v2893_v1 = vadd.f32 %v3419_v42, %v2853_v63 }
 0x355   : > { %v2898_v13 = vmul.f32 2.0, %v2893_v1 }
 0x357   : > { %2899 = vst [vmem:[%s303_s13] sm:$0xff] %v2898_v13 }
 0x358 PF: > { %s19_s24 = sadd.s32 1, %s3652_s24  }
 0x359   : > { %p16_p2 = scmp.ge.s32.totalorder %s19_s24, 4  }
 0x35b   :  { %18 = sbr.rel (!%p16_p2) target bundleno = 2 (0x2), region = 87 }
 0x360   :  { %2919 = vsyncpa [#allocation3], 1 }
 0x361   :  { %2921 = vsyncpa [#allocation3 + $0x1], 1 }
 0x362   :  { %2922 = vsyncpa [#allocation5], 1 }

// kernel: transformer_forward.12
= control target key start
LH: loop header
LB: loop body
LE: loop exit
PB: predicated region body
PF: predicated region fallthrough
CT: control target
= control target key end

     0   :  { %s3555_s24 = smov 0   ;;  %s4447_s0 = inlined_call_operand.vmem [shape: f32[16,128], index: 0, kind: input, shape index: {}]   ;;  %s4448_s1 = inlined_call_operand.vmem [shape: f32[1,128], index: 1, kind: input, shape index: {}]   ;;  %s4449_s2 = inlined_call_operand.vmem [shape: f32[1,128], index: 2, kind: input, shape index: {}]   ;;  %s4450_s3 = inlined_call_operand.vmem [shape: bf16[128,2048], index: 3, kind: input, shape index: {}]   ;;  %s4451_s4 = inlined_call_operand.vmem [shape: f32[1,2048], index: 4, kind: input, shape index: {}]   ;;  %s4452_s5 = inlined_call_operand.vmem [shape: bf16[2048,128], index: 5, kind: input, shape index: {}]   ;;  %s4453_s6 = inlined_call_operand.vmem [shape: f32[1,128], index: 6, kind: input, shape index: {}]   ;;  %s4454_s7 = inlined_call_operand.vmem [shape: f32[16,128], index: 7, kind: output, shape index: {}]  }
   0x1 LB: > { %s2923_s25 = sadd.s32 4294967295, %s3512_s24   ;;  %p2927_p0 = scmp.ge.s32.totalorder %s3512_s24, 1  ;;  %s3512_s24 = sphi %s3555_s24, %s17_s24  }
   0x2   : > { %p236_p1 = scmp.lt.s32.totalorder %s3512_s24, 3 }
   0x4   : > { %p237_p2 = pnand %p2927_p0, %p236_p1 }
   0x5   : > { %p266_p3 = scmp.lt.s32.totalorder (!%p237_p2), %s2923_s25, 1 }
   0x6   : > { %240 = sbr.rel (%p237_p2) target bundleno = 825 (0x339), region = 48 }
   0xb   : > { %s4456_s25 = smov (!%p266_p3, %s2923_s25), 1  ;;  %v417_v1 = vld [vmem:[%s4450_s3 + $0x380] sm:$0xff]  ;;  %v418_v3 = vld [vmem:[%s4450_s3 + $0x388] sm:$0xff] }
   0xc   : > { %s2928_s26 = sshll.u32 %s4456_s25, 3  ;;  %v425_v2 = vld [vmem:[%s4450_s3 + $0x3c0] sm:$0xff]  ;;  %v426_v5 = vld [vmem:[%s4450_s3 + $0x3c8] sm:$0xff] }
   0xd   : > { %s269_s29 = scalar_lea.vmem %s4447_s0, %s2928_s26  ;;  %v3045_v4 = vcombine.high %v417_v1, %v425_v2  ;;  %v3044_v6 = vcombine.low %v417_v1, %v425_v2  ;;  %v401_v7 = vld [vmem:[%s4450_s3 + $0x300] sm:$0xff]  ;;  %v3047_v9 = vcombine.high %v418_v3, %v426_v5  ;;  %v3046_v10 = vcombine.low %v418_v3, %v426_v5  ;;  %v402_v12 = vld [vmem:[%s4450_s3 + $0x308] sm:$0xff]  ;;  %v419_v5 = vld [vmem:[%s4450_s3 + $0x390] sm:$0xff]  ;;  %s273_s11 = scalar_lea.vmem %s4454_s7, %s2928_s26 }
   0xe   : > { %v275_v0 = vld [vmem:[%s269_s29] sm:$0xff]  ;;  %v410_v13 = vld [vmem:[%s4450_s3 + $0x348] sm:$0xff] }
   0xf   : > { %278 = vadd.xlane.f32.xlu0 %v275_v0  ;;  %v409_v8 = vld [vmem:[%s4450_s3 + $0x340] sm:$0xff]  ;;  %1157 = vmatprep.subr.bf16.mxu0 %v3045_v4  ;;  %v3031_v14 = vcombine.high %v402_v12, %v410_v13  ;;  %v3030_v16 = vcombine.low %v402_v12, %v410_v13  ;;  %v386_v23 = vld [vmem:[%s4450_s3 + $0x288] sm:$0xff]  ;;  %v3514_v13 = vmov 0  }
  0x10   : > { %v3029_v11 = vcombine.high %v401_v7, %v409_v8  ;;  %1198 = vmatprep.subr.bf16.mxu1 %v3047_v9  ;;  %1158 = vmatpush1.bf16.msra.mxu0 %v3044_v6  ;;  %v3028_v15 = vcombine.low %v401_v7, %v409_v8  ;;  %v385_v21 = vld [vmem:[%s4450_s3 + $0x280] sm:$0xff]  ;;  %v394_v25 = vld [vmem:[%s4450_s3 + $0x2c8] sm:$0xff]  ;;  %v427_v6 = vld [vmem:[%s4450_s3 + $0x3d0] sm:$0xff] }
  0x11   : > { %1199 = vmatpush1.bf16.msra.mxu1 %v3046_v10  ;;  %v393_v22 = vld [vmem:[%s4450_s3 + $0x2c0] sm:$0xff]  ;;  %v3015_v26 = vcombine.high %v386_v23, %v394_v25  ;;  %v3014_v28 = vcombine.low %v386_v23, %v394_v25  ;;  %v370_v31 = vld [vmem:[%s4450_s3 + $0x208] sm:$0xff]  ;;  %v420_v7 = vld [vmem:[%s4450_s3 + $0x398] sm:$0xff]  ;;  %v3049_v8 = vcombine.high %v419_v5, %v427_v6  ;;  %v3048_v10 = vcombine.low %v419_v5, %v427_v6 }
  0x12   : > { %1159 = vmatprep.subr.bf16.mxu0 %v3029_v11  ;;  %1200 = vmatprep.subr.bf16.mxu1 %v3031_v14  ;;  %v3013_v24 = vcombine.high %v385_v21, %v393_v22  ;;  %v3012_v27 = vcombine.low %v385_v21, %v393_v22  ;;  %v369_v29 = vld [vmem:[%s4450_s3 + $0x200] sm:$0xff]  ;;  %v378_v33 = vld [vmem:[%s4450_s3 + $0x248] sm:$0xff]  ;;  %v428_v9 = vld [vmem:[%s4450_s3 + $0x3d8] sm:$0xff] }
  0x13   : > { %v377_v30 = vld [vmem:[%s4450_s3 + $0x240] sm:$0xff]  ;;  %v2999_v34 = vcombine.high %v370_v31, %v378_v33  ;;  %v2998_v36 = vcombine.low %v370_v31, %v378_v33  ;;  %v354_v39 = vld [vmem:[%s4450_s3 + $0x188] sm:$0xff]  ;;  %v3050_v11 = vcombine.low %v420_v7, %v428_v9  ;;  %v3051_v12 = vcombine.high %v420_v7, %v428_v9  ;;  %1189 = vmatprep.mubr.bf16.mxu0 %v3514_v13  ;;  %v403_v23 = vld [vmem:[%s4450_s3 + $0x310] sm:$0xff] }
  0x14   : > { %1160 = vmatpush1.bf16.msra.mxu0 %v3028_v15  ;;  %v2997_v32 = vcombine.high %v369_v29, %v377_v30  ;;  %v2996_v35 = vcombine.low %v369_v29, %v377_v30  ;;  %v353_v37 = vld [vmem:[%s4450_s3 + $0x180] sm:$0xff]  ;;  %v362_v41 = vld [vmem:[%s4450_s3 + $0x1c8] sm:$0xff]  ;;  %1230 = vmatprep.mubr.bf16.mxu1 %v3514_v13  ;;  %v404_v25 = vld [vmem:[%s4450_s3 + $0x318] sm:$0xff] }
  0x15   : > { %1201 = vmatpush1.bf16.msra.mxu1 %v3030_v16  ;;  %1161 = vmatprep.subr.bf16.mxu0 %v3013_v24  ;;  %v361_v38 = vld [vmem:[%s4450_s3 + $0x1c0] sm:$0xff]  ;;  %v2983_v42 = vcombine.high %v354_v39, %v362_v41  ;;  %v2982_v44 = vcombine.low %v354_v39, %v362_v41  ;;  %v338_v47 = vld [vmem:[%s4450_s3 + $0x108] sm:$0xff]  ;;  %v411_v24 = vld [vmem:[%s4450_s3 + $0x350] sm:$0xff] }
  0x16   : > { %1202 = vmatprep.subr.bf16.mxu1 %v3015_v26  ;;  %v2981_v40 = vcombine.high %v353_v37, %v361_v38  ;;  %v2980_v43 = vcombine.low %v353_v37, %v361_v38  ;;  %v337_v45 = vld [vmem:[%s4450_s3 + $0x100] sm:$0xff]  ;;  %v346_v49 = vld [vmem:[%s4450_s3 + $0x148] sm:$0xff]  ;;  %v387_v30 = vld [vmem:[%s4450_s3 + $0x290] sm:$0xff] }
  0x17   : > { %v345_v46 = vld [vmem:[%s4450_s3 + $0x140] sm:$0xff]  ;;  %v2967_v50 = vcombine.high %v338_v47, %v346_v49  ;;  %v2966_v52 = vcombine.low %v338_v47, %v346_v49  ;;  %v322_v55 = vld [vmem:[%s4450_s3 + $0x88] sm:$0xff]  ;;  %v395_v31 = vld [vmem:[%s4450_s3 + $0x2d0] sm:$0xff] }
  0x18   : > { %1162 = vmatpush1.bf16.msra.mxu0 %v3012_v27  ;;  %v2965_v48 = vcombine.high %v337_v45, %v345_v46  ;;  %v2964_v51 = vcombine.low %v337_v45, %v345_v46  ;;  %v321_v53 = vld [vmem:[%s4450_s3 + $0x80] sm:$0xff]  ;;  %v330_v57 = vld [vmem:[%s4450_s3 + $0xc8] sm:$0xff]  ;;  %v396_v33 = vld [vmem:[%s4450_s3 + $0x2d8] sm:$0xff] }
  0x19   : > { %1203 = vmatpush1.bf16.msra.mxu1 %v3014_v28  ;;  %1163 = vmatprep.subr.bf16.mxu0 %v2997_v32  ;;  %v329_v54 = vld [vmem:[%s4450_s3 + $0xc0] sm:$0xff]  ;;  %v2951_v58 = vcombine.high %v322_v55, %v330_v57  ;;  %v2950_v60 = vcombine.low %v322_v55, %v330_v57  ;;  %v306_v63 = vld [vmem:[%s4450_s3 + $0x8] sm:$0xff]  ;;  %v3033_v28 = vcombine.high %v403_v23, %v411_v24  ;;  %v388_v32 = vld [vmem:[%s4450_s3 + $0x298] sm:$0xff] }
  0x1a   : > { %1204 = vmatprep.subr.bf16.mxu1 %v2999_v34  ;;  %v2949_v56 = vcombine.high %v321_v53, %v329_v54  ;;  %v2948_v59 = vcombine.low %v321_v53, %v329_v54  ;;  %v305_v61 = vld [vmem:[%s4450_s3] sm:$0xff]  ;;  %v314_v1 = vld [vmem:[%s4450_s3 + $0x48] sm:$0xff]  ;;  %v3032_v34 = vcombine.low %v403_v23, %v411_v24  ;;  %v3019_v37 = vcombine.high %v388_v32, %v396_v33  ;;  %v371_v38 = vld [vmem:[%s4450_s3 + $0x210] sm:$0xff] }
  0x1b   : > { %v313_v62 = vld [vmem:[%s4450_s3 + $0x40] sm:$0xff]  ;;  %v2935_v2 = vcombine.high %v306_v63, %v314_v1  ;;  %v2934_v4 = vcombine.low %v306_v63, %v314_v1  ;;  %v379_v39 = vld [vmem:[%s4450_s3 + $0x250] sm:$0xff]  ;;  %v380_v41 = vld [vmem:[%s4450_s3 + $0x258] sm:$0xff] }
  0x1c   : > { %1164 = vmatpush1.bf16.msra.mxu0 %v2996_v35  ;;  %v2932_v3 = vcombine.low %v305_v61, %v313_v62  ;;  %v2931_v21 = vld [vmem:[%s4449_s2] ss:$0 sm:$0xff]  ;;  %v355_v46 = vld [vmem:[%s4450_s3 + $0x190] sm:$0xff]  ;;  %v364_v49 = vld [vmem:[%s4450_s3 + $0x1d8] sm:$0xff] }
  0x1d   : > { %1205 = vmatpush1.bf16.msra.mxu1 %v2998_v36  ;;  %1165 = vmatprep.subr.bf16.mxu0 %v2981_v40  ;;  %v3017_v36 = vcombine.high %v387_v30, %v395_v31  ;;  %v372_v40 = vld [vmem:[%s4450_s3 + $0x218] sm:$0xff]  ;;  %v363_v47 = vld [vmem:[%s4450_s3 + $0x1d0] sm:$0xff]  ;;  %v405_v24 = vld [vmem:[%s4450_s3 + $0x320] sm:$0xff] }
  0x1e   : > { %1206 = vmatprep.subr.bf16.mxu1 %v2983_v42  ;;  %v3016_v42 = vcombine.low %v387_v30, %v395_v31  ;;  %v3003_v45 = vcombine.high %v372_v40, %v380_v41  ;;  %v339_v54 = vld [vmem:[%s4450_s3 + $0x110] sm:$0xff]  ;;  %v348_v57 = vld [vmem:[%s4450_s3 + $0x158] sm:$0xff] }
  0x1f   : > { %v347_v55 = vld [vmem:[%s4450_s3 + $0x150] sm:$0xff]  ;;  %v332_v1 = vld [vmem:[%s4450_s3 + $0xd8] sm:$0xff] }
  0x20   : > { %1166 = vmatpush1.bf16.msra.mxu0 %v2980_v43  ;;  %v3018_v43 = vcombine.low %v388_v32, %v396_v33  ;;  %v331_v63 = vld [vmem:[%s4450_s3 + $0xd0] sm:$0xff]  ;;  %v316_v9 = vld [vmem:[%s4450_s3 + $0x58] sm:$0xff]  ;;  %v389_v32 = vld [vmem:[%s4450_s3 + $0x2a0] sm:$0xff] }
  0x21   : > { %1207 = vmatpush1.bf16.msra.mxu1 %v2982_v44  ;;  %1167 = vmatprep.subr.bf16.mxu0 %v2965_v48  ;;  %v3001_v44 = vcombine.high %v371_v38, %v379_v39  ;;  %v356_v48 = vld [vmem:[%s4450_s3 + $0x198] sm:$0xff]  ;;  %v307_v6 = vld [vmem:[%s4450_s3 + $0x10] sm:$0xff]  ;;  %v397_v33 = vld [vmem:[%s4450_s3 + $0x2e0] sm:$0xff] }
  0x22   : > { %1208 = vmatprep.subr.bf16.mxu1 %v2967_v50  ;;  %v3000_v50 = vcombine.low %v371_v38, %v379_v39  ;;  %v2987_v53 = vcombine.high %v356_v48, %v364_v49  ;;  %v315_v7 = vld [vmem:[%s4450_s3 + $0x50] sm:$0xff]  ;;  %v3021_v38 = vcombine.high %v389_v32, %v397_v33 }
  0x24   : > { %1168 = vmatpush1.bf16.msra.mxu0 %v2964_v51  ;;  %v3002_v51 = vcombine.low %v372_v40, %v380_v41  ;;  %v373_v40 = vld [vmem:[%s4450_s3 + $0x220] sm:$0xff] }
  0x25   : > { %1209 = vmatpush1.bf16.msra.mxu1 %v2966_v52  ;;  %1169 = vmatprep.subr.bf16.mxu0 %v2949_v56  ;;  %v2985_v52 = vcombine.high %v355_v46, %v363_v47  ;;  %v340_v56 = vld [vmem:[%s4450_s3 + $0x118] sm:$0xff]  ;;  %v381_v41 = vld [vmem:[%s4450_s3 + $0x260] sm:$0xff] }
  0x26   : > { %1210 = vmatprep.subr.bf16.mxu1 %v2951_v58  ;;  %v2984_v58 = vcombine.low %v355_v46, %v363_v47  ;;  %v3005_v46 = vcombine.high %v373_v40, %v381_v41 }
  0x28   : > { %1170 = vmatpush1.bf16.msra.mxu0 %v2948_v59  ;;  %v2986_v59 = vcombine.low %v356_v48, %v364_v49  ;;  %v357_v48 = vld [vmem:[%s4450_s3 + $0x1a0] sm:$0xff] }
  0x29   : > { %1211 = vmatpush1.bf16.msra.mxu1 %v2950_v60  ;;  %v2969_v60 = vcombine.high %v339_v54, %v347_v55  ;;  %v365_v49 = vld [vmem:[%s4450_s3 + $0x1e0] sm:$0xff] }
  0x2a   : > { %1212 = vmatprep.subr.bf16.mxu1 %v2935_v2  ;;  %v2968_v2 = vcombine.low %v339_v54, %v347_v55  ;;  %v2989_v54 = vcombine.high %v357_v48, %v365_v49 }
  0x2d   : > { %1213 = vmatpush1.bf16.msra.mxu1 %v2934_v4 }
  0x2e   : > { %1280 = vmatprep.subr.bf16.mxu1 %v3051_v12  ;;  %v2937_v12 = vcombine.high %v307_v6, %v315_v7 }
  0x98   : > { %v279_v17 = vpop.xlane.xlu0 %278 }
  0x99   : > { %v281_v18 = vmul.f32 0.0078125, %v279_v17 }
  0x9b   : > { %v3595_v19 = vsub.f32 %v275_v0, %v281_v18  ;;  %v2933_v0 = vcombine.high %v305_v61, %v313_v62  ;;  %v2930_v18 = vld [vmem:[%s4448_s1] ss:$0 sm:$0xff]  ;;  %v2971_v61 = vcombine.high %v340_v56, %v348_v57  ;;  %v323_v62 = vld [vmem:[%s4450_s3 + $0x90] sm:$0xff] }
  0x9c   : > { %v2953_v4 = vcombine.high %v323_v62, %v331_v63 }
  0x9d   : > { %v283_v20 = vmul.f32 %v3595_v19, %v3595_v19  ;;  %1171 = vmatprep.subr.bf16.mxu0 %v2933_v0  ;;  %v324_v0 = vld [vmem:[%s4450_s3 + $0x98] sm:$0xff] }
  0x9e   : > { %1172 = vmatpush1.bf16.msra.mxu0 %v2932_v3  ;;  %v2970_v3 = vcombine.low %v340_v56, %v348_v57  ;;  %v2955_v5 = vcombine.high %v324_v0, %v332_v1  ;;  %v341_v56 = vld [vmem:[%s4450_s3 + $0x120] sm:$0xff] }
  0x9f   : > { %284 = vadd.xlane.f32.xlu0 %v283_v20  ;;  %1239 = vmatprep.subr.bf16.mxu0 %v3049_v8  ;;  %v308_v8 = vld [vmem:[%s4450_s3 + $0x18] sm:$0xff]  ;;  %v349_v57 = vld [vmem:[%s4450_s3 + $0x160] sm:$0xff] }
 0x128   : > { %v285_v14 = vpop.xlane.xlu0 %284 }
 0x129   : > { %v286_v15 = vmul.f32 0.0078125, %v285_v14  ;;  %v2939_v14 = vcombine.high %v308_v8, %v316_v9 }
 0x12b   : > { %v287_v16 = vadd.f32 1e-05, %v286_v15  ;;  %v421_v15 = vld [vmem:[%s4450_s3 + $0x3a0] sm:$0xff] }
 0x12d   : > { %3504 = vrsqrt.f32 %v287_v16  ;;  %v429_v16 = vld [vmem:[%s4450_s3 + $0x3e0] sm:$0xff] }
 0x13a   : > { %v3505_v17 = vpop.eup %3504 }
 0x13b   : > { %v289_v20 = vmul.f32 %v3505_v17, %v3595_v19  ;;  %v412_v19 = vld [vmem:[%s4450_s3 + $0x358] sm:$0xff]  ;;  %v422_v17 = vld [vmem:[%s4450_s3 + $0x3a8] sm:$0xff] }
 0x13c   : > { %v3035_v29 = vcombine.high %v404_v25, %v412_v19  ;;  %v3034_v35 = vcombine.low %v404_v25, %v412_v19  ;;  %v413_v25 = vld [vmem:[%s4450_s3 + $0x360] sm:$0xff]  ;;  %v406_v19 = vld [vmem:[%s4450_s3 + $0x328] sm:$0xff] }
 0x13d   : > { %v296_v22 = vmul.f32 %v2930_v18, %v289_v20  ;;  %v430_v18 = vld [vmem:[%s4450_s3 + $0x3e8] sm:$0xff]  ;;  %v2936_v20 = vcombine.low %v307_v6, %v315_v7  ;;  %v3037_v30 = vcombine.high %v405_v24, %v413_v25 }
 0x13e   : > { %v3055_v23 = vcombine.high %v422_v17, %v430_v18 }
 0x13f   : > { %v303_v26 = vadd.f32 %v2931_v21, %v296_v22  ;;  %v2938_v21 = vcombine.low %v308_v8, %v316_v9  ;;  %v3053_v22 = vcombine.high %v421_v15, %v429_v16  ;;  %v309_v8 = vld [vmem:[%s4450_s3 + $0x20] sm:$0xff] }
 0x140   : > { %v317_v9 = vld [vmem:[%s4450_s3 + $0x60] sm:$0xff] }
 0x141   : > { %v3704_v27 = vpack.c.bf16 %v303_v26, %v303_v26  ;;  %v414_v26 = vld [vmem:[%s4450_s3 + $0x368] sm:$0xff] }
 0x142   : > { %v3039_v31 = vcombine.high %v406_v19, %v414_v26 }
 0x143   : > { %1190 = vmatmul.mubr.bf16.vlgmr.msra.gmra.mxu0 %v3704_v27  ;;  %1231 = vmatmul.mubr.bf16.vlgmr.msra.gmra.mxu1 %v3704_v27 }
 0x144   : > { %1240 = vmatpush1.bf16.msra.mxu0 %v3048_v10  ;;  %1281 = vmatpush1.bf16.msra.mxu1 %v3050_v11  ;;  %v2952_v10 = vcombine.low %v323_v62, %v331_v63  ;;  %v2954_v11 = vcombine.low %v324_v0, %v332_v1  ;;  %v2973_v62 = vcombine.high %v341_v56, %v349_v57  ;;  %v325_v0 = vld [vmem:[%s4450_s3 + $0xa0] sm:$0xff] }
 0x145   : > { %1241 = vmatprep.subr.bf16.mxu0 %v3033_v28  ;;  %1282 = vmatprep.subr.bf16.mxu1 %v3035_v29  ;;  %v3052_v28 = vcombine.low %v421_v15, %v429_v16  ;;  %v3054_v29 = vcombine.low %v422_v17, %v430_v18  ;;  %v333_v1 = vld [vmem:[%s4450_s3 + $0xe0] sm:$0xff]  ;;  %v2941_v15 = vcombine.high %v309_v8, %v317_v9  ;;  %v423_v17 = vld [vmem:[%s4450_s3 + $0x3b0] sm:$0xff] }
 0x146   : > { %1271 = vmatprep.mubr.bf16.mxu0 %v3514_v13  ;;  %1312 = vmatprep.mubr.bf16.mxu1 %v3514_v13  ;;  %v2957_v6 = vcombine.high %v325_v0, %v333_v1  ;;  %v431_v18 = vld [vmem:[%s4450_s3 + $0x3f0] sm:$0xff] }
 0x148   : > { %1242 = vmatpush1.bf16.msra.mxu0 %v3032_v34  ;;  %1283 = vmatpush1.bf16.msra.mxu1 %v3034_v35  ;;  %v390_v34 = vld [vmem:[%s4450_s3 + $0x2a8] sm:$0xff] }
 0x149   : > { %1243 = vmatprep.subr.bf16.mxu0 %v3017_v36  ;;  %1284 = vmatprep.subr.bf16.mxu1 %v3019_v37  ;;  %v398_v35 = vld [vmem:[%s4450_s3 + $0x2e8] sm:$0xff]  ;;  %v3036_v36 = vcombine.low %v405_v24, %v413_v25  ;;  %v3038_v37 = vcombine.low %v406_v19, %v414_v26  ;;  %v3057_v24 = vcombine.high %v423_v17, %v431_v18  ;;  %v407_v19 = vld [vmem:[%s4450_s3 + $0x330] sm:$0xff] }
 0x14a   : > { %v3023_v39 = vcombine.high %v390_v34, %v398_v35  ;;  %v415_v26 = vld [vmem:[%s4450_s3 + $0x370] sm:$0xff] }
 0x14c   : > { %1244 = vmatpush1.bf16.msra.mxu0 %v3016_v42  ;;  %1285 = vmatpush1.bf16.msra.mxu1 %v3018_v43  ;;  %v374_v42 = vld [vmem:[%s4450_s3 + $0x228] sm:$0xff] }
 0x14d   : > { %1245 = vmatprep.subr.bf16.mxu0 %v3001_v44  ;;  %1286 = vmatprep.subr.bf16.mxu1 %v3003_v45  ;;  %v382_v43 = vld [vmem:[%s4450_s3 + $0x268] sm:$0xff]  ;;  %v3020_v44 = vcombine.low %v389_v32, %v397_v33  ;;  %v3022_v45 = vcombine.low %v390_v34, %v398_v35  ;;  %v3041_v32 = vcombine.high %v407_v19, %v415_v26  ;;  %v391_v34 = vld [vmem:[%s4450_s3 + $0x2b0] sm:$0xff] }
 0x14e   : > { %v3007_v47 = vcombine.high %v374_v42, %v382_v43  ;;  %v399_v35 = vld [vmem:[%s4450_s3 + $0x2f0] sm:$0xff] }
 0x150   : > { %1246 = vmatpush1.bf16.msra.mxu0 %v3000_v50  ;;  %1287 = vmatpush1.bf16.msra.mxu1 %v3002_v51  ;;  %v358_v50 = vld [vmem:[%s4450_s3 + $0x1a8] sm:$0xff] }
 0x151   : > { %1247 = vmatprep.subr.bf16.mxu0 %v2985_v52  ;;  %1288 = vmatprep.subr.bf16.mxu1 %v2987_v53  ;;  %v366_v51 = vld [vmem:[%s4450_s3 + $0x1e8] sm:$0xff]  ;;  %v3004_v52 = vcombine.low %v373_v40, %v381_v41  ;;  %v3006_v53 = vcombine.low %v374_v42, %v382_v43  ;;  %v3025_v40 = vcombine.high %v391_v34, %v399_v35  ;;  %v375_v42 = vld [vmem:[%s4450_s3 + $0x230] sm:$0xff] }
 0x152   : > { %v2991_v55 = vcombine.high %v358_v50, %v366_v51  ;;  %v383_v43 = vld [vmem:[%s4450_s3 + $0x270] sm:$0xff] }
 0x154   : > { %1248 = vmatpush1.bf16.msra.mxu0 %v2984_v58  ;;  %1289 = vmatpush1.bf16.msra.mxu1 %v2986_v59  ;;  %v342_v58 = vld [vmem:[%s4450_s3 + $0x128] sm:$0xff] }
 0x155   : > { %1249 = vmatprep.subr.bf16.mxu0 %v2969_v60  ;;  %1290 = vmatprep.subr.bf16.mxu1 %v2971_v61  ;;  %v350_v59 = vld [vmem:[%s4450_s3 + $0x168] sm:$0xff]  ;;  %v2988_v60 = vcombine.low %v357_v48, %v365_v49  ;;  %v2990_v61 = vcombine.low %v358_v50, %v366_v51  ;;  %v3009_v48 = vcombine.high %v375_v42, %v383_v43  ;;  %v359_v50 = vld [vmem:[%s4450_s3 + $0x1b0] sm:$0xff] }
 0x156   : > { %v2975_v63 = vcombine.high %v342_v58, %v350_v59  ;;  %v367_v51 = vld [vmem:[%s4450_s3 + $0x1f0] sm:$0xff] }
 0x158   : > { %1250 = vmatpush1.bf16.msra.mxu0 %v2968_v2  ;;  %1291 = vmatpush1.bf16.msra.mxu1 %v2970_v3  ;;  %v326_v2 = vld [vmem:[%s4450_s3 + $0xa8] sm:$0xff] }
 0x159   : > { %1251 = vmatprep.subr.bf16.mxu0 %v2953_v4  ;;  %1292 = vmatprep.subr.bf16.mxu1 %v2955_v5  ;;  %v334_v3 = vld [vmem:[%s4450_s3 + $0xe8] sm:$0xff]  ;;  %v2972_v4 = vcombine.low %v341_v56, %v349_v57  ;;  %v2974_v5 = vcombine.low %v342_v58, %v350_v59  ;;  %v343_v57 = vld [vmem:[%s4450_s3 + $0x130] sm:$0xff]  ;;  %v344_v59 = vld [vmem:[%s4450_s3 + $0x138] sm:$0xff] }
 0x15a   : > { %v2959_v7 = vcombine.high %v326_v2, %v334_v3  ;;  %v351_v58 = vld [vmem:[%s4450_s3 + $0x170] sm:$0xff] }
 0x15c   : > { %1252 = vmatpush1.bf16.msra.mxu0 %v2952_v10  ;;  %1293 = vmatpush1.bf16.msra.mxu1 %v2954_v11  ;;  %v310_v10 = vld [vmem:[%s4450_s3 + $0x28] sm:$0xff] }
 0x15d   : > { %1253 = vmatprep.subr.bf16.mxu0 %v2937_v12  ;;  %1294 = vmatprep.subr.bf16.mxu1 %v2939_v14  ;;  %v318_v11 = vld [vmem:[%s4450_s3 + $0x68] sm:$0xff]  ;;  %v2956_v12 = vcombine.low %v325_v0, %v333_v1  ;;  %v2958_v14 = vcombine.low %v326_v2, %v334_v3  ;;  %v327_v1 = vld [vmem:[%s4450_s3 + $0xb0] sm:$0xff]  ;;  %v328_v3 = vld [vmem:[%s4450_s3 + $0xb8] sm:$0xff] }
 0x15e   : > { %v2943_v16 = vcombine.high %v310_v10, %v318_v11  ;;  %v335_v2 = vld [vmem:[%s4450_s3 + $0xf0] sm:$0xff] }
 0x160   : > { %1254 = vmatpush1.bf16.msra.mxu0 %v2936_v20  ;;  %1295 = vmatpush1.bf16.msra.mxu1 %v2938_v21  ;;  %v424_v20 = vld [vmem:[%s4450_s3 + $0x3b8] sm:$0xff] }
 0x161   : > { %1321 = vmatprep.subr.bf16.mxu0 %v3053_v22  ;;  %1362 = vmatprep.subr.bf16.mxu1 %v3055_v23  ;;  %v432_v21 = vld [vmem:[%s4450_s3 + $0x3f8] sm:$0xff]  ;;  %v2940_v22 = vcombine.low %v309_v8, %v317_v9  ;;  %v2942_v23 = vcombine.low %v310_v10, %v318_v11  ;;  %v311_v9 = vld [vmem:[%s4450_s3 + $0x30] sm:$0xff] }
 0x162   : > { %v3059_v25 = vcombine.high %v424_v20, %v432_v21  ;;  %v319_v10 = vld [vmem:[%s4450_s3 + $0x70] sm:$0xff]  ;;  %v312_v11 = vld [vmem:[%s4450_s3 + $0x38] sm:$0xff] }
 0x163   : > { %1272 = vmatmul.mubr.bf16.vlgmr.msra.gmra.mxu0 %v3704_v27  ;;  %1313 = vmatmul.mubr.bf16.vlgmr.msra.gmra.mxu1 %v3704_v27 }
 0x164   : > { %1322 = vmatpush1.bf16.msra.mxu0 %v3052_v28  ;;  %1363 = vmatpush1.bf16.msra.mxu1 %v3054_v29  ;;  %v408_v28 = vld [vmem:[%s4450_s3 + $0x338] sm:$0xff] }
 0x165   : > { %1323 = vmatprep.subr.bf16.mxu0 %v3037_v30  ;;  %1364 = vmatprep.subr.bf16.mxu1 %v3039_v31  ;;  %v416_v29 = vld [vmem:[%s4450_s3 + $0x378] sm:$0xff]  ;;  %v3056_v30 = vcombine.low %v423_v17, %v431_v18  ;;  %v3058_v31 = vcombine.low %v424_v20, %v432_v21  ;;  %v2944_v18 = vcombine.low %v311_v9, %v319_v10 }
 0x166   : > { %1353 = vmatprep.mubr.bf16.mxu0 %v3514_v13  ;;  %1394 = vmatprep.mubr.bf16.mxu1 %v3514_v13  ;;  %v3043_v33 = vcombine.high %v408_v28, %v416_v29  ;;  %v3376_v21 = vld [vmem:[%s4452_s5 + $0x78] sm:$0xff]  }
 0x168   : > { %1324 = vmatpush1.bf16.msra.mxu0 %v3036_v36  ;;  %1365 = vmatpush1.bf16.msra.mxu1 %v3038_v37  ;;  %v392_v36 = vld [vmem:[%s4450_s3 + $0x2b8] sm:$0xff] }
 0x169   : > { %1325 = vmatprep.subr.bf16.mxu0 %v3021_v38  ;;  %1366 = vmatprep.subr.bf16.mxu1 %v3023_v39  ;;  %v400_v37 = vld [vmem:[%s4450_s3 + $0x2f8] sm:$0xff]  ;;  %v3040_v38 = vcombine.low %v407_v19, %v415_v26  ;;  %v3042_v39 = vcombine.low %v408_v28, %v416_v29  ;;  %v3381_v19 = vld [vmem:[%s4452_s5 + $0xf0] sm:$0xff]   ;;  %v3384_v29 = vld [vmem:[%s4452_s5 + $0x68] sm:$0xff]  }
 0x16a   : > { %v3027_v41 = vcombine.high %v392_v36, %v400_v37  ;;  %v3382_v26 = vld [vmem:[%s4452_s5 + $0x30] sm:$0xff]  }
 0x16b   : > { %v3383_v28 = vld [vmem:[%s4452_s5 + $0xb0] sm:$0xff]  }
 0x16c   : > { %1326 = vmatpush1.bf16.msra.mxu0 %v3020_v44  ;;  %1367 = vmatpush1.bf16.msra.mxu1 %v3022_v45  ;;  %v376_v44 = vld [vmem:[%s4450_s3 + $0x238] sm:$0xff] }
 0x16d   : > { %1327 = vmatprep.subr.bf16.mxu0 %v3005_v46  ;;  %1368 = vmatprep.subr.bf16.mxu1 %v3007_v47  ;;  %v384_v45 = vld [vmem:[%s4450_s3 + $0x278] sm:$0xff]  ;;  %v3024_v46 = vcombine.low %v391_v34, %v399_v35  ;;  %v3026_v47 = vcombine.low %v392_v36, %v400_v37  ;;  %v3390_v34 = vld [vmem:[%s4452_s5 + $0x20] sm:$0xff]  }
 0x16e   : > { %v3011_v49 = vcombine.high %v376_v44, %v384_v45  ;;  %v3391_v35 = vld [vmem:[%s4452_s5 + $0xa0] sm:$0xff]   ;;  %v3392_v36 = vld [vmem:[%s4452_s5 + $0x58] sm:$0xff]  }
 0x16f   : > { %v3393_v37 = vld [vmem:[%s4452_s5 + $0xd8] sm:$0xff]  }
 0x170   : > { %1328 = vmatpush1.bf16.msra.mxu0 %v3004_v52  ;;  %1369 = vmatpush1.bf16.msra.mxu1 %v3006_v53  ;;  %v368_v52 = vld [vmem:[%s4450_s3 + $0x1f8] sm:$0xff]  ;;  %v3008_v53 = vcombine.low %v375_v42, %v383_v43  ;;  %v3398_v42 = vld [vmem:[%s4452_s5 + $0x10] sm:$0xff]  }
 0x171   : > { %1329 = vmatprep.subr.bf16.mxu0 %v2989_v54  ;;  %1370 = vmatprep.subr.bf16.mxu1 %v2991_v55  ;;  %v3010_v54 = vcombine.low %v376_v44, %v384_v45  ;;  %v2993_v55 = vcombine.high %v359_v50, %v367_v51  ;;  %v3399_v43 = vld [vmem:[%s4452_s5 + $0x90] sm:$0xff]   ;;  %v3400_v44 = vld [vmem:[%s4452_s5 + $0x48] sm:$0xff]  }
 0x172   : > { %v3401_v45 = vld [vmem:[%s4452_s5 + $0xc8] sm:$0xff]  }
 0x174   : > { %1330 = vmatpush1.bf16.msra.mxu0 %v2988_v60  ;;  %1371 = vmatpush1.bf16.msra.mxu1 %v2990_v61  ;;  %v352_v60 = vld [vmem:[%s4450_s3 + $0x178] sm:$0xff]  ;;  %v2992_v61 = vcombine.low %v359_v50, %v367_v51  ;;  %v3406_v50 = vld [vmem:[%s4452_s5] sm:$0xff]  }
 0x175   : > { %1331 = vmatprep.subr.bf16.mxu0 %v2973_v62  ;;  %1372 = vmatprep.subr.bf16.mxu1 %v2975_v63  ;;  %v2977_v63 = vcombine.high %v343_v57, %v351_v58  ;;  %v2979_v0 = vcombine.high %v344_v59, %v352_v60  ;;  %v3407_v51 = vld [vmem:[%s4452_s5 + $0x80] sm:$0xff]  }
 0x178   : > { %1332 = vmatpush1.bf16.msra.mxu0 %v2972_v4  ;;  %1373 = vmatpush1.bf16.msra.mxu1 %v2974_v5  ;;  %v336_v4 = vld [vmem:[%s4450_s3 + $0xf8] sm:$0xff]  ;;  %v2976_v5 = vcombine.low %v343_v57, %v351_v58  ;;  %v4093_v57 = vld [vmem:[%s4451_s4] sm:$0xff] }
 0x179   : > { %1333 = vmatprep.subr.bf16.mxu0 %v2957_v6  ;;  %1374 = vmatprep.subr.bf16.mxu1 %v2959_v7  ;;  %v2978_v6 = vcombine.low %v344_v59, %v352_v60  ;;  %v2961_v7 = vcombine.high %v327_v1, %v335_v2  ;;  %v2963_v8 = vcombine.high %v328_v3, %v336_v4 }
 0x17c   : > { %1334 = vmatpush1.bf16.msra.mxu0 %v2956_v12  ;;  %1375 = vmatpush1.bf16.msra.mxu1 %v2958_v14  ;;  %v320_v12 = vld [vmem:[%s4450_s3 + $0x78] sm:$0xff]  ;;  %v2960_v14 = vcombine.low %v327_v1, %v335_v2 }
 0x17d   : > { %1335 = vmatprep.subr.bf16.mxu0 %v2941_v15  ;;  %1376 = vmatprep.subr.bf16.mxu1 %v2943_v16  ;;  %v2962_v15 = vcombine.low %v328_v3, %v336_v4  ;;  %v2945_v16 = vcombine.high %v311_v9, %v319_v10  ;;  %v2947_v17 = vcombine.high %v312_v11, %v320_v12 }
 0x17e   : > { %v2946_v20 = vcombine.low %v312_v11, %v320_v12 }
 0x180   : > { %1336 = vmatpush1.bf16.msra.mxu0 %v2940_v22  ;;  %1377 = vmatpush1.bf16.msra.mxu1 %v2942_v23  ;;  %v3377_v22 = vld [vmem:[%s4452_s5 + $0xf8] sm:$0xff]  }
 0x181   : > { %1403 = vmatprep.subr.bf16.mxu0 %v3057_v24  ;;  %1444 = vmatprep.subr.bf16.mxu1 %v3059_v25  ;;  %v3378_v23 = vld [vmem:[%s4452_s5 + $0x38] sm:$0xff]   ;;  %v3380_v25 = vld [vmem:[%s4452_s5 + $0x70] sm:$0xff]  }
 0x182   : > { %v3379_v24 = vld [vmem:[%s4452_s5 + $0xb8] sm:$0xff]  }
 0x183   : > { %1354 = vmatmul.mubr.bf16.vlgmr.msra.gmra.mxu0 %v3704_v27  ;;  %1395 = vmatmul.mubr.bf16.vlgmr.msra.gmra.mxu1 %v3704_v27 }
 0x184   : > { %1404 = vmatpush1.bf16.msra.mxu0 %v3056_v30  ;;  %1445 = vmatpush1.bf16.msra.mxu1 %v3058_v31  ;;  %v3386_v30 = vld [vmem:[%s4452_s5 + $0x28] sm:$0xff]  }
 0x185   : > { %1405 = vmatprep.subr.bf16.mxu0 %v3041_v32  ;;  %1446 = vmatprep.subr.bf16.mxu1 %v3043_v33  ;;  %v3387_v31 = vld [vmem:[%s4452_s5 + $0xa8] sm:$0xff]   ;;  %v3388_v32 = vld [vmem:[%s4452_s5 + $0x60] sm:$0xff]  }
 0x186   : > { %1435 = vmatprep.mubr.bf16.mxu0 %v3514_v13  ;;  %1476 = vmatprep.mubr.bf16.mxu1 %v3514_v13  ;;  %v360_v13 = vld [vmem:[%s4450_s3 + $0x1b8] sm:$0xff]  ;;  %v3389_v33 = vld [vmem:[%s4452_s5 + $0xe0] sm:$0xff]  }
 0x187   : > { %v2995_v56 = vcombine.high %v360_v13, %v368_v52  ;;  %v2994_v62 = vcombine.low %v360_v13, %v368_v52  ;;  %v3408_v13 = vld [vmem:[%s4452_s5 + $0x178] sm:$0xff]  }
 0x188   : > { %1406 = vmatpush1.bf16.msra.mxu0 %v3040_v38  ;;  %1447 = vmatpush1.bf16.msra.mxu1 %v3042_v39  ;;  %v3394_v38 = vld [vmem:[%s4452_s5 + $0x18] sm:$0xff]  }
 0x189   : > { %1407 = vmatprep.subr.bf16.mxu0 %v3025_v40  ;;  %1448 = vmatprep.subr.bf16.mxu1 %v3027_v41  ;;  %v3395_v39 = vld [vmem:[%s4452_s5 + $0x98] sm:$0xff]   ;;  %v3396_v40 = vld [vmem:[%s4452_s5 + $0x50] sm:$0xff]  }
 0x18a   : > { %v3397_v41 = vld [vmem:[%s4452_s5 + $0xd0] sm:$0xff]   ;;  %v3409_v52 = vld [vmem:[%s4452_s5 + $0x1f8] sm:$0xff]  }
 0x18c   : > { %1408 = vmatpush1.bf16.msra.mxu0 %v3024_v46  ;;  %1449 = vmatpush1.bf16.msra.mxu1 %v3026_v47  ;;  %v3402_v46 = vld [vmem:[%s4452_s5 + $0x8] sm:$0xff]  }
 0x18d   : > { %1409 = vmatprep.subr.bf16.mxu0 %v3009_v48  ;;  %1450 = vmatprep.subr.bf16.mxu1 %v3011_v49  ;;  %v3403_v47 = vld [vmem:[%s4452_s5 + $0x88] sm:$0xff]   ;;  %v3404_v48 = vld [vmem:[%s4452_s5 + $0x40] sm:$0xff]  }
 0x18e   : > { %v3405_v49 = vld [vmem:[%s4452_s5 + $0xc0] sm:$0xff]  }
 0x190   : > { %1410 = vmatpush1.bf16.msra.mxu0 %v3008_v53  ;;  %1451 = vmatpush1.bf16.msra.mxu1 %v3010_v54  ;;  %v437_v53 = vlaneseq }
 0x191   : > { %1411 = vmatprep.subr.bf16.mxu0 %v2993_v55  ;;  %1452 = vmatprep.subr.bf16.mxu1 %v2995_v56 }
 0x192   : > { %v4086_v54 = vshrl.u32 %v437_v53, 7  ;;  %v3435_v53 = vld [vmem:[%s4452_s5 + $0x188] sm:$0xff]  }
 0x194   : > { %1412 = vmatpush1.bf16.msra.mxu0 %v2992_v61  ;;  %1453 = vmatpush1.bf16.msra.mxu1 %v2994_v62  ;;  %v439_v55 = vsub.s32 0, %v4086_v54  ;;  %v447_v56 = vsub.s32 2, %v4086_v54  ;;  %v443_v58 = vsub.s32 1, %v4086_v54  ;;  %v451_v59 = vsub.s32 3, %v4086_v54 }
 0x195   : > { %1413 = vmatprep.subr.bf16.mxu0 %v2977_v63  ;;  %1454 = vmatprep.subr.bf16.mxu1 %v2979_v0 }
 0x196   : > { %v440_v60 = vrot.slane %v4093_v57, %v439_v55  ;;  %v448_v61 = vrot.slane %v4093_v57, %v447_v56  ;;  %v444_v62 = vrot.slane %v4093_v57, %v443_v58  ;;  %v452_v63 = vrot.slane %v4093_v57, %v451_v59 }
 0x198   : > { %1414 = vmatpush1.bf16.msra.mxu0 %v2976_v5  ;;  %1455 = vmatpush1.bf16.msra.mxu1 %v2978_v6 }
 0x199   : > { %1415 = vmatprep.subr.bf16.mxu0 %v2961_v7  ;;  %1456 = vmatprep.subr.bf16.mxu1 %v2963_v8 }
 0x19c   : > { %1416 = vmatpush1.bf16.msra.mxu0 %v2960_v14  ;;  %1457 = vmatpush1.bf16.msra.mxu1 %v2962_v15 }
 0x19d   : > { %1417 = vmatprep.subr.bf16.mxu0 %v2945_v16  ;;  %1458 = vmatprep.subr.bf16.mxu1 %v2947_v17 }
 0x1a0   : > { %1418 = vmatpush1.bf16.msra.mxu0 %v2944_v18  ;;  %1459 = vmatpush1.bf16.msra.mxu1 %v2946_v20  ;;  %v3410_v20 = vld [vmem:[%s4452_s5 + $0x138] sm:$0xff]  }
 0x1a1   : > { %3191 = vmatprep.subr.bf16.mxu0 %v3376_v21  ;;  %3213 = vmatprep.subr.bf16.mxu1 %v3377_v22  ;;  %v3411_v21 = vld [vmem:[%s4452_s5 + $0x1b8] sm:$0xff]  }
 0x1a3   : > { %1436 = vmatmul.mubr.bf16.vlgmr.msra.gmra.mxu0 %v3704_v27  ;;  %1477 = vmatmul.mubr.bf16.vlgmr.msra.gmra.mxu1 %v3704_v27  ;;  %v3385_v27 = vld [vmem:[%s4452_s5 + $0xe8] sm:$0xff]  }
 0x1a4   : > { %3192 = vmatpush3.bf16.msra.mxu0 %v3378_v23  ;;  %3214 = vmatpush3.bf16.msra.mxu1 %v3379_v24  ;;  %v3412_v24 = vld [vmem:[%s4452_s5 + $0x170] sm:$0xff]  }
 0x1a5   : > { %3193 = vmatprep.subr.bf16.mxu0 %v3380_v25  ;;  %3215 = vmatprep.subr.bf16.mxu1 %v3381_v19  ;;  %v3413_v25 = vld [vmem:[%s4452_s5 + $0x1f0] sm:$0xff]  }
 0x1a6   : > { %v3414_v19 = vld [vmem:[%s4452_s5 + $0x130] sm:$0xff]  }
 0x1a8   : > { %3194 = vmatpush3.bf16.msra.mxu0 %v3382_v26  ;;  %3216 = vmatpush3.bf16.msra.mxu1 %v3383_v28  ;;  %v3415_v26 = vld [vmem:[%s4452_s5 + $0x1b0] sm:$0xff]   ;;  %v3416_v28 = vld [vmem:[%s4452_s5 + $0x168] sm:$0xff]  }
 0x1a9   : > { %3195 = vmatprep.subr.bf16.mxu0 %v3384_v29  ;;  %3217 = vmatprep.subr.bf16.mxu1 %v3385_v27  ;;  %v3417_v29 = vld [vmem:[%s4452_s5 + $0x1e8] sm:$0xff]  }
 0x1aa   : > { %v3418_v27 = vld [vmem:[%s4452_s5 + $0x128] sm:$0xff]  }
 0x1ac   : > { %3196 = vmatpush3.bf16.msra.mxu0 %v3386_v30  ;;  %3218 = vmatpush3.bf16.msra.mxu1 %v3387_v31  ;;  %v3419_v30 = vld [vmem:[%s4452_s5 + $0x1a8] sm:$0xff]   ;;  %v3420_v31 = vld [vmem:[%s4452_s5 + $0x160] sm:$0xff]  }
 0x1ad   : > { %3197 = vmatprep.subr.bf16.mxu0 %v3388_v32  ;;  %3219 = vmatprep.subr.bf16.mxu1 %v3389_v33  ;;  %v3421_v32 = vld [vmem:[%s4452_s5 + $0x1e0] sm:$0xff]  }
 0x1ae   : > { %v3422_v33 = vld [vmem:[%s4452_s5 + $0x120] sm:$0xff]  }
 0x1b0   : > { %3198 = vmatpush3.bf16.msra.mxu0 %v3390_v34  ;;  %3220 = vmatpush3.bf16.msra.mxu1 %v3391_v35  ;;  %v3423_v34 = vld [vmem:[%s4452_s5 + $0x1a0] sm:$0xff]   ;;  %v3424_v35 = vld [vmem:[%s4452_s5 + $0x158] sm:$0xff]  }
 0x1b1   : > { %3199 = vmatprep.subr.bf16.mxu0 %v3392_v36  ;;  %3221 = vmatprep.subr.bf16.mxu1 %v3393_v37  ;;  %v3425_v36 = vld [vmem:[%s4452_s5 + $0x1d8] sm:$0xff]  }
 0x1b2   : > { %v3426_v37 = vld [vmem:[%s4452_s5 + $0x118] sm:$0xff]  }
 0x1b4   : > { %3200 = vmatpush3.bf16.msra.mxu0 %v3394_v38  ;;  %3222 = vmatpush3.bf16.msra.mxu1 %v3395_v39  ;;  %v3427_v38 = vld [vmem:[%s4452_s5 + $0x198] sm:$0xff]   ;;  %v3428_v39 = vld [vmem:[%s4452_s5 + $0x150] sm:$0xff]  }
 0x1b5   : > { %3201 = vmatprep.subr.bf16.mxu0 %v3396_v40  ;;  %3223 = vmatprep.subr.bf16.mxu1 %v3397_v41  ;;  %v3429_v40 = vld [vmem:[%s4452_s5 + $0x1d0] sm:$0xff]   ;;  %v455_v41 = vsub.s32 4, %v4086_v54 }
 0x1b8   : > { %3202 = vmatpush3.bf16.msra.mxu0 %v3398_v42  ;;  %3224 = vmatpush3.bf16.msra.mxu1 %v3399_v43  ;;  %v463_v42 = vsub.s32 6, %v4086_v54  ;;  %v3430_v43 = vld [vmem:[%s4452_s5 + $0x110] sm:$0xff]  }
 0x1b9   : > { %3203 = vmatprep.subr.bf16.mxu0 %v3400_v44  ;;  %3225 = vmatprep.subr.bf16.mxu1 %v3401_v45  ;;  %v3431_v44 = vld [vmem:[%s4452_s5 + $0x190] sm:$0xff]   ;;  %v459_v45 = vsub.s32 5, %v4086_v54 }
 0x1bc   : > { %3204 = vmatpush3.bf16.msra.mxu0 %v3402_v46  ;;  %3226 = vmatpush3.bf16.msra.mxu1 %v3403_v47  ;;  %v467_v46 = vsub.s32 7, %v4086_v54  ;;  %v3432_v47 = vld [vmem:[%s4452_s5 + $0x148] sm:$0xff]   ;;  %v3501_v54 = vld [vmem:[%s4452_s5 + $0x3c0] sm:$0xff]  }
 0x1bd   : > { %3205 = vmatprep.subr.bf16.mxu0 %v3404_v48  ;;  %3227 = vmatprep.subr.bf16.mxu1 %v3405_v49  ;;  %v3433_v48 = vld [vmem:[%s4452_s5 + $0x1c8] sm:$0xff]   ;;  %v456_v49 = vrot.slane %v4093_v57, %v455_v41 }
 0x1c0   : > { %3206 = vmatpush3.bf16.msra.mxu0 %v3406_v50  ;;  %3228 = vmatpush3.bf16.msra.mxu1 %v3407_v51  ;;  %v464_v50 = vrot.slane %v4093_v57, %v463_v42  ;;  %v460_v51 = vrot.slane %v4093_v57, %v459_v45 }
 0x1c1   : > { %3235 = vmatprep.subr.bf16.mxu0 %v3408_v13  ;;  %3257 = vmatprep.subr.bf16.mxu1 %v3409_v52  ;;  %v468_v13 = vrot.slane %v4093_v57, %v467_v46  ;;  %v3434_v52 = vld [vmem:[%s4452_s5 + $0x108] sm:$0xff]   ;;  %v3437_v57 = vld [vmem:[%s4452_s5 + $0x1c0] sm:$0xff]  }
 0x203   : > { %v1191_v0 = vpop.f32.mrf.mxu0  ;;  %v1232_v1 = vpop.f32.mrf.mxu1 }
 0x204   : > { %v1192_v2 = vadd.f32 %v1191_v0, %v440_v60  ;;  %v1233_v3 = vadd.f32 %v1232_v1, %v448_v61 }
 0x205   : > { %v1193_v4 = vpop.f32.mrf.mxu0  ;;  %v1234_v5 = vpop.f32.mrf.mxu1 }
 0x206   : > { %v1194_v6 = vadd.f32 %v1193_v4, %v444_v62  ;;  %v1235_v7 = vadd.f32 %v1234_v5, %v452_v63  ;;  %v1485_v8 = vmax.f32 %v1192_v2, 0.0  ;;  %v1487_v9 = vmax.f32 %v1233_v3, 0.0  ;;  %v3436_v62 = vld [vmem:[%s4452_s5 + $0x140] sm:$0xff]  }
 0x207   : > { %v1195_v10 = vpop.f32.mrf.mxu0  ;;  %v1236_v11 = vpop.f32.mrf.mxu1  ;;  %v3438_v5 = vld [vmem:[%s4452_s5 + $0x100] sm:$0xff]  }
 0x208   : > { %v1486_v12 = vmax.f32 %v1194_v6, 0.0  ;;  %v1488_v14 = vmax.f32 %v1235_v7, 0.0  ;;  %v1501_v22 = vpack.c.bf16 %v1485_v8, %v1485_v8  ;;  %v1503_v23 = vpack.c.bf16 %v1487_v9, %v1487_v9  ;;  %v3439_v6 = vld [vmem:[%s4452_s5 + $0x180] sm:$0xff]   ;;  %v3440_v11 = vld [vmem:[%s4452_s5 + $0x278] sm:$0xff]  }
 0x209   : > { %v1196_v15 = vpop.f32.mrf.mxu0  ;;  %v1237_v16 = vpop.f32.mrf.mxu1 }
 0x20a   : > { %v1502_v17 = vpack.c.bf16 %v1486_v12, %v1486_v12  ;;  %v1504_v18 = vpack.c.bf16 %v1488_v14, %v1488_v14  ;;  %v3441_v12 = vld [vmem:[%s4452_s5 + $0x2f8] sm:$0xff]  }
 0x20c   : > { %2580 = vmatprep.mubr.bf16.mxu0 %v1502_v17  ;;  %2620 = vmatprep.mubr.bf16.mxu1 %v1504_v18 }
 0x20d   : > { %2581 = vmatmul.mubr.bf16.vlgmr.msra.gmra.mxu0 %v1501_v22  ;;  %2621 = vmatmul.mubr.bf16.vlgmr.msra.gmra.mxu1 %v1503_v23  ;;  %v3443_v22 = vld [vmem:[%s4452_s5 + $0x2b8] sm:$0xff]  }
 0x20e   : > { %3236 = vmatpush3.bf16.msra.mxu0 %v3410_v20  ;;  %3258 = vmatpush3.bf16.msra.mxu1 %v3411_v21  ;;  %v3442_v21 = vld [vmem:[%s4452_s5 + $0x238] sm:$0xff]  }
 0x20f   : > { %3237 = vmatprep.subr.bf16.mxu0 %v3412_v24  ;;  %3259 = vmatprep.subr.bf16.mxu1 %v3413_v25  ;;  %v3444_v25 = vld [vmem:[%s4452_s5 + $0x270] sm:$0xff]  }
 0x212   : > { %3238 = vmatpush3.bf16.msra.mxu0 %v3414_v19  ;;  %3260 = vmatpush3.bf16.msra.mxu1 %v3415_v26  ;;  %v3445_v19 = vld [vmem:[%s4452_s5 + $0x2f0] sm:$0xff]  }
 0x213   : > { %3239 = vmatprep.subr.bf16.mxu0 %v3416_v28  ;;  %3261 = vmatprep.subr.bf16.mxu1 %v3417_v29  ;;  %v3446_v26 = vld [vmem:[%s4452_s5 + $0x230] sm:$0xff]   ;;  %v3448_v29 = vld [vmem:[%s4452_s5 + $0x268] sm:$0xff]  }
 0x214   : > { %v3447_v28 = vld [vmem:[%s4452_s5 + $0x2b0] sm:$0xff]  }
 0x216   : > { %3240 = vmatpush3.bf16.msra.mxu0 %v3418_v27  ;;  %3262 = vmatpush3.bf16.msra.mxu1 %v3419_v30  ;;  %v3449_v27 = vld [vmem:[%s4452_s5 + $0x2e8] sm:$0xff]  }
 0x217   : > { %3241 = vmatprep.subr.bf16.mxu0 %v3420_v31  ;;  %3263 = vmatprep.subr.bf16.mxu1 %v3421_v32  ;;  %v3450_v30 = vld [vmem:[%s4452_s5 + $0x228] sm:$0xff]   ;;  %v3452_v32 = vld [vmem:[%s4452_s5 + $0x260] sm:$0xff]  }
 0x218   : > { %v3451_v31 = vld [vmem:[%s4452_s5 + $0x2a8] sm:$0xff]  }
 0x21a   : > { %3242 = vmatpush3.bf16.msra.mxu0 %v3422_v33  ;;  %3264 = vmatpush3.bf16.msra.mxu1 %v3423_v34  ;;  %v3453_v33 = vld [vmem:[%s4452_s5 + $0x2e0] sm:$0xff]  }
 0x21b   : > { %3243 = vmatprep.subr.bf16.mxu0 %v3424_v35  ;;  %3265 = vmatprep.subr.bf16.mxu1 %v3425_v36  ;;  %v3454_v34 = vld [vmem:[%s4452_s5 + $0x220] sm:$0xff]   ;;  %v3456_v36 = vld [vmem:[%s4452_s5 + $0x258] sm:$0xff]  }
 0x21c   : > { %v3455_v35 = vld [vmem:[%s4452_s5 + $0x2a0] sm:$0xff]  }
 0x21e   : > { %3244 = vmatpush3.bf16.msra.mxu0 %v3426_v37  ;;  %3266 = vmatpush3.bf16.msra.mxu1 %v3427_v38  ;;  %v3457_v37 = vld [vmem:[%s4452_s5 + $0x2d8] sm:$0xff]  }
 0x21f   : > { %3245 = vmatprep.subr.bf16.mxu0 %v3428_v39  ;;  %3267 = vmatprep.subr.bf16.mxu1 %v3429_v40  ;;  %v3458_v38 = vld [vmem:[%s4452_s5 + $0x218] sm:$0xff]   ;;  %v3460_v40 = vld [vmem:[%s4452_s5 + $0x250] sm:$0xff]  }
 0x220   : > { %v3459_v39 = vld [vmem:[%s4452_s5 + $0x298] sm:$0xff]  }
 0x222   : > { %3246 = vmatpush3.bf16.msra.mxu0 %v3430_v43  ;;  %3268 = vmatpush3.bf16.msra.mxu1 %v3431_v44  ;;  %v3461_v43 = vld [vmem:[%s4452_s5 + $0x2d0] sm:$0xff]   ;;  %v4284_v44 = vld [vmem:[%s4451_s4 + $0x8] sm:$0xff] }
 0x223   : > { %v1273_v60 = vpop.f32.mrf.mxu0  ;;  %v1314_v61 = vpop.f32.mrf.mxu1  ;;  %3247 = vmatprep.subr.bf16.mxu0 %v3432_v47  ;;  %3269 = vmatprep.subr.bf16.mxu1 %v3433_v48  ;;  %v3462_v47 = vld [vmem:[%s4452_s5 + $0x210] sm:$0xff]  }
 0x224   : > { %v1274_v63 = vadd.f32 %v1273_v60, %v456_v49  ;;  %v1315_v0 = vadd.f32 %v1314_v61, %v464_v50  ;;  %v3463_v48 = vld [vmem:[%s4452_s5 + $0x290] sm:$0xff]   ;;  %v3464_v49 = vld [vmem:[%s4452_s5 + $0x248] sm:$0xff]  }
 0x225   : > { %v1275_v1 = vpop.f32.mrf.mxu0  ;;  %v1316_v2 = vpop.f32.mrf.mxu1  ;;  %v3465_v50 = vld [vmem:[%s4452_s5 + $0x2c8] sm:$0xff]  }
 0x226   : > { %v1276_v3 = vadd.f32 %v1275_v1, %v460_v51  ;;  %v1317_v4 = vadd.f32 %v1316_v2, %v468_v13  ;;  %3248 = vmatpush3.bf16.msra.mxu0 %v3434_v52  ;;  %3270 = vmatpush3.bf16.msra.mxu1 %v3435_v53  ;;  %v1489_v7 = vmax.f32 %v1274_v63, 0.0  ;;  %v1491_v8 = vmax.f32 %v1315_v0, 0.0  ;;  %v3466_v60 = vld [vmem:[%s4452_s5 + $0x208] sm:$0xff]  }
 0x227   : > { %v1277_v9 = vpop.f32.mrf.mxu0  ;;  %v1318_v10 = vpop.f32.mrf.mxu1  ;;  %3249 = vmatprep.subr.bf16.mxu0 %v3436_v62  ;;  %3271 = vmatprep.subr.bf16.mxu1 %v3437_v57  ;;  %v472_v51 = vrot.slane %v4284_v44, %v439_v55  ;;  %v480_v13 = vrot.slane %v4284_v44, %v447_v56  ;;  %v476_v52 = vrot.slane %v4284_v44, %v443_v58  ;;  %v3467_v55 = vld [vmem:[%s4452_s5 + $0x288] sm:$0xff]   ;;  %v3468_v58 = vld [vmem:[%s4452_s5 + $0x240] sm:$0xff]  }
 0x228   : > { %v1490_v14 = vmax.f32 %v1276_v3, 0.0  ;;  %v1492_v15 = vmax.f32 %v1317_v4, 0.0  ;;  %v1505_v23 = vpack.c.bf16 %v1489_v7, %v1489_v7  ;;  %v1507_v24 = vpack.c.bf16 %v1491_v8, %v1491_v8  ;;  %v3470_v3 = vld [vmem:[%s4452_s5 + $0x200] sm:$0xff]   ;;  %v3472_v9 = vld [vmem:[%s4452_s5 + $0x378] sm:$0xff]  }
 0x229   : > { %v1278_v16 = vpop.f32.mrf.mxu0  ;;  %v1319_v17 = vpop.f32.mrf.mxu1  ;;  %v484_v53 = vrot.slane %v4284_v44, %v451_v59  ;;  %v3469_v59 = vld [vmem:[%s4452_s5 + $0x2c0] sm:$0xff]   ;;  %v3473_v10 = vld [vmem:[%s4452_s5 + $0x3f8] sm:$0xff]  }
 0x22a   : > { %v1506_v18 = vpack.c.bf16 %v1490_v14, %v1490_v14  ;;  %v1508_v20 = vpack.c.bf16 %v1492_v15, %v1492_v15  ;;  %3250 = vmatpush3.bf16.msra.mxu0 %v3438_v5  ;;  %3272 = vmatpush3.bf16.msra.mxu1 %v3439_v6  ;;  %v3471_v4 = vld [vmem:[%s4452_s5 + $0x280] sm:$0xff]  }
 0x22b   : > { %3279 = vmatprep.subr.bf16.mxu0 %v3440_v11  ;;  %3301 = vmatprep.subr.bf16.mxu1 %v3441_v12 }
 0x22c   : > { %2660 = vmatprep.mubr.bf16.mxu0 %v1506_v18  ;;  %2700 = vmatprep.mubr.bf16.mxu1 %v1508_v20  ;;  %v3474_v18 = vld [vmem:[%s4452_s5 + $0x338] sm:$0xff]  }
 0x22d   : > { %2661 = vmatmul.mubr.bf16.vlgmr.msra.gmra.mxu0 %v1505_v23  ;;  %2701 = vmatmul.mubr.bf16.vlgmr.msra.gmra.mxu1 %v1507_v24  ;;  %v3475_v20 = vld [vmem:[%s4452_s5 + $0x3b8] sm:$0xff]   ;;  %v3476_v23 = vld [vmem:[%s4452_s5 + $0x370] sm:$0xff]  }
 0x22e   : > { %3280 = vmatpush3.bf16.msra.mxu0 %v3442_v21  ;;  %3302 = vmatpush3.bf16.msra.mxu1 %v3443_v22  ;;  %v3477_v24 = vld [vmem:[%s4452_s5 + $0x3f0] sm:$0xff]  }
 0x22f   : > { %3281 = vmatprep.subr.bf16.mxu0 %v3444_v25  ;;  %3303 = vmatprep.subr.bf16.mxu1 %v3445_v19  ;;  %v3478_v25 = vld [vmem:[%s4452_s5 + $0x330] sm:$0xff]  }
 0x230   : > { %v3479_v19 = vld [vmem:[%s4452_s5 + $0x3b0] sm:$0xff]  }
 0x232   : > { %3282 = vmatpush3.bf16.msra.mxu0 %v3446_v26  ;;  %3304 = vmatpush3.bf16.msra.mxu1 %v3447_v28  ;;  %v3480_v26 = vld [vmem:[%s4452_s5 + $0x368] sm:$0xff]  }
 0x233   : > { %3283 = vmatprep.subr.bf16.mxu0 %v3448_v29  ;;  %3305 = vmatprep.subr.bf16.mxu1 %v3449_v27  ;;  %v3481_v28 = vld [vmem:[%s4452_s5 + $0x3e8] sm:$0xff]  }
 0x234   : > { %v3482_v29 = vld [vmem:[%s4452_s5 + $0x328] sm:$0xff]  }
 0x235   : > { %v3483_v27 = vld [vmem:[%s4452_s5 + $0x3a8] sm:$0xff]  }
 0x236   : > { %3284 = vmatpush3.bf16.msra.mxu0 %v3450_v30  ;;  %3306 = vmatpush3.bf16.msra.mxu1 %v3451_v31  ;;  %v3484_v30 = vld [vmem:[%s4452_s5 + $0x360] sm:$0xff]  }
 0x237   : > { %3285 = vmatprep.subr.bf16.mxu0 %v3452_v32  ;;  %3307 = vmatprep.subr.bf16.mxu1 %v3453_v33  ;;  %v3485_v31 = vld [vmem:[%s4452_s5 + $0x3e0] sm:$0xff]  }
 0x238   : > { %v3486_v32 = vld [vmem:[%s4452_s5 + $0x320] sm:$0xff]  }
 0x239   : > { %v3487_v33 = vld [vmem:[%s4452_s5 + $0x3a0] sm:$0xff]  }
 0x23a   : > { %3286 = vmatpush3.bf16.msra.mxu0 %v3454_v34  ;;  %3308 = vmatpush3.bf16.msra.mxu1 %v3455_v35  ;;  %v3488_v34 = vld [vmem:[%s4452_s5 + $0x358] sm:$0xff]  }
 0x23b   : > { %3287 = vmatprep.subr.bf16.mxu0 %v3456_v36  ;;  %3309 = vmatprep.subr.bf16.mxu1 %v3457_v37  ;;  %v3489_v35 = vld [vmem:[%s4452_s5 + $0x3d8] sm:$0xff]  }
 0x23c   : > { %v3490_v36 = vld [vmem:[%s4452_s5 + $0x318] sm:$0xff]  }
 0x23d   : > { %v3491_v37 = vld [vmem:[%s4452_s5 + $0x398] sm:$0xff]  }
 0x23e   : > { %3288 = vmatpush3.bf16.msra.mxu0 %v3458_v38  ;;  %3310 = vmatpush3.bf16.msra.mxu1 %v3459_v39  ;;  %v3492_v38 = vld [vmem:[%s4452_s5 + $0x350] sm:$0xff]  }
 0x23f   : > { %3289 = vmatprep.subr.bf16.mxu0 %v3460_v40  ;;  %3311 = vmatprep.subr.bf16.mxu1 %v3461_v43  ;;  %v3493_v39 = vld [vmem:[%s4452_s5 + $0x3d0] sm:$0xff]  }
 0x240   : > { %v3494_v40 = vld [vmem:[%s4452_s5 + $0x310] sm:$0xff]  }
 0x241   : > { %v3495_v43 = vld [vmem:[%s4452_s5 + $0x390] sm:$0xff]  }
 0x242   : > { %3290 = vmatpush3.bf16.msra.mxu0 %v3462_v47  ;;  %3312 = vmatpush3.bf16.msra.mxu1 %v3463_v48  ;;  %v3496_v47 = vld [vmem:[%s4452_s5 + $0x348] sm:$0xff]  }
 0x243   : > { %v1355_v61 = vpop.f32.mrf.mxu0  ;;  %v1396_v56 = vpop.f32.mrf.mxu1  ;;  %3291 = vmatprep.subr.bf16.mxu0 %v3464_v49  ;;  %3313 = vmatprep.subr.bf16.mxu1 %v3465_v50  ;;  %v3497_v48 = vld [vmem:[%s4452_s5 + $0x3c8] sm:$0xff]   ;;  %v488_v49 = vrot.slane %v4284_v44, %v455_v41  ;;  %v496_v50 = vrot.slane %v4284_v44, %v463_v42 }
 0x244   : > { %v1356_v62 = vadd.f32 %v1355_v61, %v472_v51  ;;  %v1397_v57 = vadd.f32 %v1396_v56, %v480_v13  ;;  %v492_v51 = vrot.slane %v4284_v44, %v459_v45  ;;  %v500_v13 = vrot.slane %v4284_v44, %v467_v46  ;;  %v3499_v41 = vld [vmem:[%s4452_s5 + $0x388] sm:$0xff]   ;;  %v3500_v45 = vld [vmem:[%s4452_s5 + $0x340] sm:$0xff]  }
 0x245   : > { %v1357_v63 = vpop.f32.mrf.mxu0  ;;  %v1398_v0 = vpop.f32.mrf.mxu1 }
 0x246   : > { %v1358_v1 = vadd.f32 %v1357_v63, %v476_v52  ;;  %v1399_v2 = vadd.f32 %v1398_v0, %v484_v53  ;;  %3292 = vmatpush3.bf16.msra.mxu0 %v3466_v60  ;;  %3314 = vmatpush3.bf16.msra.mxu1 %v3467_v55  ;;  %v1493_v5 = vmax.f32 %v1356_v62, 0.0  ;;  %v1495_v6 = vmax.f32 %v1397_v57, 0.0  ;;  %v3498_v52 = vld [vmem:[%s4452_s5 + $0x308] sm:$0xff]  }
 0x247   : > { %v1359_v7 = vpop.f32.mrf.mxu0  ;;  %v1400_v8 = vpop.f32.mrf.mxu1  ;;  %3293 = vmatprep.subr.bf16.mxu0 %v3468_v58  ;;  %3315 = vmatprep.subr.bf16.mxu1 %v3469_v59  ;;  %v3502_v58 = vld [vmem:[%s4452_s5 + $0x300] sm:$0xff]  }
 0x248   : > { %v1494_v11 = vmax.f32 %v1358_v1, 0.0  ;;  %v1496_v12 = vmax.f32 %v1399_v2, 0.0  ;;  %v1509_v21 = vpack.c.bf16 %v1493_v5, %v1493_v5  ;;  %v1511_v22 = vpack.c.bf16 %v1495_v6, %v1495_v6  ;;  %v3503_v59 = vld [vmem:[%s4452_s5 + $0x380] sm:$0xff]  }
 0x249   : > { %v1360_v14 = vpop.f32.mrf.mxu0  ;;  %v1401_v15 = vpop.f32.mrf.mxu1 }
 0x24a   : > { %v1510_v16 = vpack.c.bf16 %v1494_v11, %v1494_v11  ;;  %v1512_v17 = vpack.c.bf16 %v1496_v12, %v1496_v12  ;;  %3294 = vmatpush3.bf16.msra.mxu0 %v3470_v3  ;;  %3316 = vmatpush3.bf16.msra.mxu1 %v3471_v4  ;;  %v3060_v11 = vld [vmem:[%s4453_s6] ss:$0 sm:$0xff] }
 0x24b   : > { %3323 = vmatprep.subr.bf16.mxu0 %v3472_v9  ;;  %3345 = vmatprep.subr.bf16.mxu1 %v3473_v10 }
 0x24c   : > { %2740 = vmatprep.mubr.bf16.mxu0 %v1510_v16  ;;  %2780 = vmatprep.mubr.bf16.mxu1 %v1512_v17 }
 0x24d   : > { %2741 = vmatmul.mubr.bf16.vlgmr.msra.gmra.mxu0 %v1509_v21  ;;  %2781 = vmatmul.mubr.bf16.vlgmr.msra.gmra.mxu1 %v1511_v22 }
 0x24e   : > { %3324 = vmatpush3.bf16.msra.mxu0 %v3474_v18  ;;  %3346 = vmatpush3.bf16.msra.mxu1 %v3475_v20 }
 0x24f   : > { %3325 = vmatprep.subr.bf16.mxu0 %v3476_v23  ;;  %3347 = vmatprep.subr.bf16.mxu1 %v3477_v24 }
 0x252   : > { %3326 = vmatpush3.bf16.msra.mxu0 %v3478_v25  ;;  %3348 = vmatpush3.bf16.msra.mxu1 %v3479_v19 }
 0x253   : > { %3327 = vmatprep.subr.bf16.mxu0 %v3480_v26  ;;  %3349 = vmatprep.subr.bf16.mxu1 %v3481_v28 }
 0x256   : > { %3328 = vmatpush3.bf16.msra.mxu0 %v3482_v29  ;;  %3350 = vmatpush3.bf16.msra.mxu1 %v3483_v27 }
 0x257   : > { %3329 = vmatprep.subr.bf16.mxu0 %v3484_v30  ;;  %3351 = vmatprep.subr.bf16.mxu1 %v3485_v31 }
 0x25a   : > { %3330 = vmatpush3.bf16.msra.mxu0 %v3486_v32  ;;  %3352 = vmatpush3.bf16.msra.mxu1 %v3487_v33 }
 0x25b   : > { %3331 = vmatprep.subr.bf16.mxu0 %v3488_v34  ;;  %3353 = vmatprep.subr.bf16.mxu1 %v3489_v35 }
 0x25e   : > { %3332 = vmatpush3.bf16.msra.mxu0 %v3490_v36  ;;  %3354 = vmatpush3.bf16.msra.mxu1 %v3491_v37 }
 0x25f   : > { %3333 = vmatprep.subr.bf16.mxu0 %v3492_v38  ;;  %3355 = vmatprep.subr.bf16.mxu1 %v3493_v39 }
 0x262   : > { %3334 = vmatpush3.bf16.msra.mxu0 %v3494_v40  ;;  %3356 = vmatpush3.bf16.msra.mxu1 %v3495_v43 }
 0x263   : > { %v1437_v53 = vpop.f32.mrf.mxu0  ;;  %v1478_v42 = vpop.f32.mrf.mxu1  ;;  %3335 = vmatprep.subr.bf16.mxu0 %v3496_v47  ;;  %3357 = vmatprep.subr.bf16.mxu1 %v3497_v48 }
 0x264   : > { %v1438_v46 = vadd.f32 %v1437_v53, %v488_v49  ;;  %v1479_v44 = vadd.f32 %v1478_v42, %v496_v50 }
 0x265   : > { %v1439_v60 = vpop.f32.mrf.mxu0  ;;  %v1480_v55 = vpop.f32.mrf.mxu1 }
 0x266   : > { %v1440_v61 = vadd.f32 %v1439_v60, %v492_v51  ;;  %v1481_v56 = vadd.f32 %v1480_v55, %v500_v13  ;;  %3336 = vmatpush3.bf16.msra.mxu0 %v3498_v52  ;;  %3358 = vmatpush3.bf16.msra.mxu1 %v3499_v41  ;;  %v1497_v62 = vmax.f32 %v1438_v46, 0.0  ;;  %v1499_v57 = vmax.f32 %v1479_v44, 0.0 }
 0x267   : > { %v1441_v63 = vpop.f32.mrf.mxu0  ;;  %v1482_v0 = vpop.f32.mrf.mxu1  ;;  %3337 = vmatprep.subr.bf16.mxu0 %v3500_v45  ;;  %3359 = vmatprep.subr.bf16.mxu1 %v3501_v54 }
 0x268   : > { %v1498_v1 = vmax.f32 %v1440_v61, 0.0  ;;  %v1500_v2 = vmax.f32 %v1481_v56, 0.0  ;;  %v1513_v7 = vpack.c.bf16 %v1497_v62, %v1497_v62  ;;  %v1515_v8 = vpack.c.bf16 %v1499_v57, %v1499_v57 }
 0x269   : > { %v1442_v3 = vpop.f32.mrf.mxu0  ;;  %v1483_v4 = vpop.f32.mrf.mxu1 }
 0x26a   : > { %v1514_v5 = vpack.c.bf16 %v1498_v1, %v1498_v1  ;;  %v1516_v6 = vpack.c.bf16 %v1500_v2, %v1500_v2  ;;  %3338 = vmatpush3.bf16.msra.mxu0 %v3502_v58  ;;  %3360 = vmatpush3.bf16.msra.mxu1 %v3503_v59 }
 0x26c   : > { %2820 = vmatprep.mubr.bf16.mxu0 %v1514_v5  ;;  %2860 = vmatprep.mubr.bf16.mxu1 %v1516_v6 }
 0x26d   : > { %2821 = vmatmul.mubr.bf16.vlgmr.msra.gmra.mxu0 %v1513_v7  ;;  %2861 = vmatmul.mubr.bf16.vlgmr.msra.gmra.mxu1 %v1515_v8 }
 0x2cd   : > { %v3207_v9 = vpop.f32.mrf.mxu0  ;;  %v3229_v10 = vpop.f32.mrf.mxu1 }
 0x2cf   : > { %v3208_v12 = vpop.f32.mrf.mxu0  ;;  %v3230_v14 = vpop.f32.mrf.mxu1 }
 0x2d0   : > { %v3209_v15 = vadd.f32 %v3208_v12, %v3207_v9  ;;  %v3231_v16 = vadd.f32 %v3230_v14, %v3229_v10 }
 0x2d1   : > { %v3210_v17 = vpop.f32.mrf.mxu0  ;;  %v3232_v18 = vpop.f32.mrf.mxu1 }
 0x2d2   : > { %v2583_v20 = vadd.f32 %v3209_v15, %v3060_v11 }
 0x2d3   : > { %v3211_v21 = vpop.f32.mrf.mxu0  ;;  %v3233_v22 = vpop.f32.mrf.mxu1 }
 0x2d4   : > { %v2623_v23 = vadd.f32 %v3231_v16, %v2583_v20 }
 0x2ed   : > { %v3251_v24 = vpop.f32.mrf.mxu0  ;;  %v3273_v25 = vpop.f32.mrf.mxu1 }
 0x2ef   : > { %v3252_v19 = vpop.f32.mrf.mxu0  ;;  %v3274_v26 = vpop.f32.mrf.mxu1 }
 0x2f0   : > { %v3253_v39 = vadd.f32 %v3252_v19, %v3251_v24  ;;  %v3275_v43 = vadd.f32 %v3274_v26, %v3273_v25 }
 0x2f1   : > { %v3254_v28 = vpop.f32.mrf.mxu0  ;;  %v3276_v29 = vpop.f32.mrf.mxu1 }
 0x2f2   : > { %v2663_v40 = vadd.f32 %v3253_v39, %v2623_v23 }
 0x2f3   : > { %v3255_v27 = vpop.f32.mrf.mxu0  ;;  %v3277_v30 = vpop.f32.mrf.mxu1 }
 0x2f4   : > { %v2703_v48 = vadd.f32 %v3275_v43, %v2663_v40 }
 0x30d   : > { %v3295_v31 = vpop.f32.mrf.mxu0  ;;  %v3317_v32 = vpop.f32.mrf.mxu1 }
 0x30f   : > { %v3296_v33 = vpop.f32.mrf.mxu0  ;;  %v3318_v34 = vpop.f32.mrf.mxu1 }
 0x310   : > { %v3297_v47 = vadd.f32 %v3296_v33, %v3295_v31  ;;  %v3319_v13 = vadd.f32 %v3318_v34, %v3317_v32 }
 0x311   : > { %v3298_v35 = vpop.f32.mrf.mxu0  ;;  %v3320_v36 = vpop.f32.mrf.mxu1 }
 0x312   : > { %v2743_v49 = vadd.f32 %v3297_v47, %v2703_v48 }
 0x313   : > { %v3299_v37 = vpop.f32.mrf.mxu0  ;;  %v3321_v38 = vpop.f32.mrf.mxu1 }
 0x314   : > { %v2783_v53 = vadd.f32 %v3319_v13, %v2743_v49 }
 0x32d   : > { %v3339_v50 = vpop.f32.mrf.mxu0  ;;  %v3361_v51 = vpop.f32.mrf.mxu1 }
 0x32f   : > { %v3340_v52 = vpop.f32.mrf.mxu0  ;;  %v3362_v41 = vpop.f32.mrf.mxu1 }
 0x330   : > { %v3341_v42 = vadd.f32 %v3340_v52, %v3339_v50  ;;  %v3363_v44 = vadd.f32 %v3362_v41, %v3361_v51 }
 0x331   : > { %v3342_v45 = vpop.f32.mrf.mxu0  ;;  %v3364_v54 = vpop.f32.mrf.mxu1 }
 0x332   : > { %v2823_v46 = vadd.f32 %v3341_v42, %v2783_v53 }
 0x333   : > { %v3343_v60 = vpop.f32.mrf.mxu0  ;;  %v3365_v55 = vpop.f32.mrf.mxu1 }
 0x334   : > { %v2863_v61 = vadd.f32 %v3363_v44, %v2823_v46 }
 0x336   : > { %v2868_v56 = vmul.f32 2.0, %v2863_v61 }
 0x338   : > { %2869 = vst [vmem:[%s273_s11] sm:$0xff] %v2868_v56 }
 0x339 PF: > { %s17_s24 = sadd.s32 1, %s3512_s24  }
 0x33a   : > { %p14_p4 = scmp.ge.s32.totalorder %s17_s24, 4  }
 0x33c   :  { %16 = sbr.rel (!%p14_p4) target bundleno = 1 (0x1), region = 78 }

</bundles_post_ra>
